<compile_context>
chip_gen: v7x
topology: tpu7x:2x2x1
jax: 0.10.0
libtpu: 0.0.40
codegen_flags: <defaults>
</compile_context>

<pallas_src>
import functools
import math

import jax
import jax.numpy as jnp
from jax import lax
from jax.experimental import pallas as pl
from jax.experimental.pallas import tpu as pltpu


# ----------------------------------------------------------------------------- helpers
def _round_up(x, m):
    return ((x + m - 1) // m) * m


def _tile_and_pad(dim, max_tile, align):
    """Tile (multiple of align) and the padded extent it divides."""
    if dim <= max_tile:
        tile = _round_up(dim, align)
    else:
        tile = max(align, max_tile - max_tile % align)
    return tile, _round_up(dim, tile)


def _pick_tile(dim, max_tile, align=128):
    """Lane-aligned tile minimizing padded extent (e.g. N=3E=384 -> 384, not 256->512)."""
    if dim <= max_tile:
        return _round_up(dim, align)
    cands = range(align, max_tile + 1, align)
    return max(cands, key=lambda t: (-_round_up(dim, t), t))


def _pad2(a, rows, cols):
    pr, pc = rows - a.shape[0], cols - a.shape[1]
    if pr == 0 and pc == 0:
        return a
    return jnp.pad(a, ((0, pr), (0, pc)))


@functools.lru_cache(maxsize=None)
def _vmem_limit():
    cap = 64 * 1024 * 1024
    try:
        cap = int(getattr(pltpu.get_tpu_info(), "vmem_capacity_bytes", cap))
    except Exception:
        pass
    return (cap * 3) // 4          # ~48 MiB on v7x, ~96 MiB on v5e/v6e


def _erf_approx(x):
    # Abramowitz & Stegun 7.1.26, |error| < 1.5e-7 (intentional deviation from exact erf).
    a1, a2, a3, a4, a5 = 0.254829592, -0.284496736, 1.421413741, -1.453152027, 1.061405429
    p = 0.3275911
    ax = jnp.abs(x)
    t = pl.reciprocal(1.0 + p * ax, approx=True)      # divide on the EUP slot
    poly = ((((a5 * t + a4) * t + a3) * t + a2) * t + a1) * t
    y = 1.0 - poly * jnp.exp(-ax * ax)
    return jnp.where(x >= 0, y, -y)


def _gelu(x):
    # Matches torch.nn.GELU() (erf form) to ~1e-3 or better (approx reciprocal + erf polynomial).
    return 0.5 * x * (1.0 + _erf_approx(x * 0.7071067811865476))


# ----------------------------------------------------------------------------- 1) QKV matmul
def _matmul_kernel(x_ref, w_ref, o_ref, acc_ref):
    k_idx = pl.program_id(2)

    @pl.when(k_idx == 0)
    def _init():
        acc_ref[...] = jnp.zeros(acc_ref.shape, jnp.float32)

    acc_ref[...] += jnp.dot(x_ref[...].astype(jnp.bfloat16), w_ref[...],
                            preferred_element_type=jnp.float32)

    @pl.when(k_idx == pl.num_programs(2) - 1)
    def _fin():
        o_ref[...] = acc_ref[...].astype(o_ref.dtype)


def matmul_pallas(x, w, *, tile_m=512, tile_n=512, tile_k=1024):
    """out = x @ w, tiled over (M, N, K) with f32 accumulation; w is expected in bf16."""
    M, K = x.shape
    K2, N = w.shape
    assert K == K2
    tm, Mp = _tile_and_pad(M, tile_m, 8)
    tn = _pick_tile(N, tile_n)
    tk = _pick_tile(K, tile_k)
    Np, Kp = _round_up(N, tn), _round_up(K, tk)

    xp = _pad2(x, Mp, Kp)
    wp = _pad2(w, Kp, Np)       # no-op when E is a multiple of 128 (the common case)

    out = pl.pallas_call(
        _matmul_kernel,
        out_shape=jax.ShapeDtypeStruct((Mp, Np), x.dtype),
        grid_spec=pltpu.PrefetchScalarGridSpec(
            num_scalar_prefetch=0,
            grid=(Mp // tm, Np // tn, Kp // tk),
            in_specs=[
                pl.BlockSpec((tm, tk), lambda i, j, k: (i, k)),
                pl.BlockSpec((tk, tn), lambda i, j, k: (k, j)),
            ],
            out_specs=pl.BlockSpec((tm, tn), lambda i, j, k: (i, j)),
            scratch_shapes=[pltpu.VMEM((tm, tn), jnp.float32)],
        ),
        compiler_params=pltpu.CompilerParams(
            dimension_semantics=("parallel", "parallel", "arbitrary"),
            vmem_limit_bytes=_vmem_limit(),
        ),
    )(xp, wp)
    return out[:M, :N]


# ----------------------------------------------------------------------------- 2) multi-head attention
def _mha_kernel(q_ref, k_ref, v_ref, o_ref, m_sc, l_sc, acc_sc, *,
                n_heads, d, scale, early_div, s_true, kv_tile, need_mask):
    kv = pl.program_id(2)
    tq = q_ref.shape[1]
    tkv = k_ref.shape[1]

    @pl.when(kv == 0)
    def _init():
        m_sc[...] = jnp.full(m_sc.shape, -jnp.inf, jnp.float32)
        l_sc[...] = jnp.zeros(l_sc.shape, jnp.float32)
        acc_sc[...] = jnp.zeros(acc_sc.shape, jnp.float32)

    if need_mask:
        col = kv * kv_tile + lax.broadcasted_iota(jnp.int32, (tq, tkv), 1)
        kv_valid = col < s_true

    for h in range(n_heads):
        hs, he = h * d, (h + 1) * d
        qh = q_ref[0, :, hs:he]
        if early_div:
            qh = qh * scale
        qh = qh.astype(jnp.bfloat16)
        kh = k_ref[0, :, hs:he].astype(jnp.bfloat16)
        vh = v_ref[0, :, hs:he].astype(jnp.bfloat16)

        # contract the d axes directly (no (S,d) transpose through the XLU)
        s = lax.dot_general(qh, kh, (((1,), (1,)), ((), ())),
                            preferred_element_type=jnp.float32)          # (tq, tkv)
        if not early_div:
            s = s * scale
        if need_mask:
            s = jnp.where(kv_valid, s, -1e30)

        m_prev = m_sc[h]                                                  # (tq, 1)
        m_new = jnp.maximum(m_prev, jnp.max(s, axis=-1, keepdims=True))
        alpha = jnp.exp(m_prev - m_new)
        p = jnp.exp(s - m_new)
        l_sc[h] = alpha * l_sc[h] + jnp.sum(p, axis=-1, keepdims=True)
        pv = jnp.dot(p.astype(jnp.bfloat16), vh, preferred_element_type=jnp.float32)
        acc_sc[:, hs:he] = alpha * acc_sc[:, hs:he] + pv
        m_sc[h] = m_new

    @pl.when(kv == pl.num_programs(2) - 1)
    def _fin():
        for h in range(n_heads):
            hs, he = h * d, (h + 1) * d
            inv = pl.reciprocal(l_sc[h], approx=True)                     # EUP, not VALU
            o_ref[0, :, hs:he] = (acc_sc[:, hs:he] * inv).astype(o_ref.dtype)


def mha_pallas(qkv, *, n_heads, early_div=False, tile_s=256):
    """softmax(q k^T / sqrt(d)) v for all heads, reading lane-dense blocks of the (B,S,3E) qkv tensor."""
    B, S, threeE = qkv.shape
    E = threeE // 3
    d = E // n_heads
    scale = 1.0 / math.sqrt(d)
    ts, Sp = _tile_and_pad(S, tile_s, 8)
    if Sp != S:
        qkv = jnp.pad(qkv, ((0, 0), (0, Sp - S), (0, 0)))

    kernel = functools.partial(
        _mha_kernel, n_heads=n_heads, d=d, scale=scale, early_div=early_div,
        s_true=S, kv_tile=ts, need_mask=(Sp != S))

    out = pl.pallas_call(
        kernel,
        out_shape=jax.ShapeDtypeStruct((B, Sp, E), qkv.dtype),
        grid_spec=pltpu.PrefetchScalarGridSpec(
            num_scalar_prefetch=0,
            grid=(B, Sp // ts, Sp // ts),
            in_specs=[
                pl.BlockSpec((1, ts, E), lambda b, i, k: (b, i, 0)),   # Q columns [0:E]
                pl.BlockSpec((1, ts, E), lambda b, i, k: (b, k, 1)),   # K columns [E:2E]
                pl.BlockSpec((1, ts, E), lambda b, i, k: (b, k, 2)),   # V columns [2E:3E]
            ],
            out_specs=pl.BlockSpec((1, ts, E), lambda b, i, k: (b, i, 0)),
            scratch_shapes=[
                pltpu.VMEM((n_heads, ts, 1), jnp.float32),   # running max
                pltpu.VMEM((n_heads, ts, 1), jnp.float32),   # running denom
                pltpu.VMEM((ts, E), jnp.float32),            # output accumulator (lane-dense)
            ],
        ),
        compiler_params=pltpu.CompilerParams(
            dimension_semantics=("parallel", "parallel", "arbitrary"),
            vmem_limit_bytes=_vmem_limit(),
        ),
    )(qkv, qkv, qkv)
    return out[:, :S, :]


# ----------------------------------------------------------------------------- 3) out-proj + residual + LN1
def _outproj_ln_kernel(x_ref, w_ref, b_ref, res_ref, g_ref, bt_ref, o_ref, acc_ref, *, eps):
    k_idx = pl.program_id(1)

    @pl.when(k_idx == 0)
    def _init():
        # bias folded into the accumulator init
        acc_ref[...] = jnp.broadcast_to(b_ref[...].astype(jnp.float32), acc_ref.shape)

    acc_ref[...] += jnp.dot(x_ref[...].astype(jnp.bfloat16), w_ref[...],
                            preferred_element_type=jnp.float32)

    @pl.when(k_idx == pl.num_programs(1) - 1)
    def _fin():
        y = acc_ref[...] + res_ref[...].astype(jnp.float32)        # attn residual
        mean = jnp.mean(y, axis=-1, keepdims=True)
        yc = y - mean
        var = jnp.mean(yc * yc, axis=-1, keepdims=True)
        inv = lax.rsqrt(var + eps)
        o_ref[...] = (yc * inv * g_ref[...].astype(jnp.float32)
                      + bt_ref[...].astype(jnp.float32)).astype(o_ref.dtype)


def outproj_ln_pallas(ctx, w, b, residual, gamma, beta, *, eps=1e-5, tile_m=256, tile_k=1024):
    M, K = ctx.shape
    E = w.shape[1]
    tm, Mp = _tile_and_pad(M, tile_m, 8)
    tk, Kp = _tile_and_pad(K, tile_k, 128)

    xp = _pad2(ctx, Mp, Kp)
    wp = _pad2(w, Kp, E)
    resp = _pad2(residual, Mp, E)

    out = pl.pallas_call(
        functools.partial(_outproj_ln_kernel, eps=eps),
        out_shape=jax.ShapeDtypeStruct((Mp, E), ctx.dtype),
        grid_spec=pltpu.PrefetchScalarGridSpec(
            num_scalar_prefetch=0,
            grid=(Mp // tm, Kp // tk),
            in_specs=[
                pl.BlockSpec((tm, tk), lambda i, k: (i, k)),
                pl.BlockSpec((tk, E), lambda i, k: (k, 0)),
                pl.BlockSpec((1, E), lambda i, k: (0, 0)),
                pl.BlockSpec((tm, E), lambda i, k: (i, 0)),
                pl.BlockSpec((1, E), lambda i, k: (0, 0)),
                pl.BlockSpec((1, E), lambda i, k: (0, 0)),
            ],
            out_specs=pl.BlockSpec((tm, E), lambda i, k: (i, 0)),
            scratch_shapes=[pltpu.VMEM((tm, E), jnp.float32)],
        ),
        compiler_params=pltpu.CompilerParams(
            dimension_semantics=("parallel", "arbitrary"),
            vmem_limit_bytes=_vmem_limit(),
        ),
    )(xp, wp, b, resp, gamma, beta)
    return out[:M]


# ----------------------------------------------------------------------------- 4) fully fused FFN + LN2
def _ffn_ln_kernel(x_ref, w1_ref, b1_ref, w2_ref, b2_ref, g_ref, bt_ref, o_ref, *, eps):
    x = x_ref[...].astype(jnp.float32)                                        # n1 row tile (tm, E)
    h = jnp.dot(x.astype(jnp.bfloat16), w1_ref[...],
                preferred_element_type=jnp.float32) + b1_ref[...].astype(jnp.float32)
    h = _gelu(h)                                                              # (tm, F) stays in VMEM
    y = jnp.dot(h.astype(jnp.bfloat16), w2_ref[...],
                preferred_element_type=jnp.float32)
    y = y + b2_ref[...].astype(jnp.float32) + x                               # bias + n1 residual
    mean = jnp.mean(y, axis=-1, keepdims=True)
    yc = y - mean
    var = jnp.mean(yc * yc, axis=-1, keepdims=True)
    o_ref[...] = (yc * lax.rsqrt(var + eps) * g_ref[...].astype(jnp.float32)
                  + bt_ref[...].astype(jnp.float32)).astype(o_ref.dtype)


def ffn_ln_pallas(n1, w1, b1, w2, b2, gamma, beta, *, eps=1e-5, tile_m=256):
    # TODO(synk): for very large E*F, stream w2 over the F axis (emit_pipeline) instead of
    #             keeping both weights resident in VMEM.
    M, E = n1.shape
    F = w1.shape[1]
    tm, Mp = _tile_and_pad(M, tile_m, 8)
    n1p = _pad2(n1, Mp, E)

    out = pl.pallas_call(
        functools.partial(_ffn_ln_kernel, eps=eps),
        out_shape=jax.ShapeDtypeStruct((Mp, E), n1.dtype),
        grid_spec=pltpu.PrefetchScalarGridSpec(
            num_scalar_prefetch=0,
            grid=(Mp // tm,),
            in_specs=[
                pl.BlockSpec((tm, E), lambda i: (i, 0)),
                pl.BlockSpec((E, F), lambda i: (0, 0)),     # resident bf16 weights
                pl.BlockSpec((1, F), lambda i: (0, 0)),
                pl.BlockSpec((F, E), lambda i: (0, 0)),
                pl.BlockSpec((1, E), lambda i: (0, 0)),
                pl.BlockSpec((1, E), lambda i: (0, 0)),
                pl.BlockSpec((1, E), lambda i: (0, 0)),
            ],
            out_specs=pl.BlockSpec((tm, E), lambda i: (i, 0)),
        ),
        compiler_params=pltpu.CompilerParams(
            dimension_semantics=("parallel",),
            vmem_limit_bytes=_vmem_limit(),
        ),
        input_output_aliases={0: 0},     # n1 buffer is dead after this call; reuse it as the output
    )(n1p, w1, b1, w2, b2, gamma, beta)
    return out[:M]


# ----------------------------------------------------------------------------- params & full block
def prepare_params(params):
    """Hoisted out of the jitted step: QKV weight concat, bf16 weight casts, bias/LN reshapes."""
    wqkv = jnp.concatenate([params["wq"], params["wk"], params["wv"]], axis=1)
    return dict(
        wqkv=wqkv.astype(jnp.bfloat16),
        wo=params["wo"].astype(jnp.bfloat16),
        bo=params["bo"].reshape(1, -1).astype(jnp.float32),
        ln1_g=params["ln1_g"].reshape(1, -1).astype(jnp.float32),
        ln1_b=params["ln1_b"].reshape(1, -1).astype(jnp.float32),
        w1=params["w1"].astype(jnp.bfloat16),
        b1=params["b1"].reshape(1, -1).astype(jnp.float32),
        w2=params["w2"].astype(jnp.bfloat16),
        b2=params["b2"].reshape(1, -1).astype(jnp.float32),
        ln2_g=params["ln2_g"].reshape(1, -1).astype(jnp.float32),
        ln2_b=params["ln2_b"].reshape(1, -1).astype(jnp.float32),
    )


def transformer_block_forward(hidden_states, prepared, *, n_heads,
                              attention_mask=None, early_div=False):
    # TODO(synk): additive attention_mask path not implemented (module forward default is None).
    assert attention_mask is None
    B, S, E = hidden_states.shape
    assert E % n_heads == 0
    assert E % 128 == 0, "embed_dim must be a multiple of 128 for the fused lane-dense kernels"
    x2 = hidden_states.reshape(B * S, E)

    qkv = matmul_pallas(x2, prepared["wqkv"])                                   # (B*S, 3E)
    ctx = mha_pallas(qkv.reshape(B, S, 3 * E), n_heads=n_heads, early_div=early_div)
    n1 = outproj_ln_pallas(ctx.reshape(B * S, E), prepared["wo"], prepared["bo"], x2,
                           prepared["ln1_g"], prepared["ln1_b"])                # LN1 fused
    out = ffn_ln_pallas(n1, prepared["w1"], prepared["b1"], prepared["w2"], prepared["b2"],
                        prepared["ln2_g"], prepared["ln2_b"])                   # FFN + LN2 fused
    return out.reshape(B, S, E)


# ----------------------------------------------------------------------------- reference & test
def init_params(key, embed_dim, expansion):
    E, F = embed_dim, expansion * embed_dim
    keys = jax.random.split(key, 9)

    def u(k, fan_in, shape):
        bound = 1.0 / math.sqrt(fan_in)
        return jax.random.uniform(k, shape, jnp.float32, minval=-bound, maxval=bound)

    return dict(
        wq=u(keys[0], E, (E, E)), wk=u(keys[1], E, (E, E)), wv=u(keys[2], E, (E, E)),
        wo=u(keys[3], E, (E, E)), bo=u(keys[4], E, (E,)),
        ln1_g=jnp.ones((E,), jnp.float32), ln1_b=jnp.zeros((E,), jnp.float32),
        w1=u(keys[5], E, (E, F)), b1=u(keys[6], E, (F,)),
        w2=u(keys[7], F, (F, E)), b2=u(keys[8], F, (E,)),
        ln2_g=jnp.ones((E,), jnp.float32), ln2_b=jnp.zeros((E,), jnp.float32),
    )


def reference_forward(x, params, *, n_heads, early_div=False, eps=1e-5):
    B, S, E = x.shape
    d = E // n_heads
    x2 = x.reshape(B * S, E)
    q, k, v = x2 @ params["wq"], x2 @ params["wk"], x2 @ params["wv"]

    def heads(t):
        return t.reshape(B, S, n_heads, d).transpose(0, 2, 1, 3)

    qh, kh, vh = heads(q), heads(k), heads(v)
    scale = 1.0 / math.sqrt(d)
    if early_div:
        qh = qh * scale
    logits = jnp.einsum("bhqd,bhkd->bhqk", qh, kh)
    if not early_div:
        logits = logits * scale
    attn = jax.nn.softmax(logits, axis=-1)
    ctx = jnp.einsum("bhqk,bhkd->bhqd", attn, vh).transpose(0, 2, 1, 3).reshape(B * S, E)
    res1 = x2 + (ctx @ params["wo"] + params["bo"])

    def ln(t, g, b):
        mu = t.mean(-1, keepdims=True)
        var = ((t - mu) ** 2).mean(-1, keepdims=True)
        return (t - mu) * lax.rsqrt(var + eps) * g + b

    n1 = ln(res1, params["ln1_g"], params["ln1_b"])
    h = jax.nn.gelu(n1 @ params["w1"] + params["b1"], approximate=False)
    n2 = ln((h @ params["w2"] + params["b2"]) + n1, params["ln2_g"], params["ln2_b"])
    return n2.reshape(B, S, E)


if __name__ == "__main__":
    batch, seq = 2, 9          # seq=9 exercises the row / kv-column padding + masking paths
    embed_dim, n_heads, expansion = 128, 4, 4

    key = jax.random.PRNGKey(0)
    k_x, k_p = jax.random.split(key)
    x = jax.random.normal(k_x, (batch, seq, embed_dim), jnp.float32)
    params = init_params(k_p, embed_dim, expansion)
    prepared = prepare_params(params)      # weight concat / bf16 cast hoisted out of the step

    fwd = jax.jit(functools.partial(transformer_block_forward, n_heads=n_heads))
    out = jax.block_until_ready(fwd(x, prepared))

    with jax.default_matmul_precision("highest"):
        ref = reference_forward(x, params, n_heads=n_heads)

    assert out.shape == (batch, seq, embed_dim)
    err = float(jnp.max(jnp.abs(out - ref)))
    # Kernels run the matmuls on the native bf16-in / f32-acc MXU path; the tolerance covers the
    # bf16 input rounding vs the full-f32 reference plus the erf-poly GELU / approx-reciprocal paths.
    assert err < 3e-2, f"max abs diff {err}"

    print("KERNEL_OK")
</pallas_src>

<mosaic_0001>
module attributes {stable_mosaic.version = 11 : i64} {
  func.func @_matmul_kernel(%arg0: i32, %arg1: i32, %arg2: i32, %arg3: memref<24x128xf32, #tpu.memory_space<vmem>>, %arg4: memref<128x384xbf16, #tpu.memory_space<vmem>>, %arg5: memref<24x384xf32, #tpu.memory_space<vmem>>, %arg6: memref<24x384xf32, #tpu.memory_space<vmem>>) attributes {dimension_semantics = [#tpu.dimension_semantics<parallel>, #tpu.dimension_semantics<parallel>, #tpu.dimension_semantics<arbitrary>], iteration_bounds = array<i64: 1, 1, 1>, scalar_prefetch = 0 : i64, scratch_operands = 1 : i64, tpu.core_type = #tpu.core_type<tc>, window_params = [{transform_indices = @transform_0, window_bounds = array<i64: 24, 128>}, {transform_indices = @transform_1, window_bounds = array<i64: 128, 384>}, {transform_indices = @transform_2, window_bounds = array<i64: 24, 384>}]} {
    %c0_i32 = arith.constant 0 : i32
    %0 = arith.cmpi eq, %arg2, %c0_i32 : i32
    %1 = arith.extui %0 : i1 to i32
    %c0_i32_0 = arith.constant 0 : i32
    %2 = arith.cmpi ne, %1, %c0_i32_0 : i32
    scf.if %2 {
      %cst_10 = arith.constant 0.000000e+00 : f32
      %13 = vector.broadcast %cst_10 : f32 to vector<24x384xf32>
      %c0_11 = arith.constant 0 : index
      %c0_12 = arith.constant 0 : index
      %14 = vector.load %arg6[%c0_11, %c0_12] : memref<24x384xf32, #tpu.memory_space<vmem>>, vector<24x384xf32>
      tpu.vector_store %arg6[%c0_11, %c0_12], %13 {strides = array<i32>} : memref<24x384xf32, #tpu.memory_space<vmem>>, vector<24x384xf32>,
    } else {
    }
    %c0 = arith.constant 0 : index
    %c0_1 = arith.constant 0 : index
    %3 = vector.load %arg6[%c0, %c0_1] : memref<24x384xf32, #tpu.memory_space<vmem>>, vector<24x384xf32>
    %c0_2 = arith.constant 0 : index
    %c0_3 = arith.constant 0 : index
    %4 = vector.load %arg3[%c0_2, %c0_3] : memref<24x128xf32, #tpu.memory_space<vmem>>, vector<24x128xf32>
    %5 = arith.truncf %4 : vector<24x128xf32> to vector<24x128xbf16>
    %c0_4 = arith.constant 0 : index
    %c0_5 = arith.constant 0 : index
    %6 = vector.load %arg4[%c0_4, %c0_5] : memref<128x384xbf16, #tpu.memory_space<vmem>>, vector<128x384xbf16>
    %cst = arith.constant dense<0.000000e+00> : vector<24x384xf32>
    %7 = tpu.matmul %5, %6, %cst {dimension_numbers = #tpu.dot_dimension_numbers<[1], [0], [0], [1], [0, 0, 1, 1], [], []>} : vector<24x128xbf16>, vector<128x384xbf16>, vector<24x384xf32> -> vector<24x384xf32>
    %8 = arith.addf %3, %7 : vector<24x384xf32>
    %c0_6 = arith.constant 0 : index
    %c0_7 = arith.constant 0 : index
    %9 = vector.load %arg6[%c0_6, %c0_7] : memref<24x384xf32, #tpu.memory_space<vmem>>, vector<24x384xf32>
    tpu.vector_store %arg6[%c0_6, %c0_7], %8 {strides = array<i32>} : memref<24x384xf32, #tpu.memory_space<vmem>>, vector<24x384xf32>,
    %c0_i32_8 = arith.constant 0 : i32
    %10 = arith.cmpi eq, %arg2, %c0_i32_8 : i32
    %11 = arith.extui %10 : i1 to i32
    %c0_i32_9 = arith.constant 0 : i32
    %12 = arith.cmpi ne, %11, %c0_i32_9 : i32
    scf.if %12 {
      %c0_10 = arith.constant 0 : index
      %c0_11 = arith.constant 0 : index
      %13 = vector.load %arg6[%c0_10, %c0_11] : memref<24x384xf32, #tpu.memory_space<vmem>>, vector<24x384xf32>
      %c0_12 = arith.constant 0 : index
      %c0_13 = arith.constant 0 : index
      %14 = vector.load %arg5[%c0_12, %c0_13] : memref<24x384xf32, #tpu.memory_space<vmem>>, vector<24x384xf32>
      tpu.vector_store %arg5[%c0_12, %c0_13], %13 {strides = array<i32>} : memref<24x384xf32, #tpu.memory_space<vmem>>, vector<24x384xf32>,
    } else {
    }
    return
  }
  func.func @transform_0(%arg0: i32, %arg1: i32, %arg2: i32) -> (i32, i32) {
    %c0_i32 = arith.constant 0 : i32
    return %arg0, %arg2 : i32, i32
  }
  func.func @transform_1(%arg0: i32, %arg1: i32, %arg2: i32) -> (i32, i32) {
    %c0_i32 = arith.constant 0 : i32
    return %arg2, %arg1 : i32, i32
  }
  func.func @transform_2(%arg0: i32, %arg1: i32, %arg2: i32) -> (i32, i32) {
    %c0_i32 = arith.constant 0 : i32
    return %arg0, %arg1 : i32, i32
  }
}

module attributes {stable_mosaic.version = 11 : i64} {
  func.func @_ffn_ln_kernel(%arg0: i32, %arg1: memref<24x128xf32, #tpu.memory_space<vmem>>, %arg2: memref<128x512xbf16, #tpu.memory_space<vmem>>, %arg3: memref<1x512xf32, #tpu.memory_space<vmem>>, %arg4: memref<512x128xbf16, #tpu.memory_space<vmem>>, %arg5: memref<1x128xf32, #tpu.memory_space<vmem>>, %arg6: memref<1x128xf32, #tpu.memory_space<vmem>>, %arg7: memref<1x128xf32, #tpu.memory_space<vmem>>, %arg8: memref<24x128xf32, #tpu.memory_space<vmem>>) attributes {dimension_semantics = [#tpu.dimension_semantics<parallel>], iteration_bounds = array<i64: 1>, scalar_prefetch = 0 : i64, scratch_operands = 0 : i64, tpu.core_type = #tpu.core_type<tc>, window_params = [{transform_indices = @transform_0, window_bounds = array<i64: 24, 128>}, {pipeline_mode = #tpu.pipeline_mode<synchronous>, transform_indices = @transform_1, window_bounds = array<i64: 128, 512>}, {pipeline_mode = #tpu.pipeline_mode<synchronous>, transform_indices = @transform_2, window_bounds = array<i64: 1, 512>}, {pipeline_mode = #tpu.pipeline_mode<synchronous>, transform_indices = @transform_3, window_bounds = array<i64: 512, 128>}, {pipeline_mode = #tpu.pipeline_mode<synchronous>, transform_indices = @transform_4, window_bounds = array<i64: 1, 128>}, {pipeline_mode = #tpu.pipeline_mode<synchronous>, transform_indices = @transform_5, window_bounds = array<i64: 1, 128>}, {pipeline_mode = #tpu.pipeline_mode<synchronous>, transform_indices = @transform_6, window_bounds = array<i64: 1, 128>}, {transform_indices = @transform_7, window_bounds = array<i64: 24, 128>}]} {
    %c0 = arith.constant 0 : index
    %c0_0 = arith.constant 0 : index
    %0 = vector.load %arg1[%c0, %c0_0] : memref<24x128xf32, #tpu.memory_space<vmem>>, vector<24x128xf32>
    %1 = arith.truncf %0 : vector<24x128xf32> to vector<24x128xbf16>
    %c0_1 = arith.constant 0 : index
    %c0_2 = arith.constant 0 : index
    %2 = vector.load %arg2[%c0_1, %c0_2] : memref<128x512xbf16, #tpu.memory_space<vmem>>, vector<128x512xbf16>
    %cst = arith.constant dense<0.000000e+00> : vector<24x512xf32>
    %3 = tpu.matmul %1, %2, %cst {dimension_numbers = #tpu.dot_dimension_numbers<[1], [0], [0], [1], [0, 0, 1, 1], [], []>} : vector<24x128xbf16>, vector<128x512xbf16>, vector<24x512xf32> -> vector<24x512xf32>
    %c0_3 = arith.constant 0 : index
    %c0_4 = arith.constant 0 : index
    %4 = vector.load %arg3[%c0_3, %c0_4] : memref<1x512xf32, #tpu.memory_space<vmem>>, vector<1x512xf32>
    %5 = vector.broadcast %4 : vector<1x512xf32> to vector<24x512xf32>
    %6 = arith.addf %3, %5 : vector<24x512xf32>
    %cst_5 = arith.constant 5.000000e-01 : f32
    %7 = vector.broadcast %cst_5 : f32 to vector<24x512xf32>
    %8 = arith.mulf %7, %6 : vector<24x512xf32>
    %cst_6 = arith.constant 0.707106769 : f32
    %9 = vector.broadcast %cst_6 : f32 to vector<24x512xf32>
    %10 = arith.mulf %6, %9 : vector<24x512xf32>
    %11 = math.absf %10 : vector<24x512xf32>
    %cst_7 = arith.constant 0.327591091 : f32
    %12 = vector.broadcast %cst_7 : f32 to vector<24x512xf32>
    %13 = arith.mulf %12, %11 : vector<24x512xf32>
    %cst_8 = arith.constant 1.000000e+00 : f32
    %14 = vector.broadcast %cst_8 : f32 to vector<24x512xf32>
    %15 = arith.addf %14, %13 : vector<24x512xf32>
    %16 = tpu.reciprocal %15 {approx = true} : vector<24x512xf32> -> vector<24x512xf32>
    %cst_9 = arith.constant 1.06140542 : f32
    %17 = vector.broadcast %cst_9 : f32 to vector<24x512xf32>
    %18 = arith.mulf %17, %16 : vector<24x512xf32>
    %cst_10 = arith.constant -1.45315206 : f32
    %19 = vector.broadcast %cst_10 : f32 to vector<24x512xf32>
    %20 = arith.addf %18, %19 : vector<24x512xf32>
    %21 = arith.mulf %20, %16 : vector<24x512xf32>
    %cst_11 = arith.constant 1.42141378 : f32
    %22 = vector.broadcast %cst_11 : f32 to vector<24x512xf32>
    %23 = arith.addf %21, %22 : vector<24x512xf32>
    %24 = arith.mulf %23, %16 : vector<24x512xf32>
    %cst_12 = arith.constant -0.284496725 : f32
    %25 = vector.broadcast %cst_12 : f32 to vector<24x512xf32>
    %26 = arith.addf %24, %25 : vector<24x512xf32>
    %27 = arith.mulf %26, %16 : vector<24x512xf32>
    %cst_13 = arith.constant 0.254829586 : f32
    %28 = vector.broadcast %cst_13 : f32 to vector<24x512xf32>
    %29 = arith.addf %27, %28 : vector<24x512xf32>
    %30 = arith.mulf %29, %16 : vector<24x512xf32>
    %cst_14 = arith.constant 0.000000e+00 : f32
    %31 = vector.broadcast %cst_14 : f32 to vector<24x512xf32>
    %32 = arith.subf %31, %11 : vector<24x512xf32>
    %33 = arith.mulf %32, %11 : vector<24x512xf32>
    %34 = math.exp %33 : vector<24x512xf32>
    %35 = arith.mulf %30, %34 : vector<24x512xf32>
    %cst_15 = arith.constant 1.000000e+00 : f32
    %36 = vector.broadcast %cst_15 : f32 to vector<24x512xf32>
    %37 = arith.subf %36, %35 : vector<24x512xf32>
    %cst_16 = arith.constant 0.000000e+00 : f32
    %38 = vector.broadcast %cst_16 : f32 to vector<24x512xf32>
    %39 = arith.cmpf oge, %10, %38 : vector<24x512xf32>
    %cst_17 = arith.constant 0.000000e+00 : f32
    %40 = vector.broadcast %cst_17 : f32 to vector<24x512xf32>
    %41 = arith.subf %40, %37 : vector<24x512xf32>
    %42 = arith.select %39, %37, %41 : vector<24x512xi1>, vector<24x512xf32>
    %cst_18 = arith.constant 1.000000e+00 : f32
    %43 = vector.broadcast %cst_18 : f32 to vector<24x512xf32>
    %44 = arith.addf %43, %42 : vector<24x512xf32>
    %45 = arith.mulf %8, %44 : vector<24x512xf32>
    %46 = arith.truncf %45 : vector<24x512xf32> to vector<24x512xbf16>
    %c0_19 = arith.constant 0 : index
    %c0_20 = arith.constant 0 : index
    %47 = vector.load %arg4[%c0_19, %c0_20] : memref<512x128xbf16, #tpu.memory_space<vmem>>, vector<512x128xbf16>
    %cst_21 = arith.constant dense<0.000000e+00> : vector<24x128xf32>
    %48 = tpu.matmul %46, %47, %cst_21 {dimension_numbers = #tpu.dot_dimension_numbers<[1], [0], [0], [1], [0, 0, 1, 1], [], []>} : vector<24x512xbf16>, vector<512x128xbf16>, vector<24x128xf32> -> vector<24x128xf32>
    %c0_22 = arith.constant 0 : index
    %c0_23 = arith.constant 0 : index
    %49 = vector.load %arg5[%c0_22, %c0_23] : memref<1x128xf32, #tpu.memory_space<vmem>>, vector<1x128xf32>
    %50 = vector.broadcast %49 : vector<1x128xf32> to vector<24x128xf32>
    %51 = arith.addf %48, %50 : vector<24x128xf32>
    %52 = arith.addf %51, %0 : vector<24x128xf32>
    %cst_24 = arith.constant dense<0.000000e+00> : vector<24xf32>
    %53 = vector.multi_reduction <add>, %52, %cst_24 [1] : vector<24x128xf32> to vector<24xf32>
    %54 = vector.shape_cast %53 : vector<24xf32> to vector<24x1xf32>
    %cst_25 = arith.constant 1.280000e+02 : f32
    %55 = vector.broadcast %cst_25 : f32 to vector<24x1xf32>
    %56 = arith.divf %54, %55 : vector<24x1xf32>
    %57 = vector.broadcast %56 : vector<24x1xf32> to vector<24x128xf32>
    %58 = arith.subf %52, %57 : vector<24x128xf32>
    %59 = arith.mulf %58, %58 : vector<24x128xf32>
    %cst_26 = arith.constant dense<0.000000e+00> : vector<24xf32>
    %60 = vector.multi_reduction <add>, %59, %cst_26 [1] : vector<24x128xf32> to vector<24xf32>
    %61 = vector.shape_cast %60 : vector<24xf32> to vector<24x1xf32>
    %cst_27 = arith.constant 1.280000e+02 : f32
    %62 = vector.broadcast %cst_27 : f32 to vector<24x1xf32>
    %63 = arith.divf %61, %62 : vector<24x1xf32>
    %cst_28 = arith.constant 9.99999974E-6 : f32
    %64 = vector.broadcast %cst_28 : f32 to vector<24x1xf32>
    %65 = arith.addf %63, %64 : vector<24x1xf32>
    %66 = math.rsqrt %65 : vector<24x1xf32>
    %67 = vector.broadcast %66 : vector<24x1xf32> to vector<24x128xf32>
    %68 = arith.mulf %58, %67 : vector<24x128xf32>
    %c0_29 = arith.constant 0 : index
    %c0_30 = arith.constant 0 : index
    %69 = vector.load %arg6[%c0_29, %c0_30] : memref<1x128xf32, #tpu.memory_space<vmem>>, vector<1x128xf32>
    %70 = vector.broadcast %69 : vector<1x128xf32> to vector<24x128xf32>
    %71 = arith.mulf %68, %70 : vector<24x128xf32>
    %c0_31 = arith.constant 0 : index
    %c0_32 = arith.constant 0 : index
    %72 = vector.load %arg7[%c0_31, %c0_32] : memref<1x128xf32, #tpu.memory_space<vmem>>, vector<1x128xf32>
    %73 = vector.broadcast %72 : vector<1x128xf32> to vector<24x128xf32>
    %74 = arith.addf %71, %73 : vector<24x128xf32>
    %c0_33 = arith.constant 0 : index
    %c0_34 = arith.constant 0 : index
    %75 = vector.load %arg8[%c0_33, %c0_34] : memref<24x128xf32, #tpu.memory_space<vmem>>, vector<24x128xf32>
    tpu.vector_store %arg8[%c0_33, %c0_34], %74 {strides = array<i32>} : memref<24x128xf32, #tpu.memory_space<vmem>>, vector<24x128xf32>,
    return
  }
  func.func @transform_0(%arg0: i32) -> (i32, i32) {
    %c0_i32 = arith.constant 0 : i32
    %c0_i32_0 = arith.constant 0 : i32
    return %arg0, %c0_i32 : i32, i32
  }
  func.func @transform_1(%arg0: i32) -> (i32, i32) {
    %c0_i32 = arith.constant 0 : i32
    %c0_i32_0 = arith.constant 0 : i32
    %c0_i32_1 = arith.constant 0 : i32
    return %c0_i32, %c0_i32_0 : i32, i32
  }
  func.func @transform_2(%arg0: i32) -> (i32, i32) {
    %c0_i32 = arith.constant 0 : i32
    %c0_i32_0 = arith.constant 0 : i32
    %c0_i32_1 = arith.constant 0 : i32
    return %c0_i32, %c0_i32_0 : i32, i32
  }
  func.func @transform_3(%arg0: i32) -> (i32, i32) {
    %c0_i32 = arith.constant 0 : i32
    %c0_i32_0 = arith.constant 0 : i32
    %c0_i32_1 = arith.constant 0 : i32
    return %c0_i32, %c0_i32_0 : i32, i32
  }
  func.func @transform_4(%arg0: i32) -> (i32, i32) {
    %c0_i32 = arith.constant 0 : i32
    %c0_i32_0 = arith.constant 0 : i32
    %c0_i32_1 = arith.constant 0 : i32
    return %c0_i32, %c0_i32_0 : i32, i32
  }
  func.func @transform_5(%arg0: i32) -> (i32, i32) {
    %c0_i32 = arith.constant 0 : i32
    %c0_i32_0 = arith.constant 0 : i32
    %c0_i32_1 = arith.constant 0 : i32
    return %c0_i32, %c0_i32_0 : i32, i32
  }
  func.func @transform_6(%arg0: i32) -> (i32, i32) {
    %c0_i32 = arith.constant 0 : i32
    %c0_i32_0 = arith.constant 0 : i32
    %c0_i32_1 = arith.constant 0 : i32
    return %c0_i32, %c0_i32_0 : i32, i32
  }
  func.func @transform_7(%arg0: i32) -> (i32, i32) {
    %c0_i32 = arith.constant 0 : i32
    %c0_i32_0 = arith.constant 0 : i32
    return %arg0, %c0_i32 : i32, i32
  }
}

module attributes {stable_mosaic.version = 11 : i64} {
  func.func @_outproj_ln_kernel(%arg0: i32, %arg1: i32, %arg2: memref<24x128xf32, #tpu.memory_space<vmem>>, %arg3: memref<128x128xbf16, #tpu.memory_space<vmem>>, %arg4: memref<1x128xf32, #tpu.memory_space<vmem>>, %arg5: memref<24x128xf32, #tpu.memory_space<vmem>>, %arg6: memref<1x128xf32, #tpu.memory_space<vmem>>, %arg7: memref<1x128xf32, #tpu.memory_space<vmem>>, %arg8: memref<24x128xf32, #tpu.memory_space<vmem>>, %arg9: memref<24x128xf32, #tpu.memory_space<vmem>>) attributes {dimension_semantics = [#tpu.dimension_semantics<parallel>, #tpu.dimension_semantics<arbitrary>], iteration_bounds = array<i64: 1, 1>, scalar_prefetch = 0 : i64, scratch_operands = 1 : i64, tpu.core_type = #tpu.core_type<tc>, window_params = [{transform_indices = @transform_0, window_bounds = array<i64: 24, 128>}, {transform_indices = @transform_1, window_bounds = array<i64: 128, 128>}, {pipeline_mode = #tpu.pipeline_mode<synchronous>, transform_indices = @transform_2, window_bounds = array<i64: 1, 128>}, {transform_indices = @transform_3, window_bounds = array<i64: 24, 128>}, {pipeline_mode = #tpu.pipeline_mode<synchronous>, transform_indices = @transform_4, window_bounds = array<i64: 1, 128>}, {pipeline_mode = #tpu.pipeline_mode<synchronous>, transform_indices = @transform_5, window_bounds = array<i64: 1, 128>}, {transform_indices = @transform_6, window_bounds = array<i64: 24, 128>}]} {
    %c0_i32 = arith.constant 0 : i32
    %0 = arith.cmpi eq, %arg1, %c0_i32 : i32
    %1 = arith.extui %0 : i1 to i32
    %c0_i32_0 = arith.constant 0 : i32
    %2 = arith.cmpi ne, %1, %c0_i32_0 : i32
    scf.if %2 {
      %c0_10 = arith.constant 0 : index
      %c0_11 = arith.constant 0 : index
      %13 = vector.load %arg4[%c0_10, %c0_11] : memref<1x128xf32, #tpu.memory_space<vmem>>, vector<1x128xf32>
      %14 = vector.shape_cast %13 : vector<1x128xf32> to vector<1x128xf32>
      %15 = vector.broadcast %14 : vector<1x128xf32> to vector<24x128xf32>
      %c0_12 = arith.constant 0 : index
      %c0_13 = arith.constant 0 : index
      %16 = vector.load %arg9[%c0_12, %c0_13] : memref<24x128xf32, #tpu.memory_space<vmem>>, vector<24x128xf32>
      tpu.vector_store %arg9[%c0_12, %c0_13], %15 {strides = array<i32>} : memref<24x128xf32, #tpu.memory_space<vmem>>, vector<24x128xf32>,
    } else {
    }
    %c0 = arith.constant 0 : index
    %c0_1 = arith.constant 0 : index
    %3 = vector.load %arg9[%c0, %c0_1] : memref<24x128xf32, #tpu.memory_space<vmem>>, vector<24x128xf32>
    %c0_2 = arith.constant 0 : index
    %c0_3 = arith.constant 0 : index
    %4 = vector.load %arg2[%c0_2, %c0_3] : memref<24x128xf32, #tpu.memory_space<vmem>>, vector<24x128xf32>
    %5 = arith.truncf %4 : vector<24x128xf32> to vector<24x128xbf16>
    %c0_4 = arith.constant 0 : index
    %c0_5 = arith.constant 0 : index
    %6 = vector.load %arg3[%c0_4, %c0_5] : memref<128x128xbf16, #tpu.memory_space<vmem>>, vector<128x128xbf16>
    %cst = arith.constant dense<0.000000e+00> : vector<24x128xf32>
    %7 = tpu.matmul %5, %6, %cst {dimension_numbers = #tpu.dot_dimension_numbers<[1], [0], [0], [1], [0, 0, 1, 1], [], []>} : vector<24x128xbf16>, vector<128x128xbf16>, vector<24x128xf32> -> vector<24x128xf32>
    %8 = arith.addf %3, %7 : vector<24x128xf32>
    %c0_6 = arith.constant 0 : index
    %c0_7 = arith.constant 0 : index
    %9 = vector.load %arg9[%c0_6, %c0_7] : memref<24x128xf32, #tpu.memory_space<vmem>>, vector<24x128xf32>
    tpu.vector_store %arg9[%c0_6, %c0_7], %8 {strides = array<i32>} : memref<24x128xf32, #tpu.memory_space<vmem>>, vector<24x128xf32>,
    %c0_i32_8 = arith.constant 0 : i32
    %10 = arith.cmpi eq, %arg1, %c0_i32_8 : i32
    %11 = arith.extui %10 : i1 to i32
    %c0_i32_9 = arith.constant 0 : i32
    %12 = arith.cmpi ne, %11, %c0_i32_9 : i32
    scf.if %12 {
      %c0_10 = arith.constant 0 : index
      %c0_11 = arith.constant 0 : index
      %13 = vector.load %arg9[%c0_10, %c0_11] : memref<24x128xf32, #tpu.memory_space<vmem>>, vector<24x128xf32>
      %c0_12 = arith.constant 0 : index
      %c0_13 = arith.constant 0 : index
      %14 = vector.load %arg5[%c0_12, %c0_13] : memref<24x128xf32, #tpu.memory_space<vmem>>, vector<24x128xf32>
      %15 = arith.addf %13, %14 : vector<24x128xf32>
      %cst_14 = arith.constant dense<0.000000e+00> : vector<24xf32>
      %16 = vector.multi_reduction <add>, %15, %cst_14 [1] : vector<24x128xf32> to vector<24xf32>
      %17 = vector.shape_cast %16 : vector<24xf32> to vector<24x1xf32>
      %cst_15 = arith.constant 1.280000e+02 : f32
      %18 = vector.broadcast %cst_15 : f32 to vector<24x1xf32>
      %19 = arith.divf %17, %18 : vector<24x1xf32>
      %20 = vector.broadcast %19 : vector<24x1xf32> to vector<24x128xf32>
      %21 = arith.subf %15, %20 : vector<24x128xf32>
      %22 = arith.mulf %21, %21 : vector<24x128xf32>
      %cst_16 = arith.constant dense<0.000000e+00> : vector<24xf32>
      %23 = vector.multi_reduction <add>, %22, %cst_16 [1] : vector<24x128xf32> to vector<24xf32>
      %24 = vector.shape_cast %23 : vector<24xf32> to vector<24x1xf32>
      %cst_17 = arith.constant 1.280000e+02 : f32
      %25 = vector.broadcast %cst_17 : f32 to vector<24x1xf32>
      %26 = arith.divf %24, %25 : vector<24x1xf32>
      %cst_18 = arith.constant 9.99999974E-6 : f32
      %27 = vector.broadcast %cst_18 : f32 to vector<24x1xf32>
      %28 = arith.addf %26, %27 : vector<24x1xf32>
      %29 = math.rsqrt %28 : vector<24x1xf32>
      %30 = vector.broadcast %29 : vector<24x1xf32> to vector<24x128xf32>
      %31 = arith.mulf %21, %30 : vector<24x128xf32>
      %c0_19 = arith.constant 0 : index
      %c0_20 = arith.constant 0 : index
      %32 = vector.load %arg6[%c0_19, %c0_20] : memref<1x128xf32, #tpu.memory_space<vmem>>, vector<1x128xf32>
      %33 = vector.broadcast %32 : vector<1x128xf32> to vector<24x128xf32>
      %34 = arith.mulf %31, %33 : vector<24x128xf32>
      %c0_21 = arith.constant 0 : index
      %c0_22 = arith.constant 0 : index
      %35 = vector.load %arg7[%c0_21, %c0_22] : memref<1x128xf32, #tpu.memory_space<vmem>>, vector<1x128xf32>
      %36 = vector.broadcast %35 : vector<1x128xf32> to vector<24x128xf32>
      %37 = arith.addf %34, %36 : vector<24x128xf32>
      %c0_23 = arith.constant 0 : index
      %c0_24 = arith.constant 0 : index
      %38 = vector.load %arg8[%c0_23, %c0_24] : memref<24x128xf32, #tpu.memory_space<vmem>>, vector<24x128xf32>
      tpu.vector_store %arg8[%c0_23, %c0_24], %37 {strides = array<i32>} : memref<24x128xf32, #tpu.memory_space<vmem>>, vector<24x128xf32>,
    } else {
    }
    return
  }
  func.func @transform_0(%arg0: i32, %arg1: i32) -> (i32, i32) {
    %c0_i32 = arith.constant 0 : i32
    return %arg0, %arg1 : i32, i32
  }
  func.func @transform_1(%arg0: i32, %arg1: i32) -> (i32, i32) {
    %c0_i32 = arith.constant 0 : i32
    %c0_i32_0 = arith.constant 0 : i32
    return %arg1, %c0_i32 : i32, i32
  }
  func.func @transform_2(%arg0: i32, %arg1: i32) -> (i32, i32) {
    %c0_i32 = arith.constant 0 : i32
    %c0_i32_0 = arith.constant 0 : i32
    %c0_i32_1 = arith.constant 0 : i32
    return %c0_i32, %c0_i32_0 : i32, i32
  }
  func.func @transform_3(%arg0: i32, %arg1: i32) -> (i32, i32) {
    %c0_i32 = arith.constant 0 : i32
    %c0_i32_0 = arith.constant 0 : i32
    return %arg0, %c0_i32 : i32, i32
  }
  func.func @transform_4(%arg0: i32, %arg1: i32) -> (i32, i32) {
    %c0_i32 = arith.constant 0 : i32
    %c0_i32_0 = arith.constant 0 : i32
    %c0_i32_1 = arith.constant 0 : i32
    return %c0_i32, %c0_i32_0 : i32, i32
  }
  func.func @transform_5(%arg0: i32, %arg1: i32) -> (i32, i32) {
    %c0_i32 = arith.constant 0 : i32
    %c0_i32_0 = arith.constant 0 : i32
    %c0_i32_1 = arith.constant 0 : i32
    return %c0_i32, %c0_i32_0 : i32, i32
  }
  func.func @transform_6(%arg0: i32, %arg1: i32) -> (i32, i32) {
    %c0_i32 = arith.constant 0 : i32
    %c0_i32_0 = arith.constant 0 : i32
    return %arg0, %c0_i32 : i32, i32
  }
}

module attributes {stable_mosaic.version = 11 : i64} {
  func.func @_mha_kernel(%arg0: i32, %arg1: i32, %arg2: i32, %arg3: memref<1x16x128xf32, #tpu.memory_space<vmem>>, %arg4: memref<1x16x128xf32, #tpu.memory_space<vmem>>, %arg5: memref<1x16x128xf32, #tpu.memory_space<vmem>>, %arg6: memref<1x16x128xf32, #tpu.memory_space<vmem>>, %arg7: memref<4x16x1xf32, #tpu.memory_space<vmem>>, %arg8: memref<4x16x1xf32, #tpu.memory_space<vmem>>, %arg9: memref<16x128xf32, #tpu.memory_space<vmem>>) attributes {dimension_semantics = [#tpu.dimension_semantics<parallel>, #tpu.dimension_semantics<parallel>, #tpu.dimension_semantics<arbitrary>], iteration_bounds = array<i64: 2, 1, 1>, scalar_prefetch = 0 : i64, scratch_operands = 3 : i64, tpu.core_type = #tpu.core_type<tc>, window_params = [{transform_indices = @transform_0, window_bounds = array<i64: 1, 16, 128>}, {transform_indices = @transform_1, window_bounds = array<i64: 1, 16, 128>}, {transform_indices = @transform_2, window_bounds = array<i64: 1, 16, 128>}, {transform_indices = @transform_3, window_bounds = array<i64: 1, 16, 128>}]} {
    %c0_i32 = arith.constant 0 : i32
    %0 = arith.cmpi eq, %arg2, %c0_i32 : i32
    %1 = arith.extui %0 : i1 to i32
    %c0_i32_0 = arith.constant 0 : i32
    %2 = arith.cmpi ne, %1, %c0_i32_0 : i32
    scf.if %2 {
      %cst_119 = arith.constant 0xFF800000 : f32
      %184 = vector.broadcast %cst_119 : f32 to vector<4x16x1xf32>
      %c0_120 = arith.constant 0 : index
      %c0_121 = arith.constant 0 : index
      %c0_122 = arith.constant 0 : index
      %185 = vector.load %arg7[%c0_120, %c0_121, %c0_122] : memref<4x16x1xf32, #tpu.memory_space<vmem>>, vector<4x16x1xf32>
      tpu.vector_store %arg7[%c0_120, %c0_121, %c0_122], %184 {strides = array<i32>} : memref<4x16x1xf32, #tpu.memory_space<vmem>>, vector<4x16x1xf32>,
      %cst_123 = arith.constant 0.000000e+00 : f32
      %186 = vector.broadcast %cst_123 : f32 to vector<4x16x1xf32>
      %c0_124 = arith.constant 0 : index
      %c0_125 = arith.constant 0 : index
      %c0_126 = arith.constant 0 : index
      %187 = vector.load %arg8[%c0_124, %c0_125, %c0_126] : memref<4x16x1xf32, #tpu.memory_space<vmem>>, vector<4x16x1xf32>
      tpu.vector_store %arg8[%c0_124, %c0_125, %c0_126], %186 {strides = array<i32>} : memref<4x16x1xf32, #tpu.memory_space<vmem>>, vector<4x16x1xf32>,
      %cst_127 = arith.constant 0.000000e+00 : f32
      %188 = vector.broadcast %cst_127 : f32 to vector<16x128xf32>
      %c0_128 = arith.constant 0 : index
      %c0_129 = arith.constant 0 : index
      %189 = vector.load %arg9[%c0_128, %c0_129] : memref<16x128xf32, #tpu.memory_space<vmem>>, vector<16x128xf32>
      tpu.vector_store %arg9[%c0_128, %c0_129], %188 {strides = array<i32>} : memref<16x128xf32, #tpu.memory_space<vmem>>, vector<16x128xf32>,
    } else {
    }
    %c16_i32 = arith.constant 16 : i32
    %3 = arith.muli %arg2, %c16_i32 : i32
    %4 = tpu.iota {dimensions = array<i32: 1>} : vector<16x16xi32>
    %5 = vector.broadcast %3 : i32 to vector<16x16xi32>
    %6 = arith.addi %5, %4 : vector<16x16xi32>
    %c9_i32 = arith.constant 9 : i32
    %7 = vector.broadcast %c9_i32 : i32 to vector<16x16xi32>
    %8 = arith.cmpi slt, %6, %7 : vector<16x16xi32>
    %c0 = arith.constant 0 : index
    %c0_1 = arith.constant 0 : index
    %c0_2 = arith.constant 0 : index
    %9 = vector.load %arg3[%c0, %c0_1, %c0_2] : memref<1x16x128xf32, #tpu.memory_space<vmem>>, vector<1x16x32xf32>
    %10 = vector.shape_cast %9 : vector<1x16x32xf32> to vector<16x32xf32>
    %11 = arith.truncf %10 : vector<16x32xf32> to vector<16x32xbf16>
    %c0_3 = arith.constant 0 : index
    %c0_4 = arith.constant 0 : index
    %c0_5 = arith.constant 0 : index
    %12 = vector.load %arg4[%c0_3, %c0_4, %c0_5] : memref<1x16x128xf32, #tpu.memory_space<vmem>>, vector<1x16x32xf32>
    %13 = vector.shape_cast %12 : vector<1x16x32xf32> to vector<16x32xf32>
    %14 = arith.truncf %13 : vector<16x32xf32> to vector<16x32xbf16>
    %c0_6 = arith.constant 0 : index
    %c0_7 = arith.constant 0 : index
    %c0_8 = arith.constant 0 : index
    %15 = vector.load %arg5[%c0_6, %c0_7, %c0_8] : memref<1x16x128xf32, #tpu.memory_space<vmem>>, vector<1x16x32xf32>
    %16 = vector.shape_cast %15 : vector<1x16x32xf32> to vector<16x32xf32>
    %17 = arith.truncf %16 : vector<16x32xf32> to vector<16x32xbf16>
    %cst = arith.constant dense<0.000000e+00> : vector<16x16xf32>
    %18 = tpu.matmul %11, %14, %cst {dimension_numbers = #tpu.dot_dimension_numbers<[1], [1], [0], [0], [0, 0, 1, 0], [], []>} : vector<16x32xbf16>, vector<16x32xbf16>, vector<16x16xf32> -> vector<16x16xf32>
    %cst_9 = arith.constant 0.176776692 : f32
    %19 = vector.broadcast %cst_9 : f32 to vector<16x16xf32>
    %20 = arith.mulf %18, %19 : vector<16x16xf32>
    %cst_10 = arith.constant -1.000000e+30 : f32
    %21 = vector.broadcast %cst_10 : f32 to vector<16x16xf32>
    %22 = arith.select %8, %20, %21 : vector<16x16xi1>, vector<16x16xf32>
    %c0_11 = arith.constant 0 : index
    %c0_12 = arith.constant 0 : index
    %c0_13 = arith.constant 0 : index
    %23 = vector.load %arg7[%c0_11, %c0_12, %c0_13] : memref<4x16x1xf32, #tpu.memory_space<vmem>>, vector<1x16x1xf32>
    %24 = vector.shape_cast %23 : vector<1x16x1xf32> to vector<16x1xf32>
    %cst_14 = arith.constant dense<0xFF800000> : vector<16xf32>
    %25 = vector.multi_reduction <maximumf>, %22, %cst_14 [1] : vector<16x16xf32> to vector<16xf32>
    %26 = vector.shape_cast %25 : vector<16xf32> to vector<16x1xf32>
    %27 = arith.maximumf %24, %26 : vector<16x1xf32>
    %28 = arith.subf %24, %27 : vector<16x1xf32>
    %29 = math.exp %28 : vector<16x1xf32>
    %30 = vector.broadcast %27 : vector<16x1xf32> to vector<16x16xf32>
    %31 = arith.subf %22, %30 : vector<16x16xf32>
    %32 = math.exp %31 : vector<16x16xf32>
    %c0_15 = arith.constant 0 : index
    %c0_16 = arith.constant 0 : index
    %c0_17 = arith.constant 0 : index
    %33 = vector.load %arg8[%c0_15, %c0_16, %c0_17] : memref<4x16x1xf32, #tpu.memory_space<vmem>>, vector<1x16x1xf32>
    %34 = vector.shape_cast %33 : vector<1x16x1xf32> to vector<16x1xf32>
    %35 = arith.mulf %29, %34 : vector<16x1xf32>
    %cst_18 = arith.constant dense<0.000000e+00> : vector<16xf32>
    %36 = vector.multi_reduction <add>, %32, %cst_18 [1] : vector<16x16xf32> to vector<16xf32>
    %37 = vector.shape_cast %36 : vector<16xf32> to vector<16x1xf32>
    %38 = arith.addf %35, %37 : vector<16x1xf32>
    %c0_19 = arith.constant 0 : index
    %c0_20 = arith.constant 0 : index
    %c0_21 = arith.constant 0 : index
    %39 = vector.load %arg8[%c0_19, %c0_20, %c0_21] : memref<4x16x1xf32, #tpu.memory_space<vmem>>, vector<1x16x1xf32>
    %40 = vector.shape_cast %39 : vector<1x16x1xf32> to vector<16x1xf32>
    %41 = vector.shape_cast %38 : vector<16x1xf32> to vector<1x16x1xf32>
    tpu.vector_store %arg8[%c0_19, %c0_20, %c0_21], %41 {strides = array<i32>} : memref<4x16x1xf32, #tpu.memory_space<vmem>>, vector<1x16x1xf32>,
    %42 = arith.truncf %32 : vector<16x16xf32> to vector<16x16xbf16>
    %cst_22 = arith.constant dense<0.000000e+00> : vector<16x32xf32>
    %43 = tpu.matmul %42, %17, %cst_22 {dimension_numbers = #tpu.dot_dimension_numbers<[1], [0], [0], [1], [0, 0, 1, 1], [], []>} : vector<16x16xbf16>, vector<16x32xbf16>, vector<16x32xf32> -> vector<16x32xf32>
    %c0_23 = arith.constant 0 : index
    %c0_24 = arith.constant 0 : index
    %44 = vector.load %arg9[%c0_23, %c0_24] : memref<16x128xf32, #tpu.memory_space<vmem>>, vector<16x32xf32>
    %45 = vector.broadcast %29 : vector<16x1xf32> to vector<16x32xf32>
    %46 = arith.mulf %45, %44 : vector<16x32xf32>
    %47 = arith.addf %46, %43 : vector<16x32xf32>
    %c0_25 = arith.constant 0 : index
    %c0_26 = arith.constant 0 : index
    %48 = vector.load %arg9[%c0_25, %c0_26] : memref<16x128xf32, #tpu.memory_space<vmem>>, vector<16x32xf32>
    tpu.vector_store %arg9[%c0_25, %c0_26], %47 {strides = array<i32>} : memref<16x128xf32, #tpu.memory_space<vmem>>, vector<16x32xf32>,
    %c0_27 = arith.constant 0 : index
    %c0_28 = arith.constant 0 : index
    %c0_29 = arith.constant 0 : index
    %49 = vector.load %arg7[%c0_27, %c0_28, %c0_29] : memref<4x16x1xf32, #tpu.memory_space<vmem>>, vector<1x16x1xf32>
    %50 = vector.shape_cast %49 : vector<1x16x1xf32> to vector<16x1xf32>
    %51 = vector.shape_cast %27 : vector<16x1xf32> to vector<1x16x1xf32>
    tpu.vector_store %arg7[%c0_27, %c0_28, %c0_29], %51 {strides = array<i32>} : memref<4x16x1xf32, #tpu.memory_space<vmem>>, vector<1x16x1xf32>,
    %c0_30 = arith.constant 0 : index
    %c0_31 = arith.constant 0 : index
    %c32 = arith.constant 32 : index
    %52 = vector.load %arg3[%c0_30, %c0_31, %c32] : memref<1x16x128xf32, #tpu.memory_space<vmem>>, vector<1x16x32xf32>
    %53 = vector.shape_cast %52 : vector<1x16x32xf32> to vector<16x32xf32>
    %54 = arith.truncf %53 : vector<16x32xf32> to vector<16x32xbf16>
    %c0_32 = arith.constant 0 : index
    %c0_33 = arith.constant 0 : index
    %c32_34 = arith.constant 32 : index
    %55 = vector.load %arg4[%c0_32, %c0_33, %c32_34] : memref<1x16x128xf32, #tpu.memory_space<vmem>>, vector<1x16x32xf32>
    %56 = vector.shape_cast %55 : vector<1x16x32xf32> to vector<16x32xf32>
    %57 = arith.truncf %56 : vector<16x32xf32> to vector<16x32xbf16>
    %c0_35 = arith.constant 0 : index
    %c0_36 = arith.constant 0 : index
    %c32_37 = arith.constant 32 : index
    %58 = vector.load %arg5[%c0_35, %c0_36, %c32_37] : memref<1x16x128xf32, #tpu.memory_space<vmem>>, vector<1x16x32xf32>
    %59 = vector.shape_cast %58 : vector<1x16x32xf32> to vector<16x32xf32>
    %60 = arith.truncf %59 : vector<16x32xf32> to vector<16x32xbf16>
    %cst_38 = arith.constant dense<0.000000e+00> : vector<16x16xf32>
    %61 = tpu.matmul %54, %57, %cst_38 {dimension_numbers = #tpu.dot_dimension_numbers<[1], [1], [0], [0], [0, 0, 1, 0], [], []>} : vector<16x32xbf16>, vector<16x32xbf16>, vector<16x16xf32> -> vector<16x16xf32>
    %cst_39 = arith.constant 0.176776692 : f32
    %62 = vector.broadcast %cst_39 : f32 to vector<16x16xf32>
    %63 = arith.mulf %61, %62 : vector<16x16xf32>
    %cst_40 = arith.constant -1.000000e+30 : f32
    %64 = vector.broadcast %cst_40 : f32 to vector<16x16xf32>
    %65 = arith.select %8, %63, %64 : vector<16x16xi1>, vector<16x16xf32>
    %c1 = arith.constant 1 : index
    %c0_41 = arith.constant 0 : index
    %c0_42 = arith.constant 0 : index
    %66 = vector.load %arg7[%c1, %c0_41, %c0_42] : memref<4x16x1xf32, #tpu.memory_space<vmem>>, vector<1x16x1xf32>
    %67 = vector.shape_cast %66 : vector<1x16x1xf32> to vector<16x1xf32>
    %cst_43 = arith.constant dense<0xFF800000> : vector<16xf32>
    %68 = vector.multi_reduction <maximumf>, %65, %cst_43 [1] : vector<16x16xf32> to vector<16xf32>
    %69 = vector.shape_cast %68 : vector<16xf32> to vector<16x1xf32>
    %70 = arith.maximumf %67, %69 : vector<16x1xf32>
    %71 = arith.subf %67, %70 : vector<16x1xf32>
    %72 = math.exp %71 : vector<16x1xf32>
    %73 = vector.broadcast %70 : vector<16x1xf32> to vector<16x16xf32>
    %74 = arith.subf %65, %73 : vector<16x16xf32>
    %75 = math.exp %74 : vector<16x16xf32>
    %c1_44 = arith.constant 1 : index
    %c0_45 = arith.constant 0 : index
    %c0_46 = arith.constant 0 : index
    %76 = vector.load %arg8[%c1_44, %c0_45, %c0_46] : memref<4x16x1xf32, #tpu.memory_space<vmem>>, vector<1x16x1xf32>
    %77 = vector.shape_cast %76 : vector<1x16x1xf32> to vector<16x1xf32>
    %78 = arith.mulf %72, %77 : vector<16x1xf32>
    %cst_47 = arith.constant dense<0.000000e+00> : vector<16xf32>
    %79 = vector.multi_reduction <add>, %75, %cst_47 [1] : vector<16x16xf32> to vector<16xf32>
    %80 = vector.shape_cast %79 : vector<16xf32> to vector<16x1xf32>
    %81 = arith.addf %78, %80 : vector<16x1xf32>
    %c1_48 = arith.constant 1 : index
    %c0_49 = arith.constant 0 : index
    %c0_50 = arith.constant 0 : index
    %82 = vector.load %arg8[%c1_48, %c0_49, %c0_50] : memref<4x16x1xf32, #tpu.memory_space<vmem>>, vector<1x16x1xf32>
    %83 = vector.shape_cast %82 : vector<1x16x1xf32> to vector<16x1xf32>
    %84 = vector.shape_cast %81 : vector<16x1xf32> to vector<1x16x1xf32>
    tpu.vector_store %arg8[%c1_48, %c0_49, %c0_50], %84 {strides = array<i32>} : memref<4x16x1xf32, #tpu.memory_space<vmem>>, vector<1x16x1xf32>,
    %85 = arith.truncf %75 : vector<16x16xf32> to vector<16x16xbf16>
    %cst_51 = arith.constant dense<0.000000e+00> : vector<16x32xf32>
    %86 = tpu.matmul %85, %60, %cst_51 {dimension_numbers = #tpu.dot_dimension_numbers<[1], [0], [0], [1], [0, 0, 1, 1], [], []>} : vector<16x16xbf16>, vector<16x32xbf16>, vector<16x32xf32> -> vector<16x32xf32>
    %c0_52 = arith.constant 0 : index
    %c32_53 = arith.constant 32 : index
    %87 = vector.load %arg9[%c0_52, %c32_53] : memref<16x128xf32, #tpu.memory_space<vmem>>, vector<16x32xf32>
    %88 = vector.broadcast %72 : vector<16x1xf32> to vector<16x32xf32>
    %89 = arith.mulf %88, %87 : vector<16x32xf32>
    %90 = arith.addf %89, %86 : vector<16x32xf32>
    %c0_54 = arith.constant 0 : index
    %c32_55 = arith.constant 32 : index
    %91 = vector.load %arg9[%c0_54, %c32_55] : memref<16x128xf32, #tpu.memory_space<vmem>>, vector<16x32xf32>
    tpu.vector_store %arg9[%c0_54, %c32_55], %90 {strides = array<i32>} : memref<16x128xf32, #tpu.memory_space<vmem>>, vector<16x32xf32>,
    %c1_56 = arith.constant 1 : index
    %c0_57 = arith.constant 0 : index
    %c0_58 = arith.constant 0 : index
    %92 = vector.load %arg7[%c1_56, %c0_57, %c0_58] : memref<4x16x1xf32, #tpu.memory_space<vmem>>, vector<1x16x1xf32>
    %93 = vector.shape_cast %92 : vector<1x16x1xf32> to vector<16x1xf32>
    %94 = vector.shape_cast %70 : vector<16x1xf32> to vector<1x16x1xf32>
    tpu.vector_store %arg7[%c1_56, %c0_57, %c0_58], %94 {strides = array<i32>} : memref<4x16x1xf32, #tpu.memory_space<vmem>>, vector<1x16x1xf32>,
    %c0_59 = arith.constant 0 : index
    %c0_60 = arith.constant 0 : index
    %c64 = arith.constant 64 : index
    %95 = vector.load %arg3[%c0_59, %c0_60, %c64] : memref<1x16x128xf32, #tpu.memory_space<vmem>>, vector<1x16x32xf32>
    %96 = vector.shape_cast %95 : vector<1x16x32xf32> to vector<16x32xf32>
    %97 = arith.truncf %96 : vector<16x32xf32> to vector<16x32xbf16>
    %c0_61 = arith.constant 0 : index
    %c0_62 = arith.constant 0 : index
    %c64_63 = arith.constant 64 : index
    %98 = vector.load %arg4[%c0_61, %c0_62, %c64_63] : memref<1x16x128xf32, #tpu.memory_space<vmem>>, vector<1x16x32xf32>
    %99 = vector.shape_cast %98 : vector<1x16x32xf32> to vector<16x32xf32>
    %100 = arith.truncf %99 : vector<16x32xf32> to vector<16x32xbf16>
    %c0_64 = arith.constant 0 : index
    %c0_65 = arith.constant 0 : index
    %c64_66 = arith.constant 64 : index
    %101 = vector.load %arg5[%c0_64, %c0_65, %c64_66] : memref<1x16x128xf32, #tpu.memory_space<vmem>>, vector<1x16x32xf32>
    %102 = vector.shape_cast %101 : vector<1x16x32xf32> to vector<16x32xf32>
    %103 = arith.truncf %102 : vector<16x32xf32> to vector<16x32xbf16>
    %cst_67 = arith.constant dense<0.000000e+00> : vector<16x16xf32>
    %104 = tpu.matmul %97, %100, %cst_67 {dimension_numbers = #tpu.dot_dimension_numbers<[1], [1], [0], [0], [0, 0, 1, 0], [], []>} : vector<16x32xbf16>, vector<16x32xbf16>, vector<16x16xf32> -> vector<16x16xf32>
    %cst_68 = arith.constant 0.176776692 : f32
    %105 = vector.broadcast %cst_68 : f32 to vector<16x16xf32>
    %106 = arith.mulf %104, %105 : vector<16x16xf32>
    %cst_69 = arith.constant -1.000000e+30 : f32
    %107 = vector.broadcast %cst_69 : f32 to vector<16x16xf32>
    %108 = arith.select %8, %106, %107 : vector<16x16xi1>, vector<16x16xf32>
    %c2 = arith.constant 2 : index
    %c0_70 = arith.constant 0 : index
    %c0_71 = arith.constant 0 : index
    %109 = vector.load %arg7[%c2, %c0_70, %c0_71] : memref<4x16x1xf32, #tpu.memory_space<vmem>>, vector<1x16x1xf32>
    %110 = vector.shape_cast %109 : vector<1x16x1xf32> to vector<16x1xf32>
    %cst_72 = arith.constant dense<0xFF800000> : vector<16xf32>
    %111 = vector.multi_reduction <maximumf>, %108, %cst_72 [1] : vector<16x16xf32> to vector<16xf32>
    %112 = vector.shape_cast %111 : vector<16xf32> to vector<16x1xf32>
    %113 = arith.maximumf %110, %112 : vector<16x1xf32>
    %114 = arith.subf %110, %113 : vector<16x1xf32>
    %115 = math.exp %114 : vector<16x1xf32>
    %116 = vector.broadcast %113 : vector<16x1xf32> to vector<16x16xf32>
    %117 = arith.subf %108, %116 : vector<16x16xf32>
    %118 = math.exp %117 : vector<16x16xf32>
    %c2_73 = arith.constant 2 : index
    %c0_74 = arith.constant 0 : index
    %c0_75 = arith.constant 0 : index
    %119 = vector.load %arg8[%c2_73, %c0_74, %c0_75] : memref<4x16x1xf32, #tpu.memory_space<vmem>>, vector<1x16x1xf32>
    %120 = vector.shape_cast %119 : vector<1x16x1xf32> to vector<16x1xf32>
    %121 = arith.mulf %115, %120 : vector<16x1xf32>
    %cst_76 = arith.constant dense<0.000000e+00> : vector<16xf32>
    %122 = vector.multi_reduction <add>, %118, %cst_76 [1] : vector<16x16xf32> to vector<16xf32>
    %123 = vector.shape_cast %122 : vector<16xf32> to vector<16x1xf32>
    %124 = arith.addf %121, %123 : vector<16x1xf32>
    %c2_77 = arith.constant 2 : index
    %c0_78 = arith.constant 0 : index
    %c0_79 = arith.constant 0 : index
    %125 = vector.load %arg8[%c2_77, %c0_78, %c0_79] : memref<4x16x1xf32, #tpu.memory_space<vmem>>, vector<1x16x1xf32>
    %126 = vector.shape_cast %125 : vector<1x16x1xf32> to vector<16x1xf32>
    %127 = vector.shape_cast %124 : vector<16x1xf32> to vector<1x16x1xf32>
    tpu.vector_store %arg8[%c2_77, %c0_78, %c0_79], %127 {strides = array<i32>} : memref<4x16x1xf32, #tpu.memory_space<vmem>>, vector<1x16x1xf32>,
    %128 = arith.truncf %118 : vector<16x16xf32> to vector<16x16xbf16>
    %cst_80 = arith.constant dense<0.000000e+00> : vector<16x32xf32>
    %129 = tpu.matmul %128, %103, %cst_80 {dimension_numbers = #tpu.dot_dimension_numbers<[1], [0], [0], [1], [0, 0, 1, 1], [], []>} : vector<16x16xbf16>, vector<16x32xbf16>, vector<16x32xf32> -> vector<16x32xf32>
    %c0_81 = arith.constant 0 : index
    %c64_82 = arith.constant 64 : index
    %130 = vector.load %arg9[%c0_81, %c64_82] : memref<16x128xf32, #tpu.memory_space<vmem>>, vector<16x32xf32>
    %131 = vector.broadcast %115 : vector<16x1xf32> to vector<16x32xf32>
    %132 = arith.mulf %131, %130 : vector<16x32xf32>
    %133 = arith.addf %132, %129 : vector<16x32xf32>
    %c0_83 = arith.constant 0 : index
    %c64_84 = arith.constant 64 : index
    %134 = vector.load %arg9[%c0_83, %c64_84] : memref<16x128xf32, #tpu.memory_space<vmem>>, vector<16x32xf32>
    tpu.vector_store %arg9[%c0_83, %c64_84], %133 {strides = array<i32>} : memref<16x128xf32, #tpu.memory_space<vmem>>, vector<16x32xf32>,
    %c2_85 = arith.constant 2 : index
    %c0_86 = arith.constant 0 : index
    %c0_87 = arith.constant 0 : index
    %135 = vector.load %arg7[%c2_85, %c0_86, %c0_87] : memref<4x16x1xf32, #tpu.memory_space<vmem>>, vector<1x16x1xf32>
    %136 = vector.shape_cast %135 : vector<1x16x1xf32> to vector<16x1xf32>
    %137 = vector.shape_cast %113 : vector<16x1xf32> to vector<1x16x1xf32>
    tpu.vector_store %arg7[%c2_85, %c0_86, %c0_87], %137 {strides = array<i32>} : memref<4x16x1xf32, #tpu.memory_space<vmem>>, vector<1x16x1xf32>,
    %c0_88 = arith.constant 0 : index
    %c0_89 = arith.constant 0 : index
    %c96 = arith.constant 96 : index
    %138 = vector.load %arg3[%c0_88, %c0_89, %c96] : memref<1x16x128xf32, #tpu.memory_space<vmem>>, vector<1x16x32xf32>
    %139 = vector.shape_cast %138 : vector<1x16x32xf32> to vector<16x32xf32>
    %140 = arith.truncf %139 : vector<16x32xf32> to vector<16x32xbf16>
    %c0_90 = arith.constant 0 : index
    %c0_91 = arith.constant 0 : index
    %c96_92 = arith.constant 96 : index
    %141 = vector.load %arg4[%c0_90, %c0_91, %c96_92] : memref<1x16x128xf32, #tpu.memory_space<vmem>>, vector<1x16x32xf32>
    %142 = vector.shape_cast %141 : vector<1x16x32xf32> to vector<16x32xf32>
    %143 = arith.truncf %142 : vector<16x32xf32> to vector<16x32xbf16>
    %c0_93 = arith.constant 0 : index
    %c0_94 = arith.constant 0 : index
    %c96_95 = arith.constant 96 : index
    %144 = vector.load %arg5[%c0_93, %c0_94, %c96_95] : memref<1x16x128xf32, #tpu.memory_space<vmem>>, vector<1x16x32xf32>
    %145 = vector.shape_cast %144 : vector<1x16x32xf32> to vector<16x32xf32>
    %146 = arith.truncf %145 : vector<16x32xf32> to vector<16x32xbf16>
    %cst_96 = arith.constant dense<0.000000e+00> : vector<16x16xf32>
    %147 = tpu.matmul %140, %143, %cst_96 {dimension_numbers = #tpu.dot_dimension_numbers<[1], [1], [0], [0], [0, 0, 1, 0], [], []>} : vector<16x32xbf16>, vector<16x32xbf16>, vector<16x16xf32> -> vector<16x16xf32>
    %cst_97 = arith.constant 0.176776692 : f32
    %148 = vector.broadcast %cst_97 : f32 to vector<16x16xf32>
    %149 = arith.mulf %147, %148 : vector<16x16xf32>
    %cst_98 = arith.constant -1.000000e+30 : f32
    %150 = vector.broadcast %cst_98 : f32 to vector<16x16xf32>
    %151 = arith.select %8, %149, %150 : vector<16x16xi1>, vector<16x16xf32>
    %c3 = arith.constant 3 : index
    %c0_99 = arith.constant 0 : index
    %c0_100 = arith.constant 0 : index
    %152 = vector.load %arg7[%c3, %c0_99, %c0_100] : memref<4x16x1xf32, #tpu.memory_space<vmem>>, vector<1x16x1xf32>
    %153 = vector.shape_cast %152 : vector<1x16x1xf32> to vector<16x1xf32>
    %cst_101 = arith.constant dense<0xFF800000> : vector<16xf32>
    %154 = vector.multi_reduction <maximumf>, %151, %cst_101 [1] : vector<16x16xf32> to vector<16xf32>
    %155 = vector.shape_cast %154 : vector<16xf32> to vector<16x1xf32>
    %156 = arith.maximumf %153, %155 : vector<16x1xf32>
    %157 = arith.subf %153, %156 : vector<16x1xf32>
    %158 = math.exp %157 : vector<16x1xf32>
    %159 = vector.broadcast %156 : vector<16x1xf32> to vector<16x16xf32>
    %160 = arith.subf %151, %159 : vector<16x16xf32>
    %161 = math.exp %160 : vector<16x16xf32>
    %c3_102 = arith.constant 3 : index
    %c0_103 = arith.constant 0 : index
    %c0_104 = arith.constant 0 : index
    %162 = vector.load %arg8[%c3_102, %c0_103, %c0_104] : memref<4x16x1xf32, #tpu.memory_space<vmem>>, vector<1x16x1xf32>
    %163 = vector.shape_cast %162 : vector<1x16x1xf32> to vector<16x1xf32>
    %164 = arith.mulf %158, %163 : vector<16x1xf32>
    %cst_105 = arith.constant dense<0.000000e+00> : vector<16xf32>
    %165 = vector.multi_reduction <add>, %161, %cst_105 [1] : vector<16x16xf32> to vector<16xf32>
    %166 = vector.shape_cast %165 : vector<16xf32> to vector<16x1xf32>
    %167 = arith.addf %164, %166 : vector<16x1xf32>
    %c3_106 = arith.constant 3 : index
    %c0_107 = arith.constant 0 : index
    %c0_108 = arith.constant 0 : index
    %168 = vector.load %arg8[%c3_106, %c0_107, %c0_108] : memref<4x16x1xf32, #tpu.memory_space<vmem>>, vector<1x16x1xf32>
    %169 = vector.shape_cast %168 : vector<1x16x1xf32> to vector<16x1xf32>
    %170 = vector.shape_cast %167 : vector<16x1xf32> to vector<1x16x1xf32>
    tpu.vector_store %arg8[%c3_106, %c0_107, %c0_108], %170 {strides = array<i32>} : memref<4x16x1xf32, #tpu.memory_space<vmem>>, vector<1x16x1xf32>,
    %171 = arith.truncf %161 : vector<16x16xf32> to vector<16x16xbf16>
    %cst_109 = arith.constant dense<0.000000e+00> : vector<16x32xf32>
    %172 = tpu.matmul %171, %146, %cst_109 {dimension_numbers = #tpu.dot_dimension_numbers<[1], [0], [0], [1], [0, 0, 1, 1], [], []>} : vector<16x16xbf16>, vector<16x32xbf16>, vector<16x32xf32> -> vector<16x32xf32>
    %c0_110 = arith.constant 0 : index
    %c96_111 = arith.constant 96 : index
    %173 = vector.load %arg9[%c0_110, %c96_111] : memref<16x128xf32, #tpu.memory_space<vmem>>, vector<16x32xf32>
    %174 = vector.broadcast %158 : vector<16x1xf32> to vector<16x32xf32>
    %175 = arith.mulf %174, %173 : vector<16x32xf32>
    %176 = arith.addf %175, %172 : vector<16x32xf32>
    %c0_112 = arith.constant 0 : index
    %c96_113 = arith.constant 96 : index
    %177 = vector.load %arg9[%c0_112, %c96_113] : memref<16x128xf32, #tpu.memory_space<vmem>>, vector<16x32xf32>
    tpu.vector_store %arg9[%c0_112, %c96_113], %176 {strides = array<i32>} : memref<16x128xf32, #tpu.memory_space<vmem>>, vector<16x32xf32>,
    %c3_114 = arith.constant 3 : index
    %c0_115 = arith.constant 0 : index
    %c0_116 = arith.constant 0 : index
    %178 = vector.load %arg7[%c3_114, %c0_115, %c0_116] : memref<4x16x1xf32, #tpu.memory_space<vmem>>, vector<1x16x1xf32>
    %179 = vector.shape_cast %178 : vector<1x16x1xf32> to vector<16x1xf32>
    %180 = vector.shape_cast %156 : vector<16x1xf32> to vector<1x16x1xf32>
    tpu.vector_store %arg7[%c3_114, %c0_115, %c0_116], %180 {strides = array<i32>} : memref<4x16x1xf32, #tpu.memory_space<vmem>>, vector<1x16x1xf32>,
    %c0_i32_117 = arith.constant 0 : i32
    %181 = arith.cmpi eq, %arg2, %c0_i32_117 : i32
    %182 = arith.extui %181 : i1 to i32
    %c0_i32_118 = arith.constant 0 : i32
    %183 = arith.cmpi ne, %182, %c0_i32_118 : i32
    scf.if %183 {
      %c0_119 = arith.constant 0 : index
      %c0_120 = arith.constant 0 : index
      %c0_121 = arith.constant 0 : index
      %184 = vector.load %arg8[%c0_119, %c0_120, %c0_121] : memref<4x16x1xf32, #tpu.memory_space<vmem>>, vector<1x16x1xf32>
      %185 = vector.shape_cast %184 : vector<1x16x1xf32> to vector<16x1xf32>
      %186 = tpu.reciprocal %185 {approx = true} : vector<16x1xf32> -> vector<16x1xf32>
      %c0_122 = arith.constant 0 : index
      %c0_123 = arith.constant 0 : index
      %187 = vector.load %arg9[%c0_122, %c0_123] : memref<16x128xf32, #tpu.memory_space<vmem>>, vector<16x32xf32>
      %188 = vector.broadcast %186 : vector<16x1xf32> to vector<16x32xf32>
      %189 = arith.mulf %187, %188 : vector<16x32xf32>
      %c0_124 = arith.constant 0 : index
      %c0_125 = arith.constant 0 : index
      %c0_126 = arith.constant 0 : index
      %190 = vector.load %arg6[%c0_124, %c0_125, %c0_126] : memref<1x16x128xf32, #tpu.memory_space<vmem>>, vector<1x16x32xf32>
      %191 = vector.shape_cast %190 : vector<1x16x32xf32> to vector<16x32xf32>
      %192 = vector.shape_cast %189 : vector<16x32xf32> to vector<1x16x32xf32>
      tpu.vector_store %arg6[%c0_124, %c0_125, %c0_126], %192 {strides = array<i32>} : memref<1x16x128xf32, #tpu.memory_space<vmem>>, vector<1x16x32xf32>,
      %c1_127 = arith.constant 1 : index
      %c0_128 = arith.constant 0 : index
      %c0_129 = arith.constant 0 : index
      %193 = vector.load %arg8[%c1_127, %c0_128, %c0_129] : memref<4x16x1xf32, #tpu.memory_space<vmem>>, vector<1x16x1xf32>
      %194 = vector.shape_cast %193 : vector<1x16x1xf32> to vector<16x1xf32>
      %195 = tpu.reciprocal %194 {approx = true} : vector<16x1xf32> -> vector<16x1xf32>
      %c0_130 = arith.constant 0 : index
      %c32_131 = arith.constant 32 : index
      %196 = vector.load %arg9[%c0_130, %c32_131] : memref<16x128xf32, #tpu.memory_space<vmem>>, vector<16x32xf32>
      %197 = vector.broadcast %195 : vector<16x1xf32> to vector<16x32xf32>
      %198 = arith.mulf %196, %197 : vector<16x32xf32>
      %c0_132 = arith.constant 0 : index
      %c0_133 = arith.constant 0 : index
      %c32_134 = arith.constant 32 : index
      %199 = vector.load %arg6[%c0_132, %c0_133, %c32_134] : memref<1x16x128xf32, #tpu.memory_space<vmem>>, vector<1x16x32xf32>
      %200 = vector.shape_cast %199 : vector<1x16x32xf32> to vector<16x32xf32>
      %201 = vector.shape_cast %198 : vector<16x32xf32> to vector<1x16x32xf32>
      tpu.vector_store %arg6[%c0_132, %c0_133, %c32_134], %201 {strides = array<i32>} : memref<1x16x128xf32, #tpu.memory_space<vmem>>, vector<1x16x32xf32>,
      %c2_135 = arith.constant 2 : index
      %c0_136 = arith.constant 0 : index
      %c0_137 = arith.constant 0 : index
      %202 = vector.load %arg8[%c2_135, %c0_136, %c0_137] : memref<4x16x1xf32, #tpu.memory_space<vmem>>, vector<1x16x1xf32>
      %203 = vector.shape_cast %202 : vector<1x16x1xf32> to vector<16x1xf32>
      %204 = tpu.reciprocal %203 {approx = true} : vector<16x1xf32> -> vector<16x1xf32>
      %c0_138 = arith.constant 0 : index
      %c64_139 = arith.constant 64 : index
      %205 = vector.load %arg9[%c0_138, %c64_139] : memref<16x128xf32, #tpu.memory_space<vmem>>, vector<16x32xf32>
      %206 = vector.broadcast %204 : vector<16x1xf32> to vector<16x32xf32>
      %207 = arith.mulf %205, %206 : vector<16x32xf32>
      %c0_140 = arith.constant 0 : index
      %c0_141 = arith.constant 0 : index
      %c64_142 = arith.constant 64 : index
      %208 = vector.load %arg6[%c0_140, %c0_141, %c64_142] : memref<1x16x128xf32, #tpu.memory_space<vmem>>, vector<1x16x32xf32>
      %209 = vector.shape_cast %208 : vector<1x16x32xf32> to vector<16x32xf32>
      %210 = vector.shape_cast %207 : vector<16x32xf32> to vector<1x16x32xf32>
      tpu.vector_store %arg6[%c0_140, %c0_141, %c64_142], %210 {strides = array<i32>} : memref<1x16x128xf32, #tpu.memory_space<vmem>>, vector<1x16x32xf32>,
      %c3_143 = arith.constant 3 : index
      %c0_144 = arith.constant 0 : index
      %c0_145 = arith.constant 0 : index
      %211 = vector.load %arg8[%c3_143, %c0_144, %c0_145] : memref<4x16x1xf32, #tpu.memory_space<vmem>>, vector<1x16x1xf32>
      %212 = vector.shape_cast %211 : vector<1x16x1xf32> to vector<16x1xf32>
      %213 = tpu.reciprocal %212 {approx = true} : vector<16x1xf32> -> vector<16x1xf32>
      %c0_146 = arith.constant 0 : index
      %c96_147 = arith.constant 96 : index
      %214 = vector.load %arg9[%c0_146, %c96_147] : memref<16x128xf32, #tpu.memory_space<vmem>>, vector<16x32xf32>
      %215 = vector.broadcast %213 : vector<16x1xf32> to vector<16x32xf32>
      %216 = arith.mulf %214, %215 : vector<16x32xf32>
      %c0_148 = arith.constant 0 : index
      %c0_149 = arith.constant 0 : index
      %c96_150 = arith.constant 96 : index
      %217 = vector.load %arg6[%c0_148, %c0_149, %c96_150] : memref<1x16x128xf32, #tpu.memory_space<vmem>>, vector<1x16x32xf32>
      %218 = vector.shape_cast %217 : vector<1x16x32xf32> to vector<16x32xf32>
      %219 = vector.shape_cast %216 : vector<16x32xf32> to vector<1x16x32xf32>
      tpu.vector_store %arg6[%c0_148, %c0_149, %c96_150], %219 {strides = array<i32>} : memref<1x16x128xf32, #tpu.memory_space<vmem>>, vector<1x16x32xf32>,
    } else {
    }
    return
  }
  func.func @transform_0(%arg0: i32, %arg1: i32, %arg2: i32) -> (i32, i32, i32) {
    %c0_i32 = arith.constant 0 : i32
    %c0_i32_0 = arith.constant 0 : i32
    return %arg0, %arg1, %c0_i32 : i32, i32, i32
  }
  func.func @transform_1(%arg0: i32, %arg1: i32, %arg2: i32) -> (i32, i32, i32) {
    %c1_i32 = arith.constant 1 : i32
    %c0_i32 = arith.constant 0 : i32
    return %arg0, %arg2, %c1_i32 : i32, i32, i32
  }
  func.func @transform_2(%arg0: i32, %arg1: i32, %arg2: i32) -> (i32, i32, i32) {
    %c2_i32 = arith.constant 2 : i32
    %c0_i32 = arith.constant 0 : i32
    return %arg0, %arg2, %c2_i32 : i32, i32, i32
  }
  func.func @transform_3(%arg0: i32, %arg1: i32, %arg2: i32) -> (i32, i32, i32) {
    %c0_i32 = arith.constant 0 : i32
    %c0_i32_0 = arith.constant 0 : i32
    return %arg0, %arg1, %c0_i32 : i32, i32, i32
  }
}

</mosaic_0001>

<bundles_post_ra>
// kernel: transformer_block_forward.4
= control target key start
LH: loop header
LB: loop body
LE: loop exit
PB: predicated region body
PF: predicated region fallthrough
CT: control target
= control target key end

     0   :  { %v428_v1 = vmov 0   ;;  %s554_s1 = inlined_call_operand.vmem [shape: bf16[128,384], index: 1, kind: input, shape index: {}]   ;;  %s555_s0 = inlined_call_operand.vmem [shape: f32[24,128], index: 0, kind: input, shape index: {}]   ;;  %s556_s2 = inlined_call_operand.vmem [shape: f32[24,384], index: 2, kind: output, shape index: {}]  }
   0x1   :  { %v396_v0 = vld [vmem:[%s554_s1 + $0x4] ss:$12 sps:$4 sm:$0xff]   ;;  %231 = vmatprep.mubr.bf16.mxu0 %v428_v1  ;;  %v398_v2 = vld [vmem:[%s554_s1] ss:$12 sps:$4 sm:$0xff]   ;;  %v399_v3 = vld [vmem:[%s554_s1 + $0x1c] ss:$12 sps:$4 sm:$0xff]  }
   0x2   :  { %199 = vmatprep.subr.bf16.mxu0 %v396_v0  ;;  %v401_v4 = vld [vmem:[%s554_s1 + $0x8] ss:$12 sps:$4 sm:$0xff]   ;;  %v402_v5 = vld [vmem:[%s554_s1 + $0x18] ss:$12 sps:$4 sm:$0xff]   ;;  %v405_v7 = vld [vmem:[%s554_s1 + $0x20] ss:$12 sps:$4 sm:$0xff]  }
   0x3   :  { %200 = vmatpush1.bf16.msra.mxu0 %v398_v2  ;;  %v403_v6 = vld [vmem:[%s554_s1 + $0x34] ss:$12 sps:$4 sm:$0xff]   ;;  %375 = vmatprep.subr.bf16.mxu1 %v401_v4  ;;  %v406_v8 = vld [vmem:[%s554_s1 + $0x30] ss:$12 sps:$4 sm:$0xff]   ;;  %v409_v9 = vld [vmem:[%s554_s1 + $0x38] ss:$12 sps:$4 sm:$0xff]  }
   0x4   :  { %201 = vmatprep.subr.bf16.mxu0 %v399_v3  ;;  %376 = vmatpush3.bf16.msra.mxu1 %v401_v4  ;;  %v407_v10 = vld [vmem:[%s554_s1 + $0x4c] ss:$12 sps:$4 sm:$0xff]   ;;  %v410_v11 = vld [vmem:[%s554_s1 + $0x48] ss:$12 sps:$4 sm:$0xff]   ;;  %v413_v12 = vld [vmem:[%s554_s1 + $0x50] ss:$12 sps:$4 sm:$0xff]  }
   0x5   :  { %377 = vmatprep.subr.bf16.mxu1 %v405_v7  ;;  %v411_v13 = vld [vmem:[%s554_s1 + $0x64] ss:$12 sps:$4 sm:$0xff]   ;;  %v414_v14 = vld [vmem:[%s554_s1 + $0x60] ss:$12 sps:$4 sm:$0xff]   ;;  %v417_v15 = vld [vmem:[%s554_s1 + $0x68] ss:$12 sps:$4 sm:$0xff]  }
   0x6   :  { %v415_v16 = vld [vmem:[%s554_s1 + $0x7c] ss:$12 sps:$4 sm:$0xff]   ;;  %v34_v17 = vld [vmem:[%s555_s0] sm:$0xff]  ;;  %v423_v25 = vld [vmem:[%s554_s1 + $0xac] ss:$12 sps:$4 sm:$0xff]  }
   0x7   :  { %202 = vmatpush1.bf16.msra.mxu0 %v402_v5  ;;  %v35_v18 = vld [vmem:[%s555_s0 + $0x8] sm:$0xff]  ;;  %v418_v19 = vld [vmem:[%s554_s1 + $0x78] ss:$12 sps:$4 sm:$0xff]   ;;  %v419_v22 = vld [vmem:[%s554_s1 + $0x94] ss:$12 sps:$4 sm:$0xff]  }
   0x8   :  { %203 = vmatprep.subr.bf16.mxu0 %v403_v6  ;;  %378 = vmatpush3.bf16.msra.mxu1 %v405_v7  ;;  %v421_v20 = vld [vmem:[%s554_s1 + $0x80] ss:$12 sps:$4 sm:$0xff]   ;;  %v37_v21 = vpack.c.bf16 %v35_v18, %v34_v17  ;;  %v422_v23 = vld [vmem:[%s554_s1 + $0x90] ss:$12 sps:$4 sm:$0xff]   ;;  %v425_v24 = vld [vmem:[%s554_s1 + $0x98] ss:$12 sps:$4 sm:$0xff]  }
   0x9   :  { %379 = vmatprep.subr.bf16.mxu1 %v409_v9  ;;  %v426_v26 = vld [vmem:[%s554_s1 + $0xa8] ss:$12 sps:$4 sm:$0xff]   ;;  %v427_v27 = vld [vmem:[%s554_s1 + $0xb0] ss:$12 sps:$4 sm:$0xff]  }
   0xa   :  { %391 = vmatprep.mubr.bf16.mxu1 %v37_v21  ;;  %v36_v28 = vld [vmem:[%s555_s0 + $0x10] sm:$0xff] }
   0xb   :  { %204 = vmatpush1.bf16.msra.mxu0 %v406_v8  ;;  %v38_v29 = vpack.c.bf16 %v36_v28, %v36_v28 }
   0xc   :  { %205 = vmatprep.subr.bf16.mxu0 %v407_v10  ;;  %380 = vmatpush3.bf16.msra.mxu1 %v409_v9 }
   0xd   :  { %381 = vmatprep.subr.bf16.mxu1 %v413_v12 }
   0xf   :  { %206 = vmatpush1.bf16.msra.mxu0 %v410_v11 }
  0x10   :  { %207 = vmatprep.subr.bf16.mxu0 %v411_v13  ;;  %382 = vmatpush3.bf16.msra.mxu1 %v413_v12 }
  0x11   :  { %383 = vmatprep.subr.bf16.mxu1 %v417_v15 }
  0x13   :  { %208 = vmatpush1.bf16.msra.mxu0 %v414_v14 }
  0x14   :  { %209 = vmatprep.subr.bf16.mxu0 %v415_v16  ;;  %384 = vmatpush3.bf16.msra.mxu1 %v417_v15 }
  0x15   :  { %385 = vmatprep.subr.bf16.mxu1 %v421_v20 }
  0x17   :  { %210 = vmatpush1.bf16.msra.mxu0 %v418_v19 }
  0x18   :  { %211 = vmatprep.subr.bf16.mxu0 %v419_v22  ;;  %386 = vmatpush3.bf16.msra.mxu1 %v421_v20 }
  0x19   :  { %387 = vmatprep.subr.bf16.mxu1 %v425_v24 }
  0x1b   :  { %212 = vmatpush1.bf16.msra.mxu0 %v422_v23 }
  0x1c   :  { %213 = vmatprep.subr.bf16.mxu0 %v423_v25  ;;  %388 = vmatpush3.bf16.msra.mxu1 %v425_v24 }
  0x1d   :  { %389 = vmatprep.subr.bf16.mxu1 %v427_v27 }
  0x1f   :  { %214 = vmatpush1.bf16.msra.mxu0 %v426_v26 }
  0x20   :  { %390 = vmatpush3.bf16.msra.mxu1 %v427_v27 }
  0x22   :  { %232 = vmatmul.mubr.bf16.vlgmr.msra.gmra.mrb[0].mxu0 %v37_v21 }
  0x23   :  { %241 = vmatprep.mubr.bf16.mxu0 %v428_v1  ;;  %392 = vmatmul.mubr.bf16.vlgmr.msra.gmra.mrb[0].mxu1 %v38_v29 }
  0x2a   :  { %242 = vmatmul.mubr.bf16.gmra.mrb[4].mxu0 %v38_v29 }
  0xf5   :  { %v233_v30 = vpop.f32.mrb[0].mxu0 }
  0xf6   :  { %328 = vst [vmem:[%s556_s2] sm:$0xff] %v233_v30  ;;  %v235_v31 = vpop.f32.mrb[1].mxu0  ;;  %v393_v34 = vpop.f32.mrb[0].mxu1 }
  0xf7   :  { %329 = vst [vmem:[%s556_s2 + $0x8] sm:$0xff] %v235_v31  ;;  %v237_v32 = vpop.f32.mrb[2].mxu0  ;;  %336 = vst [vmem:[%s556_s2 + $0x40] sm:$0xff] %v393_v34  ;;  %v284_v35 = vpop.f32.mrb[1].mxu1 }
  0xf8   :  { %331 = vst [vmem:[%s556_s2 + $0x18] sm:$0xff] %v237_v32  ;;  %v239_v33 = vpop.f32.mrb[3].mxu0  ;;  %330 = vst [vmem:[%s556_s2 + $0x10] sm:$0xff] %v284_v35  ;;  %v394_v36 = vpop.f32.mrb[2].mxu1 }
  0xf9   :  { %332 = vst [vmem:[%s556_s2 + $0x20] sm:$0xff] %v239_v33  ;;  %v287_v37 = vpop.f32.mrb[3].mxu1 }
  0xfa   :  { %333 = vst [vmem:[%s556_s2 + $0x28] sm:$0xff] %v287_v37 }
  0xfd   :  { %v243_v38 = vpop.f32.mrb[4].mxu0 }
  0xfe   :  { %334 = vst [vmem:[%s556_s2 + $0x30] sm:$0xff] %v243_v38  ;;  %v245_v39 = vpop.f32.mrb[5].mxu0 }
  0xff   :  { %335 = vst [vmem:[%s556_s2 + $0x38] sm:$0xff] %v245_v39  ;;  %v247_v40 = vpop.f32.mrb[6].mxu0 }
 0x100   :  { %v248_v41 = vpop.f32.mrb[7].mxu0 }

// kernel: transformer_block_forward.6
= control target key start
LH: loop header
LB: loop body
LE: loop exit
PB: predicated region body
PF: predicated region fallthrough
CT: control target
= control target key end

     0   :  { %s387_s1 = inlined_call_operand.vmem [shape: bf16[128,128], index: 1, kind: input, shape index: {}]   ;;  %s388_s0 = inlined_call_operand.vmem [shape: f32[24,128], index: 0, kind: input, shape index: {}]   ;;  %s389_s2 = inlined_call_operand.vmem [shape: f32[1,128], index: 2, kind: input, shape index: {}]   ;;  %s390_s3 = inlined_call_operand.vmem [shape: f32[24,128], index: 3, kind: input, shape index: {}]   ;;  %s391_s4 = inlined_call_operand.vmem [shape: f32[1,128], index: 4, kind: input, shape index: {}]   ;;  %s392_s5 = inlined_call_operand.vmem [shape: f32[1,128], index: 5, kind: input, shape index: {}]   ;;  %s393_s6 = inlined_call_operand.vmem [shape: f32[24,128], index: 6, kind: output, shape index: {}]  }
   0x1   :  { %v278_v0 = vld [vmem:[%s387_s1] sm:$0xff]   ;;  %v279_v1 = vld [vmem:[%s387_s1 + $0x8] sm:$0xff]   ;;  %v280_v2 = vld [vmem:[%s387_s1 + $0x10] sm:$0xff]  }
   0x2   :  { %258 = vmatprep.subr.bf16.mxu0 %v278_v0  ;;  %v281_v3 = vld [vmem:[%s387_s1 + $0x18] sm:$0xff]   ;;  %v41_v4 = vld [vmem:[%s388_s0] sm:$0xff]  ;;  %v42_v5 = vld [vmem:[%s388_s0 + $0x8] sm:$0xff] }
   0x3   :  { %259 = vmatpush3.bf16.msra.mxu0 %v278_v0  ;;  %v44_v6 = vpack.c.bf16 %v42_v5, %v41_v4  ;;  %v282_v7 = vld [vmem:[%s387_s1 + $0x20] sm:$0xff]   ;;  %v283_v8 = vld [vmem:[%s387_s1 + $0x28] sm:$0xff]   ;;  %v284_v9 = vld [vmem:[%s387_s1 + $0x30] sm:$0xff]  }
   0x4   :  { %260 = vmatprep.subr.bf16.mxu0 %v279_v1  ;;  %v285_v10 = vld [vmem:[%s387_s1 + $0x38] sm:$0xff]   ;;  %v43_v11 = vld [vmem:[%s388_s0 + $0x10] sm:$0xff]  ;;  %v237_v13 = vld [vmem:[%s389_s2] ss:$0 sm:$0xff] }
   0x5   :  { %274 = vmatprep.mubr.bf16.mxu0 %v44_v6  ;;  %v45_v12 = vpack.c.bf16 %v43_v11, %v43_v11  ;;  %v172_v15 = vld [vmem:[%s390_s3 + $0x10] sm:$0xff]  ;;  %v170_v18 = vld [vmem:[%s390_s3] sm:$0xff]  ;;  %v171_v25 = vld [vmem:[%s390_s3 + $0x8] sm:$0xff] }
   0x6   :  { %v246_v49 = vld [vmem:[%s391_s4] ss:$0 sm:$0xff] }
   0x7   :  { %261 = vmatpush3.bf16.msra.mxu0 %v279_v1  ;;  %v247_v51 = vld [vmem:[%s392_s5] ss:$0 sm:$0xff] }
   0x8   :  { %262 = vmatprep.subr.bf16.mxu0 %v280_v2 }
   0xb   :  { %263 = vmatpush3.bf16.msra.mxu0 %v280_v2 }
   0xc   :  { %264 = vmatprep.subr.bf16.mxu0 %v281_v3 }
   0xf   :  { %265 = vmatpush3.bf16.msra.mxu0 %v281_v3 }
  0x10   :  { %266 = vmatprep.subr.bf16.mxu0 %v282_v7 }
  0x13   :  { %267 = vmatpush3.bf16.msra.mxu0 %v282_v7 }
  0x14   :  { %268 = vmatprep.subr.bf16.mxu0 %v283_v8 }
  0x17   :  { %269 = vmatpush3.bf16.msra.mxu0 %v283_v8 }
  0x18   :  { %270 = vmatprep.subr.bf16.mxu0 %v284_v9 }
  0x1b   :  { %271 = vmatpush3.bf16.msra.mxu0 %v284_v9 }
  0x1c   :  { %272 = vmatprep.subr.bf16.mxu0 %v285_v10 }
  0x1f   :  { %273 = vmatpush3.bf16.msra.mxu0 %v285_v10 }
  0x22   :  { %275 = vmatmul.mubr.bf16.vlgmr.msra.gmra.mrb[0].mxu0 %v45_v12 }
  0xf5   :  { %v276_v14 = vpop.f32.mrb[0].mxu0 }
  0xf6   :  { %v160_v16 = vadd.f32 %v276_v14, %v237_v13  ;;  %v144_v17 = vpop.f32.mrb[1].mxu0 }
  0xf7   :  { %v158_v19 = vadd.f32 %v237_v13, %v144_v17  ;;  %v277_v20 = vpop.f32.mrb[2].mxu0 }
  0xf8   :  { %v147_v21 = vpop.f32.mrb[3].mxu0  ;;  %v175_v22 = vadd.f32 %v172_v15, %v160_v16 }
  0xf9   :  { %v159_v23 = vadd.f32 %v237_v13, %v147_v21  ;;  %v173_v24 = vadd.f32 %v170_v18, %v158_v19 }
  0xfa   :  { %180 = vadd.xlane.f32.xlu1 %v175_v22 }
  0xfb   :  { %176 = vadd.xlane.f32.xlu0 %v173_v24  ;;  %v174_v26 = vadd.f32 %v171_v25, %v159_v23 }
  0xff   :  { %178 = vadd.xlane.f32.xlu0 %v174_v26 }
 0x187   :  { %v181_v27 = vpop.xlane.xlu1 %180 }
 0x188   :  { %v177_v28 = vpop.xlane.xlu0 %176  ;;  %v185_v29 = vmul.f32 0.0078125, %v181_v27 }
 0x189   :  { %v183_v30 = vmul.f32 0.0078125, %v177_v28 }
 0x18a   :  { %v188_v33 = vsub.f32 %v175_v22, %v185_v29 }
 0x18b   :  { %v186_v31 = vsub.f32 %v173_v24, %v183_v30 }
 0x18c   :  { %v179_v32 = vpop.xlane.xlu0 %178  ;;  %v191_v37 = vmul.f32 %v188_v33, %v188_v33 }
 0x18d   :  { %v184_v34 = vmul.f32 0.0078125, %v179_v32  ;;  %v189_v35 = vmul.f32 %v186_v31, %v186_v31 }
 0x18f   :  { %v187_v36 = vsub.f32 %v174_v26, %v184_v34  ;;  %192 = vadd.xlane.f32.xlu1 %v189_v35 }
 0x191   :  { %v190_v38 = vmul.f32 %v187_v36, %v187_v36 }
 0x193   :  { %196 = vadd.xlane.f32.xlu1 %v191_v37  ;;  %194 = vadd.xlane.f32.xlu0 %v190_v38 }
 0x21c   :  { %v193_v39 = vpop.xlane.xlu1 %192 }
 0x21d   :  { %v198_v40 = vmul.f32 0.0078125, %v193_v39 }
 0x21f   :  { %v201_v41 = vadd.f32 1e-05, %v198_v40 }
 0x220   :  { %v197_v42 = vpop.xlane.xlu1 %196  ;;  %v195_v43 = vpop.xlane.xlu0 %194 }
 0x221   :  { %286 = vrsqrt.f32 %v201_v41  ;;  %v200_v44 = vmul.f32 0.0078125, %v197_v42  ;;  %v199_v45 = vmul.f32 0.0078125, %v195_v43 }
 0x223   :  { %v203_v46 = vadd.f32 1e-05, %v200_v44  ;;  %v202_v47 = vadd.f32 1e-05, %v199_v45 }
 0x225   :  { %288 = vrsqrt.f32 %v203_v46 }
 0x226   :  { %290 = vrsqrt.f32 %v202_v47 }
 0x22b   :  { %v287_v48 = vpop.eup %286 }
 0x22c   :  { %v207_v50 = vmul.f32 %v287_v48, %v186_v31 }
 0x22e   :  { %v217_v52 = vmul.f32 %v246_v49, %v207_v50 }
 0x22f   :  { %v289_v53 = vpop.eup %288 }
 0x230   :  { %v291_v54 = vpop.eup %290  ;;  %v227_v55 = vadd.f32 %v247_v51, %v217_v52  ;;  %v209_v56 = vmul.f32 %v289_v53, %v188_v33 }
 0x231   :  { %v208_v57 = vmul.f32 %v291_v54, %v187_v36 }
 0x232   :  { %230 = vst [vmem:[%s393_s6] sm:$0xff] %v227_v55  ;;  %v219_v58 = vmul.f32 %v246_v49, %v209_v56 }
 0x233   :  { %v218_v59 = vmul.f32 %v246_v49, %v208_v57 }
 0x234   :  { %v229_v60 = vadd.f32 %v247_v51, %v219_v58 }
 0x235   :  { %v228_v61 = vadd.f32 %v247_v51, %v218_v59 }
 0x236   :  { %232 = vst [vmem:[%s393_s6 + $0x10] sm:$0xff] %v229_v60 }
 0x237   :  { %231 = vst [vmem:[%s393_s6 + $0x8] sm:$0xff] %v228_v61 }

// kernel: transformer_block_forward.5
= control target key start
LH: loop header
LB: loop body
LE: loop exit
PB: predicated region body
PF: predicated region fallthrough
CT: control target
= control target key end

     0   :  { %s1638_s12 = smov 0   ;;  %s1640_s13 = smov 0   ;;  %s2023_s0 = inlined_call_operand.vmem [shape: f32[2,16,384], index: 0, kind: input, shape index: {}, may-alias: {0,1,2}]   ;;  %s2024_s1 = inlined_call_operand.vmem [shape: f32[2,16,384], index: 1, kind: input, shape index: {}, may-alias: {0,1,2}]   ;;  %s2025_s2 = inlined_call_operand.vmem [shape: f32[2,16,384], index: 2, kind: input, shape index: {}, may-alias: {0,1,2}]   ;;  %s2026_s3 = inlined_call_operand.vmem [shape: f32[2,16,128], index: 3, kind: output, shape index: {}]  }
   0x1   :  { %s1642_s14 = smov 0   ;;  %s1644_s15 = smov 0  }
   0x2   :  { %s1646_s16 = smov 0  }
   0x3 LB: > { %s32_s17 = sadd.s32 1, %s1605_s15  ;;  %p48_p1 = scmp.ne.s32.totalorder %s1597_s13, %s1593_s12  ;;  %s1609_s16 = sphi %s1646_s16, %s13_s16   ;;  %s1605_s15 = sphi %s1644_s15, %s2031_s15   ;;  %s1601_s14 = sphi %s1642_s14, %s2030_s14   ;;  %s1597_s13 = sphi %s1640_s13, %s2029_s13   ;;  %s1593_s12 = sphi %s1638_s12, %s2028_s12  }
   0x4   : > { %p34_p0 = scmp.ge.s32.totalorder %s32_s17, 2  ;;  %p49_p2 = scmp.eq.s32.totalorder %s1609_s16, 0 }
   0x5   : > { %s41_s20 = sadd.s32 1, %s1597_s13  ;;  %p1381_p5 = scmp.ge.s32.totalorder %s1609_s16, 2 }
   0x6   : > { %s2033_s17 = smov (%p34_p0, %s32_s17), 0  ;;  %p1669_p3 = por %p49_p2, %p48_p1 }
   0x7   : > { %s36_s19 = ssub.s32 %s1605_s15, %s2033_s17  ;;  %158 = sbr.rel (%p1381_p5) target bundleno = 35 (0x23), region = 16 }
   0x8   : > { %p39_p4 = scmp.eq.s32.totalorder %s36_s19, 0 }
   0xa   : > { %s1677_s21 = scalar_select %p39_p4, %s1597_s13, %s41_s20  }
   0xe   : > { %161 = sbr.rel (!%p1669_p3) target bundleno = 21 (0x15), region = 20  ;;  %s163_s22 = sand.u32 (%p1669_p3), 1, %s1597_s13  }
   0xf   : > { %s1473_s23 = smul.u32 (%p1669_p3), 48, %s1605_s15  ;;  %s1382_s24 = sshll.u32 (%p1669_p3), %s163_s22, 4 }
  0x10   : > { %s165_s28 = scalar_lea.vmem (%p1669_p3), [#allocation5], %s1382_s24 }
  0x11   : > { %s171_s27 = scalar_lea.vmem (%p1669_p3), %s2023_s0, %s1473_s23 }
  0x12   : > { %v201_v0 = vld [vmem:[%s171_s27] sm:$0xff] (%p1669_p3)  ;;  %v203_v1 = vld [vmem:[%s171_s27 + $0x18] sm:$0xff] (%p1669_p3) }
  0x13   : > { %202 = vst [vmem:[%s165_s28] sm:$0xff] (%p1669_p3), %v201_v0  ;;  %204 = vst [vmem:[%s165_s28 + $0x8] sm:$0xff] (%p1669_p3), %v203_v1 }
  0x15 PF: > { %210 = sbr.rel (!%p1669_p3) target bundleno = 28 (0x1c), region = 58  ;;  %s212_s29 = sand.u32 (%p1669_p3), 1, %s1597_s13  }
  0x16   : > { %s1385_s30 = smul.u32 (%p1669_p3), 48, %s1605_s15  ;;  %s1384_s4 = sshll.u32 (%p1669_p3), %s212_s29, 4 }
  0x17   : > { %s214_s8 = scalar_lea.vmem (%p1669_p3), [#allocation6], %s1384_s4 }
  0x18   : > { %s1284_s7 = scalar_lea.vmem (%p1669_p3), %s2024_s1, %s1385_s30 }
  0x19   : > { %v1386_v2 = vld [vmem:[%s1284_s7 + $0x8] sm:$0xff] (%p1669_p3)  ;;  %v1387_v3 = vld [vmem:[%s1284_s7 + $0x20] sm:$0xff] (%p1669_p3) }
  0x1a   : > { %252 = vst [vmem:[%s214_s8] sm:$0xff] (%p1669_p3), %v1386_v2  ;;  %254 = vst [vmem:[%s214_s8 + $0x8] sm:$0xff] (%p1669_p3), %v1387_v3 }
  0x1c PF: > { %260 = sbr.rel (!%p1669_p3) target bundleno = 35 (0x23), region = 96  ;;  %s262_s9 = sand.u32 (%p1669_p3), 1, %s1597_s13  }
  0x1d   : > { %s1389_s10 = smul.u32 (%p1669_p3), 48, %s1605_s15  ;;  %s1388_s11 = sshll.u32 (%p1669_p3), %s262_s9, 4 }
  0x1e   : > { %s264_s23 = scalar_lea.vmem (%p1669_p3), [#allocation7], %s1388_s11 }
  0x1f   : > { %s1292_s22 = scalar_lea.vmem (%p1669_p3), %s2025_s2, %s1389_s10 }
  0x20   : > { %v1390_v4 = vld [vmem:[%s1292_s22 + $0x10] sm:$0xff] (%p1669_p3)  ;;  %v1391_v5 = vld [vmem:[%s1292_s22 + $0x28] sm:$0xff] (%p1669_p3) }
  0x21   : > { %302 = vst [vmem:[%s264_s23] sm:$0xff] (%p1669_p3), %v1390_v4  ;;  %304 = vst [vmem:[%s264_s23 + $0x8] sm:$0xff] (%p1669_p3), %v1391_v5 }
  0x23 PF: > { %p1392_p6 = scmp.ge.s32.totalorder %s1609_s16, 1  ;;  %p309_p7 = scmp.lt.s32.totalorder %s1609_s16, 3 }
  0x25   : > { %p310_p8 = pnand %p1392_p6, %p309_p7 }
  0x26   : > { %s316_s18 = sand.u32 (!%p310_p8), 1, %s1593_s12   ;;  %v1611_v6 = vmov (!%p310_p8), 0.0   ;;  %vm1612_vm0 = vmmov (!%p310_p8), 0   ;;  %vm417_vm1 = vcmask (!%p310_p8), 261120   ;;  %vm383_vm2 = vcmask (!%p310_p8), 7168   ;;  %s1615_s26 = smov (!%p310_p8), 96  }
  0x27   : > { %313 = sbr.rel (%p310_p8) target bundleno = 1460 (0x5b4), region = 134  ;;  %1425 = vmatprep.subr.bf16.mxu0 (!%p310_p8), %v1611_v6  ;;  %400 = vst [vmem:[#allocation4] sm:$0xff] (!%p310_p8), %v1611_v6  ;;  %401 = vst [vmem:[#allocation4 + $0x8] sm:$0xff] (!%p310_p8), %v1611_v6  ;;  %s1707_s24 = sshll.u32 (!%p310_p8), %s316_s18, 4  ;;  %1427 = vmatprep.mubr.msk.bf16.mxu0 (!%p310_p8), %vm1612_vm0, %v1611_v6  ;;  %v1613_v14 = vmov (!%p310_p8), -inf   ;;  %v403_v15 = vlaneseq (!%p310_p8)  ;;  %vm471_vm4 = vcmask (!%p310_p8), 130048  }
  0x28   : > { %1431 = vmatprep.subr.bf16.mxu1 (!%p310_p8), %v1611_v6  ;;  %1433 = vmatprep.mubr.msk.bf16.mxu1 (!%p310_p8), %vm1612_vm0, %v1611_v6  ;;  %s325_s12 = scalar_lea.vmem (!%p310_p8), [#allocation6], %s1707_s24  ;;  %s318_s25 = scalar_lea.vmem (!%p310_p8), [#allocation5], %s1707_s24  ;;  %384 = vst.msk [vmem:[#allocation2] sm:$0xff] (!%p310_p8), %vm383_vm2, %v1613_v14  ;;  %385 = vst.msk [vmem:[#allocation2 + $0x8] sm:$0xff] (!%p310_p8), %vm383_vm2, %v1613_v14  ;;  %v1614_v27 = vmov (!%p310_p8), 0   ;;  %vm769_vm5 = vcmask (!%p310_p8), 523520  }
  0x29   : > { %v411_v7 = vld [vmem:[%s325_s12] sm:$0xff] (!%p310_p8)  ;;  %v412_v8 = vld [vmem:[%s325_s12 + $0x8] sm:$0xff] (!%p310_p8)  ;;  %386 = vst.msk [vmem:[#allocation2 + $0x10] sm:$0xff] (!%p310_p8), %vm383_vm2, %v1613_v14  ;;  %387 = vst.msk [vmem:[#allocation2 + $0x18] sm:$0xff] (!%p310_p8), %vm383_vm2, %v1613_v14  ;;  %v1751_v16 = vand.u32 (!%p310_p8), 127, %v403_v15  ;;  %1521 = vset.pattern.permute.xlu1 (!%p310_p8), %v1614_v27  ;;  %1522 = vset.pattern.permute.xlu0 (!%p310_p8), %v1614_v27  ;;  %s332_s27 = scalar_lea.vmem (!%p310_p8), [#allocation7], %s1707_s24 }
  0x2a   : > { %v1715_v9 = vpack.c.bf16 (!%p310_p8), %v412_v8, %v411_v7  ;;  %v408_v11 = vld [vmem:[%s318_s25] sm:$0xff] (!%p310_p8)  ;;  %v409_v12 = vld [vmem:[%s318_s25 + $0x8] sm:$0xff] (!%p310_p8)  ;;  %388 = vst.msk [vmem:[#allocation2 + $0x20] sm:$0xff] (!%p310_p8), %vm383_vm2, %v1613_v14  ;;  %389 = vst.msk [vmem:[#allocation2 + $0x28] sm:$0xff] (!%p310_p8), %vm383_vm2, %v1613_v14  ;;  %s1616_s28 = smov (!%p310_p8), 64   ;;  %s1617_s29 = smov (!%p310_p8), 32  }
  0x2b   : > { %v1721_v13 = vpack.c.bf16 (!%p310_p8), %v409_v12, %v408_v11  ;;  %390 = vst.msk [vmem:[#allocation2 + $0x30] sm:$0xff] (!%p310_p8), %vm383_vm2, %v1613_v14  ;;  %391 = vst.msk [vmem:[#allocation2 + $0x38] sm:$0xff] (!%p310_p8), %vm383_vm2, %v1613_v14  ;;  %vm407_vm3 = vcmp.lt.s32.totalorder (!%p310_p8), %v1751_v16, 9  ;;  %v414_v36 = vld [vmem:[%s332_s27] sm:$0xff] (!%p310_p8)  ;;  %v415_v37 = vld [vmem:[%s332_s27 + $0x8] sm:$0xff] (!%p310_p8)  ;;  %vm961_vm6 = vcmask (!%p310_p8), 785920  }
  0x2c   : > { %v422_v10 = vsel (!%p310_p8), %vm417_vm1, %v1715_v9, 0  ;;  %392 = vst.msk [vmem:[#allocation3] sm:$0xff] (!%p310_p8), %vm383_vm2, %v1611_v6  ;;  %393 = vst.msk [vmem:[#allocation3 + $0x8] sm:$0xff] (!%p310_p8), %vm383_vm2, %v1611_v6  ;;  %v1785_v38 = vpack.c.bf16 (!%p310_p8), %v415_v37, %v414_v36  ;;  %p369_p9 = scmp.lt.s32.totalorder (!%p310_p8), %s1601_s14, 1  ;;  %vm1153_vm7 = vcmask (!%p310_p8), 1048320  }
  0x2d   : > { %1426 = vmatpush3.bf16.xpose.msra.mxu0 (!%p310_p8), %v422_v10  ;;  %394 = vst.msk [vmem:[#allocation3 + $0x10] sm:$0xff] (!%p310_p8), %vm383_vm2, %v1611_v6  ;;  %395 = vst.msk [vmem:[#allocation3 + $0x18] sm:$0xff] (!%p310_p8), %vm383_vm2, %v1611_v6 }
  0x2e   : > { %1443 = vmatprep.subr.bf16.mxu0 %v1611_v6  ;;  %396 = vst.msk [vmem:[#allocation3 + $0x20] sm:$0xff] %vm383_vm2, %v1611_v6  ;;  %397 = vst.msk [vmem:[#allocation3 + $0x28] sm:$0xff] %vm383_vm2, %v1611_v6  ;;  %1432 = vmatpush3.bf16.msra.mxu1 %v1785_v38  ;;  %s2035_s14 = smov (!%p369_p9, %s1601_s14), 1 }
  0x2f   : > { %398 = vst.msk [vmem:[#allocation3 + $0x30] sm:$0xff] %vm383_vm2, %v1611_v6  ;;  %399 = vst.msk [vmem:[#allocation3 + $0x38] sm:$0xff] %vm383_vm2, %v1611_v6  ;;  %v1762_v28 = vld [vmem:[#allocation2] sm:$0xff]  ;;  %v1767_v31 = vld [vmem:[#allocation2 + $0x8] sm:$0xff]  ;;  %1437 = vmatprep.subr.bf16.mxu1 %v1611_v6  ;;  %s1408_s30 = sshll.u32 %s2035_s14, 4 }
  0x30   : > { %v650_v37 = vld [vmem:[#allocation2 + $0x18] sm:$0xff]  ;;  %s376_s6 = scalar_lea.vmem %s2026_s3, %s1408_s30 }
  0x31   : > { %v1860_v16 = vld [vmem:[#allocation2 + $0x20] sm:$0xff] }
  0x34   : > { %1428 = vmatmul.mubr.msk.bf16.vlgmr.msra.gmra.mrb[0].mxu0 %vm417_vm1, %v1721_v13 }
  0x35   : > { %1445 = vmatprep.mubr.msk.bf16.mxu0 %vm1612_vm0, %v1611_v6 }
 0x107   : > { %v458_v17 = vpop.f32.mrb[0].mxu0 }
 0x108   : > { %v465_v18 = vmul.f32 0.17677669, %v458_v17  ;;  %v1429_v19 = vpop.f32.mrb[1].mxu0 }
 0x109   : > { %v461_v20 = vpop.f32.mrb[2].mxu0 }
 0x10a   : > { %v466_v21 = vmul.f32 0.17677669, %v461_v20  ;;  %v1430_v22 = vpop.f32.mrb[3].mxu0  ;;  %v467_v23 = vsel %vm407_vm3, %v465_v18, -1e+30 }
 0x10b   : > { %v472_v24 = vsel %vm471_vm4, %v467_v23, -inf }
 0x10c   : > { %473 = vmax.xlane.f32.xlu0 %v472_v24  ;;  %v468_v25 = vsel %vm407_vm3, %v466_v21, -1e+30 }
 0x10d   : > { %v475_v26 = vsel %vm471_vm4, %v468_v25, -inf }
 0x110   : > { %476 = vmax.xlane.f32.xlu0 %v475_v26 }
 0x126   : > { %595 = vrot.lane.b32.xlu0 %v1715_v9, %s1615_s26 }
 0x199   : > { %v474_v29 = vpop.xlane.xlu0 %473 }
 0x19a   : > { %v1765_v30 = vmax.f32 %v1762_v28, %v474_v29 }
 0x19c   : > { %v480_v32 = vsub.f32 %v1762_v28, %v1765_v30  ;;  %580 = vst.msk [vmem:[#allocation2] sm:$0xff] %vm383_vm2, %v1765_v30  ;;  %488 = vperm.xlu1 %1521, %v1765_v30  }
 0x19d   : > { %v477_v33 = vpop.xlane.xlu0 %476 }
 0x19e   : > { %v1775_v34 = vmax.f32 %v1767_v31, %v477_v33  ;;  %v649_v33 = vld [vmem:[#allocation2 + $0x10] sm:$0xff] }
 0x1a0   : > { %v481_v35 = vsub.f32 %v1767_v31, %v1775_v34  ;;  %581 = vst.msk [vmem:[#allocation2 + $0x8] sm:$0xff] %vm383_vm2, %v1775_v34  ;;  %493 = vperm.xlu1 %1521, %v1775_v34  }
 0x1a1   : > { %v596_v46 = vpop.permute.xlu0 %595 }
 0x1a2   : > { %v601_v49 = vsel %vm417_vm1, %v596_v46, 0  ;;  %v484_v28 = vmul.f32 1.442695, %v481_v35 }
 0x1a4   : > { %592 = vrot.lane.b32.xlu1 %v1721_v13, %s1615_s26 }
 0x1a8   : > { %787 = vrot.lane.b32.xlu1 %v1715_v9, %s1616_s28 }
 0x1ac   : > { %784 = vrot.lane.b32.xlu1 %v1721_v13, %s1616_s28 }
 0x1b0   : > { %979 = vrot.lane.b32.xlu1 %v1715_v9, %s1617_s29 }
 0x1b4   : > { %976 = vrot.lane.b32.xlu1 %v1721_v13, %s1617_s29 }
 0x21b   : > { %v489_v39 = vpop.permute.xlu1 %488 }
 0x21c   : > { %v496_v40 = vsub.f32 %v467_v23, %v489_v39 }
 0x21e   : > { %v498_v41 = vmul.f32 1.442695, %v496_v40 }
 0x21f   : > { %v494_v42 = vpop.permute.xlu1 %493 }
 0x220   : > { %v497_v43 = vsub.f32 %v468_v25, %v494_v42  ;;  %1523 = vpow2.f32 %v498_v41 }
 0x222   : > { %v500_v44 = vmul.f32 1.442695, %v497_v43 }
 0x223   : > { %v593_v45 = vpop.permute.xlu1 %592 }
 0x224   : > { %1525 = vpow2.f32 %v500_v44  ;;  %v1864_v44 = vld [vmem:[#allocation2 + $0x28] sm:$0xff] }
 0x227   : > { %v788_v51 = vpop.permute.xlu1 %787 }
 0x228   : > { %v793_v53 = vsel %vm417_vm1, %v788_v51, 0 }
 0x22a   : > { %v1797_v47 = vpop.eup %1523 }
 0x22b   : > { %v785_v52 = vpop.permute.xlu1 %784 }
 0x22e   : > { %v1799_v48 = vpop.eup %1525 }
 0x22f   : > { %v517_v50 = vpack.c.bf16 %v1799_v48, %v1797_v47  ;;  %v980_v54 = vpop.permute.xlu1 %979 }
 0x230   : > { %v985_v55 = vsel %vm417_vm1, %v980_v54, 0  ;;  %v1884_v54 = vld [vmem:[#allocation2 + $0x38] sm:$0xff] }
 0x231   : > { %1434 = vmatmul.mubr.msk.bf16.vlgmr.msra.gmra.mrb[0].mxu1 %vm471_vm4, %v517_v50 }
 0x232   : > { %1438 = vmatpush3.bf16.xpose.msra.mxu1 %v601_v49  ;;  %1439 = vmatprep.mubr.msk.bf16.mxu1 %vm1612_vm0, %v1611_v6 }
 0x233   : > { %1449 = vmatprep.subr.bf16.mxu1 %v1611_v6  ;;  %v977_v56 = vpop.permute.xlu1 %976 }
 0x239   : > { %1440 = vmatmul.mubr.msk.bf16.vlgmr.msra.gmra.mrb[4].mxu1 %vm417_vm1, %v593_v45 }
 0x23a   : > { %1450 = vmatpush3.bf16.xpose.msra.mxu1 %v793_v53  ;;  %1451 = vmatprep.mubr.msk.bf16.mxu1 %vm1612_vm0, %v1611_v6 }
 0x23b   : > { %1461 = vmatprep.subr.bf16.mxu1 %v1611_v6 }
 0x241   : > { %1452 = vmatmul.mubr.msk.bf16.vlgmr.msra.gmra.mrb[8].mxu1 %vm417_vm1, %v785_v52  ;;  %v1881_v52 = vld [vmem:[#allocation2 + $0x30] sm:$0xff] }
 0x242   : > { %1462 = vmatpush3.bf16.xpose.msra.mxu1 %v985_v55  ;;  %1463 = vmatprep.mubr.msk.bf16.mxu1 %vm1612_vm0, %v1611_v6 }
 0x249   : > { %1464 = vmatmul.mubr.msk.bf16.vlgmr.msra.gmra.mrb[12].mxu1 %vm417_vm1, %v977_v56 }
 0x304   : > { %v1818_v57 = vpop.f32.mrb[0].mxu1 }
 0x305   : > { %v1435_v58 = vpop.f32.mrb[1].mxu1 }
 0x306   : > { %v1820_v59 = vpop.f32.mrb[2].mxu1 }
 0x307   : > { %v1436_v60 = vpop.f32.mrb[3].mxu1 }
 0x30c   : > { %v637_v61 = vpop.f32.mrb[4].mxu1 }
 0x30d   : > { %v644_v62 = vmul.f32 0.17677669, %v637_v61  ;;  %v1441_v63 = vpop.f32.mrb[5].mxu1 }
 0x30e   : > { %v640_v0 = vpop.f32.mrb[6].mxu1  ;;  %v482_v63 = vmul.f32 1.442695, %v480_v32 }
 0x30f   : > { %v645_v1 = vmul.f32 0.17677669, %v640_v0  ;;  %v1442_v2 = vpop.f32.mrb[7].mxu1  ;;  %v1824_v3 = vsel %vm407_vm3, %v644_v62, -1e+30  ;;  %v509_v62 = vsel %vm471_vm4, %v1799_v48, 0.0 }
 0x310   : > { %v651_v4 = vsel %vm471_vm4, %v1824_v3, -inf  ;;  %1527 = vpow2.f32 %v482_v63 }
 0x311   : > { %652 = vmax.xlane.f32.xlu1 %v651_v4  ;;  %v1830_v5 = vsel %vm407_vm3, %v645_v1, -1e+30 }
 0x312   : > { %v654_v7 = vsel %vm471_vm4, %v1830_v5, -inf }
 0x313   : > { %655 = vmax.xlane.f32.xlu0 %v654_v7 }
 0x314   : > { %v829_v8 = vpop.f32.mrb[8].mxu1 }
 0x315   : > { %v836_v9 = vmul.f32 0.17677669, %v829_v8  ;;  %v1453_v10 = vpop.f32.mrb[9].mxu1 }
 0x316   : > { %v832_v11 = vpop.f32.mrb[10].mxu1 }
 0x317   : > { %v837_v12 = vmul.f32 0.17677669, %v832_v11  ;;  %v1454_v13 = vpop.f32.mrb[11].mxu1  ;;  %v1836_v14 = vsel %vm407_vm3, %v836_v9, -1e+30 }
 0x318   : > { %v843_v15 = vsel %vm471_vm4, %v1836_v14, -inf }
 0x319   : > { %844 = vmax.xlane.f32.xlu0 %v843_v15  ;;  %v1842_v17 = vsel %vm407_vm3, %v837_v12, -1e+30 }
 0x31a   : > { %v846_v18 = vsel %vm471_vm4, %v1842_v17, -inf  ;;  %v1911_v2 = vpop.eup %1527 }
 0x31b   : > { %847 = vmax.xlane.f32.xlu1 %v846_v18 }
 0x31c   : > { %v1021_v19 = vpop.f32.mrb[12].mxu1 }
 0x31d   : > { %v1028_v20 = vmul.f32 0.17677669, %v1021_v19  ;;  %v1465_v21 = vpop.f32.mrb[13].mxu1 }
 0x31e   : > { %v1024_v22 = vpop.f32.mrb[14].mxu1 }
 0x31f   : > { %v1029_v23 = vmul.f32 0.17677669, %v1024_v22  ;;  %v1466_v24 = vpop.f32.mrb[15].mxu1  ;;  %v1848_v25 = vsel %vm407_vm3, %v1028_v20, -1e+30 }
 0x320   : > { %v1035_v26 = vsel %vm471_vm4, %v1848_v25, -inf }
 0x321   : > { %1036 = vmax.xlane.f32.xlu0 %v1035_v26  ;;  %v1854_v27 = vsel %vm407_vm3, %v1029_v23, -1e+30 }
 0x322   : > { %v1038_v29 = vsel %vm471_vm4, %v1854_v27, -inf }
 0x323   : > { %1039 = vmax.xlane.f32.xlu1 %v1038_v29 }
 0x39e   : > { %v653_v36 = vpop.xlane.xlu1 %652 }
 0x39f   : > { %v657_v39 = vmax.f32 %v649_v33, %v653_v36 }
 0x3a0   : > { %v656_v40 = vpop.xlane.xlu0 %655 }
 0x3a1   : > { %772 = vst.msk [vmem:[#allocation2 + $0x10] sm:$0xff] %vm383_vm2, %v657_v39  ;;  %v658_v41 = vmax.f32 %v650_v37, %v656_v40  ;;  %667 = vperm.xlu0 %1522, %v657_v39   ;;  %v659_v0 = vsub.f32 %v649_v33, %v657_v39 }
 0x3a3   : > { %v660_v42 = vsub.f32 %v650_v37, %v658_v41  ;;  %773 = vst.msk [vmem:[#allocation2 + $0x18] sm:$0xff] %vm383_vm2, %v658_v41  ;;  %672 = vperm.xlu1 %1521, %v658_v41   ;;  %v661_v1 = vmul.f32 1.442695, %v659_v0 }
 0x3a5   : > { %1082 = vrot.lane.b32.xlu0 %v1785_v38, %s1617_s29  ;;  %1529 = vpow2.f32 %v661_v1  ;;  %v663_v30 = vmul.f32 1.442695, %v660_v42 }
 0x3a6   : > { %v845_v43 = vpop.xlane.xlu0 %844  ;;  %1531 = vpow2.f32 %v484_v28 }
 0x3a7   : > { %v1867_v45 = vmax.f32 %v1860_v16, %v845_v43  ;;  %1533 = vpow2.f32 %v663_v30 }
 0x3a8   : > { %v848_v46 = vpop.xlane.xlu1 %847 }
 0x3a9   : > { %v851_v49 = vsub.f32 %v1860_v16, %v1867_v45  ;;  %964 = vst.msk [vmem:[#allocation2 + $0x20] sm:$0xff] %vm383_vm2, %v1867_v45  ;;  %v1874_v50 = vmax.f32 %v1864_v44, %v848_v46  ;;  %859 = vperm.xlu1 %1521, %v1867_v45  }
 0x3ab   : > { %v852_v51 = vsub.f32 %v1864_v44, %v1874_v50  ;;  %965 = vst.msk [vmem:[#allocation2 + $0x28] sm:$0xff] %vm383_vm2, %v1874_v50 }
 0x3ad   : > { %864 = vperm.xlu1 %1521, %v1874_v50   ;;  %v874_v50 = vld [vmem:[#allocation3 + $0x20] sm:$0xff] }
 0x3ae   : > { %v1037_v53 = vpop.xlane.xlu0 %1036 }
 0x3af   : > { %v1887_v55 = vmax.f32 %v1881_v52, %v1037_v53  ;;  %v1914_v4 = vpop.eup %1529  ;;  %v503_v53 = vld [vmem:[#allocation3 + $0x8] sm:$0xff] }
 0x3b0   : > { %v1040_v56 = vpop.xlane.xlu1 %1039  ;;  %v1922_v32 = vpop.eup %1531 }
 0x3b1   : > { %698 = vrot.lane.b32.xlu1 %v1785_v38, %s1615_s26  ;;  %v1043_v58 = vsub.f32 %v1881_v52, %v1887_v55  ;;  %1156 = vst.msk [vmem:[#allocation2 + $0x30] sm:$0xff] %vm383_vm2, %v1887_v55  ;;  %v1896_v60 = vmax.f32 %v1884_v54, %v1040_v56  ;;  %v1925_v48 = vpop.eup %1533  ;;  %v505_v56 = vmul.f32 %v1922_v32, %v503_v53 }
 0x3b3   : > { %v1044_v61 = vsub.f32 %v1884_v54, %v1896_v60  ;;  %1157 = vst.msk [vmem:[#allocation2 + $0x38] sm:$0xff] %vm383_vm2, %v1896_v60  ;;  %v1045_v16 = vmul.f32 1.442695, %v1043_v58  ;;  %v1067_v54 = vld [vmem:[#allocation3 + $0x38] sm:$0xff] }
 0x3b5   : > { %1051 = vperm.xlu1 %1521, %v1887_v55  }
 0x3b9   : > { %1056 = vperm.xlu1 %1521, %v1896_v60  }
 0x3bd   : > { %890 = vrot.lane.b32.xlu1 %v1785_v38, %s1616_s28  ;;  %v506_v38 = vsel %vm471_vm4, %v1797_v47, 0.0 }
 0x3c4   : > { %510 = vadd.xlane.f32.xlu0 %v509_v62 }
 0x3da   : > { %566 = vperm.xlu0 %1522, %v1911_v2  }
 0x3de   : > { %749 = vperm.xlu0 %1522, %v1914_v4  }
 0x3e1   : > { %507 = vadd.xlane.f32.xlu1 %v506_v38  ;;  %v502_v38 = vld [vmem:[#allocation3] sm:$0xff] }
 0x3e2   : > { %v504_v28 = vmul.f32 %v1911_v2, %v502_v38 }
 0x3f2   : > { %571 = vperm.xlu1 %1521, %v1922_v32  }
 0x3f6   : > { %754 = vperm.xlu1 %1521, %v1925_v48  }
 0x420   : > { %v668_v7 = vpop.permute.xlu0 %667 }
 0x421   : > { %v675_v8 = vsub.f32 %v1824_v3, %v668_v7 }
 0x422   : > { %v673_v47 = vpop.permute.xlu1 %672 }
 0x423   : > { %v677_v9 = vmul.f32 1.442695, %v675_v8  ;;  %v676_v10 = vsub.f32 %v1830_v5, %v673_v47 }
 0x424   : > { %v1083_v40 = vpop.permute.xlu0 %1082 }
 0x425   : > { %1535 = vpow2.f32 %v677_v9  ;;  %v679_v31 = vmul.f32 1.442695, %v676_v10  ;;  %v853_v9 = vmul.f32 1.442695, %v851_v49  ;;  %v682_v10 = vld [vmem:[#allocation3 + $0x10] sm:$0xff] }
 0x427   : > { %1537 = vpow2.f32 %v679_v31 }
 0x428   : > { %v860_v34 = vpop.permute.xlu1 %859 }
 0x429   : > { %v867_v35 = vsub.f32 %v1836_v14, %v860_v34  ;;  %v683_v34 = vld [vmem:[#allocation3 + $0x18] sm:$0xff] }
 0x42b   : > { %v869_v11 = vmul.f32 1.442695, %v867_v35 }
 0x42c   : > { %v865_v12 = vpop.permute.xlu1 %864 }
 0x42d   : > { %1539 = vpow2.f32 %v869_v11  ;;  %v868_v13 = vsub.f32 %v1842_v17, %v865_v12  ;;  %v685_v12 = vmul.f32 %v1925_v48, %v683_v34 }
 0x42f   : > { %v1536_v15 = vpop.eup %1535  ;;  %v871_v18 = vmul.f32 1.442695, %v868_v13 }
 0x430   : > { %v699_v19 = vpop.permute.xlu1 %698  ;;  %v686_v3 = vsel %vm471_vm4, %v1536_v15, 0.0 }
 0x431   : > { %v1538_v20 = vpop.eup %1537  ;;  %1541 = vpow2.f32 %v871_v18  ;;  %687 = vadd.xlane.f32.xlu1 %v686_v3  ;;  %1444 = vmatpush3.bf16.msra.mxu0 %v699_v19  ;;  %v1066_v3 = vld [vmem:[#allocation3 + $0x30] sm:$0xff] }
 0x432   : > { %v689_v5 = vsel %vm471_vm4, %v1538_v20, 0.0  ;;  %v696_v21 = vpack.c.bf16 %v1538_v20, %v1536_v15  ;;  %1455 = vmatprep.subr.bf16.mxu0 %v1611_v6  ;;  %v875_v15 = vld [vmem:[#allocation3 + $0x28] sm:$0xff] }
 0x433   : > { %690 = vadd.xlane.f32.xlu0 %v689_v5 }
 0x434   : > { %1446 = vmatmul.mubr.msk.bf16.vlgmr.msra.gmra.mrb[4].mxu0 %vm471_vm4, %v696_v21  ;;  %v1052_v14 = vpop.permute.xlu1 %1051 }
 0x435   : > { %v1059_v17 = vsub.f32 %v1848_v25, %v1052_v14  ;;  %1457 = vmatprep.mubr.msk.bf16.mxu0 %vm1612_vm0, %v1611_v6 }
 0x437   : > { %v1540_v22 = vpop.eup %1539  ;;  %v1061_v23 = vmul.f32 1.442695, %v1059_v17 }
 0x438   : > { %v1057_v24 = vpop.permute.xlu1 %1056  ;;  %v878_v26 = vsel %vm471_vm4, %v1540_v22, 0.0 }
 0x439   : > { %1543 = vpow2.f32 %v1061_v23  ;;  %v1060_v29 = vsub.f32 %v1854_v27, %v1057_v24  ;;  %879 = vadd.xlane.f32.xlu1 %v878_v26 }
 0x43b   : > { %v1542_v33 = vpop.eup %1541  ;;  %v1063_v36 = vmul.f32 1.442695, %v1060_v29 }
 0x43c   : > { %v891_v37 = vpop.permute.xlu1 %890  ;;  %v881_v39 = vsel %vm471_vm4, %v1542_v33, 0.0  ;;  %v888_v25 = vpack.c.bf16 %v1542_v33, %v1540_v22 }
 0x43d   : > { %1545 = vpow2.f32 %v1063_v36  ;;  %882 = vadd.xlane.f32.xlu0 %v881_v39  ;;  %1456 = vmatpush3.bf16.msra.mxu0 %v891_v37 }
 0x43e   : > { %1467 = vmatprep.subr.bf16.mxu0 %v1611_v6  ;;  %1547 = vpow2.f32 %v853_v9 }
 0x440   : > { %1458 = vmatmul.mubr.msk.bf16.vlgmr.msra.gmra.mrb[8].mxu0 %vm471_vm4, %v888_v25 }
 0x441   : > { %1468 = vmatpush3.bf16.msra.mxu0 %v1083_v40  ;;  %1469 = vmatprep.mubr.msk.bf16.mxu0 %vm1612_vm0, %v1611_v6 }
 0x443   : > { %v1544_v27 = vpop.eup %1543 }
 0x444   : > { %v1070_v41 = vsel %vm471_vm4, %v1544_v27, 0.0 }
 0x445   : > { %1071 = vadd.xlane.f32.xlu0 %v1070_v41 }
 0x447   : > { %v1546_v42 = vpop.eup %1545 }
 0x448   : > { %v1073_v43 = vsel %vm471_vm4, %v1546_v42, 0.0  ;;  %v1080_v46 = vpack.c.bf16 %v1546_v42, %v1544_v27  ;;  %v1548_v49 = vpop.eup %1547 }
 0x449   : > { %1074 = vadd.xlane.f32.xlu1 %v1073_v43 }
 0x44a   : > { %1470 = vmatmul.mubr.msk.bf16.vlgmr.msra.gmra.mrb[12].mxu0 %vm471_vm4, %v1080_v46 }
 0x451   : > { %v511_v62 = vpop.xlane.xlu0 %510 }
 0x452   : > { %v513_v63 = vadd.f32 %v511_v62, %v505_v56 }
 0x454   : > { %516 = vst.msk [vmem:[#allocation3 + $0x8] sm:$0xff] %vm383_vm2, %v513_v63 }
 0x459   : > { %v567_v0 = vpop.permute.xlu0 %566 }
 0x45a   : > { %v574_v6 = vmul.f32 0.0, %v567_v0 }
 0x45b   : > { %v1162_v33 = vld [vmem:[#allocation3 + $0x8] sm:$0xff] }
 0x45c   : > { %v576_v1 = vadd.f32 %v574_v6, %v1818_v57  ;;  %v855_v57 = vmul.f32 1.442695, %v852_v51  ;;  %v1047_v51 = vmul.f32 1.442695, %v1044_v61 }
 0x45d   : > { %v1965_v31 = vpop.permute.xlu0 %749 }
 0x45e   : > { %578 = vst.msk [vmem:[#allocation4] sm:$0xff] %vm417_vm1, %v576_v1  ;;  %1549 = vpow2.f32 %v855_v57 }
 0x45f   : > { %1551 = vpow2.f32 %v1045_v16 }
 0x460   : > { %1553 = vpow2.f32 %v1047_v51 }
 0x468   : > { %v1550_v13 = vpop.eup %1549 }
 0x469   : > { %v877_v52 = vmul.f32 %v1550_v13, %v875_v15  ;;  %v1552_v19 = vpop.eup %1551 }
 0x46a   : > { %v1068_v20 = vmul.f32 %v1552_v19, %v1066_v3  ;;  %v1554_v5 = vpop.eup %1553 }
 0x46b   : > { %v1069_v61 = vmul.f32 %v1554_v5, %v1067_v54 }
 0x46e   : > { %v508_v30 = vpop.xlane.xlu1 %507 }
 0x46f   : > { %v512_v7 = vadd.f32 %v508_v30, %v504_v28 }
 0x471   : > { %515 = vst.msk [vmem:[#allocation3] sm:$0xff] %vm383_vm2, %v512_v7 }
 0x472   : > { %v572_v8 = vpop.permute.xlu1 %571 }
 0x473   : > { %v575_v47 = vmul.f32 0.0, %v572_v8 }
 0x475   : > { %v577_v32 = vadd.f32 %v575_v47, %v1820_v59  ;;  %v684_v59 = vmul.f32 %v1914_v4, %v682_v10  ;;  %v876_v4 = vmul.f32 %v1548_v49, %v874_v50  ;;  %v745_v47 = vld [vmem:[#allocation4] sm:$0xff] }
 0x476   : > { %v1963_v2 = vpop.permute.xlu1 %754  ;;  %v757_v9 = vmul.f32 %v1965_v31, %v745_v47 }
 0x477   : > { %579 = vst.msk [vmem:[#allocation4 + $0x8] sm:$0xff] %vm417_vm1, %v577_v32 }
 0x478   : > { %v1161_v29 = vld [vmem:[#allocation3] sm:$0xff] }
 0x479   : > { %1555 = vrcp.f32 %v1161_v29 }
 0x47a   : > { %1557 = vrcp.f32 %v1162_v33 }
 0x47e   : > { %v746_v32 = vld [vmem:[#allocation4 + $0x8] sm:$0xff] }
 0x47f   : > { %v758_v10 = vmul.f32 %v1963_v2, %v746_v32 }
 0x483   : > { %v1556_v42 = vpop.eup %1555 }
 0x484   : > { %v1558_v46 = vpop.eup %1557 }
 0x4be   : > { %v688_v35 = vpop.xlane.xlu1 %687 }
 0x4bf   : > { %v692_v11 = vadd.f32 %v688_v35, %v684_v59 }
 0x4c0   : > { %v691_v45 = vpop.xlane.xlu0 %690 }
 0x4c1   : > { %694 = vst.msk [vmem:[#allocation3 + $0x10] sm:$0xff] %vm383_vm2, %v692_v11  ;;  %v693_v44 = vadd.f32 %v691_v45, %v685_v12 }
 0x4c3   : > { %695 = vst.msk [vmem:[#allocation3 + $0x18] sm:$0xff] %vm383_vm2, %v693_v44 }
 0x4c6   : > { %v880_v48 = vpop.xlane.xlu1 %879 }
 0x4c7   : > { %v884_v18 = vadd.f32 %v880_v48, %v876_v4 }
 0x4c8   : > { %v1181_v36 = vld [vmem:[#allocation3 + $0x10] sm:$0xff] }
 0x4c9   : > { %886 = vst.msk [vmem:[#allocation3 + $0x20] sm:$0xff] %vm383_vm2, %v884_v18  ;;  %1559 = vrcp.f32 %v1181_v36 }
 0x4ca   : > { %v883_v55 = vpop.xlane.xlu0 %882  ;;  %v1182_v37 = vld [vmem:[#allocation3 + $0x18] sm:$0xff] }
 0x4cb   : > { %v885_v58 = vadd.f32 %v883_v55, %v877_v52  ;;  %1561 = vrcp.f32 %v1182_v37 }
 0x4cd   : > { %887 = vst.msk [vmem:[#allocation3 + $0x28] sm:$0xff] %vm383_vm2, %v885_v58 }
 0x4d0   : > { %v1201_v41 = vld [vmem:[#allocation3 + $0x20] sm:$0xff] }
 0x4d1   : > { %1563 = vrcp.f32 %v1201_v41 }
 0x4d2   : > { %v1072_v21 = vpop.xlane.xlu0 %1071 }
 0x4d3   : > { %v1076_v60 = vadd.f32 %v1072_v21, %v1068_v20  ;;  %v1560_v56 = vpop.eup %1559 }
 0x4d4   : > { %v1202_v43 = vld [vmem:[#allocation3 + $0x28] sm:$0xff] }
 0x4d5   : > { %1078 = vst.msk [vmem:[#allocation3 + $0x30] sm:$0xff] %vm383_vm2, %v1076_v60  ;;  %1565 = vrcp.f32 %v1202_v43  ;;  %v1562_v63 = vpop.eup %1561 }
 0x4d6   : > { %v1075_v14 = vpop.xlane.xlu1 %1074 }
 0x4d7   : > { %v1077_v17 = vadd.f32 %v1075_v14, %v1069_v61 }
 0x4d9   : > { %1079 = vst.msk [vmem:[#allocation3 + $0x38] sm:$0xff] %vm383_vm2, %v1077_v17 }
 0x4db   : > { %v1564_v28 = vpop.eup %1563 }
 0x4dc   : > { %v1221_v53 = vld [vmem:[#allocation3 + $0x30] sm:$0xff] }
 0x4dd   : > { %1567 = vrcp.f32 %v1221_v53 }
 0x4df   : > { %v1566_v30 = vpop.eup %1565 }
 0x4e0   : > { %v1222_v62 = vld [vmem:[#allocation3 + $0x38] sm:$0xff] }
 0x4e1   : > { %1569 = vrcp.f32 %v1222_v62 }
 0x4e7   : > { %v1568_v7 = vpop.eup %1567 }
 0x4eb   : > { %v1570_v8 = vpop.eup %1569 }
 0x507   : > { %v738_v22 = vpop.f32.mrb[4].mxu0 }
 0x508   : > { %761 = vrot.lane.b32.xlu1 %v738_v22, %s1617_s29  ;;  %v1447_v23 = vpop.f32.mrb[5].mxu0 }
 0x509   : > { %v741_v24 = vpop.f32.mrb[6].mxu0 }
 0x50a   : > { %763 = vrot.lane.b32.xlu0 %v741_v24, %s1617_s29  ;;  %v1448_v26 = vpop.f32.mrb[7].mxu0 }
 0x50c   : > { %946 = vperm.xlu1 %1521, %v1550_v13  }
 0x50e   : > { %941 = vperm.xlu0 %1522, %v1548_v49  }
 0x510   : > { %1133 = vperm.xlu1 %1521, %v1552_v19  }
 0x512   : > { %1138 = vperm.xlu0 %1522, %v1554_v5  }
 0x513   : > { %v930_v39 = vpop.f32.mrb[8].mxu0 }
 0x514   : > { %953 = vrot.lane.b32.xlu1 %v930_v39, %s1616_s28  ;;  %v1459_v25 = vpop.f32.mrb[9].mxu0 }
 0x515   : > { %v933_v40 = vpop.f32.mrb[10].mxu0 }
 0x516   : > { %955 = vrot.lane.b32.xlu0 %v933_v40, %s1616_s28  ;;  %v1460_v27 = vpop.f32.mrb[11].mxu0 }
 0x518   : > { %1169 = vperm.xlu1 %1521, %v1556_v42  }
 0x51a   : > { %1174 = vperm.xlu0 %1522, %v1558_v46  }
 0x51c   : > { %1189 = vperm.xlu1 %1521, %v1560_v56  }
 0x51d   : > { %v1122_v0 = vpop.f32.mrb[12].mxu0 }
 0x51e   : > { %1194 = vperm.xlu0 %1522, %v1562_v63   ;;  %v1471_v6 = vpop.f32.mrb[13].mxu0 }
 0x51f   : > { %v1125_v1 = vpop.f32.mrb[14].mxu0 }
 0x520   : > { %1145 = vrot.lane.b32.xlu1 %v1122_v0, %s1615_s26  ;;  %v1472_v38 = vpop.f32.mrb[15].mxu0 }
 0x522   : > { %1147 = vrot.lane.b32.xlu0 %v1125_v1, %s1615_s26 }
 0x524   : > { %1209 = vperm.xlu1 %1521, %v1564_v28  }
 0x526   : > { %1214 = vperm.xlu0 %1522, %v1566_v30  }
 0x528   : > { %1229 = vperm.xlu1 %1521, %v1568_v7  }
 0x52a   : > { %1234 = vperm.xlu0 %1522, %v1570_v8  }
 0x57a   : > { %v762_v57 = vpop.permute.xlu1 %761 }
 0x57b   : > { %v767_v34 = vadd.f32 %v762_v57, %v757_v9 }
 0x57c   : > { %v764_v59 = vpop.permute.xlu0 %763 }
 0x57d   : > { %770 = vst.msk [vmem:[#allocation4] sm:$0xff] %vm769_vm5, %v767_v34  ;;  %v768_v35 = vadd.f32 %v764_v59, %v758_v10 }
 0x57f   : > { %771 = vst.msk [vmem:[#allocation4 + $0x8] sm:$0xff] %vm769_vm5, %v768_v35 }
 0x584   : > { %v937_v45 = vld [vmem:[#allocation4] sm:$0xff] }
 0x586   : > { %v938_v50 = vld [vmem:[#allocation4 + $0x8] sm:$0xff] }
 0x58b   : > { %v947_v11 = vpop.permute.xlu1 %946 }
 0x58c   : > { %v950_v51 = vmul.f32 %v947_v11, %v938_v50 }
 0x58d   : > { %v942_v12 = vpop.permute.xlu0 %941 }
 0x58e   : > { %v949_v49 = vmul.f32 %v942_v12, %v937_v45 }
 0x58f   : > { %v1134_v16 = vpop.permute.xlu1 %1133 }
 0x591   : > { %v1139_v44 = vpop.permute.xlu0 %1138 }
 0x593   : > { %v954_v31 = vpop.permute.xlu1 %953 }
 0x594   : > { %v959_v4 = vadd.f32 %v954_v31, %v949_v49 }
 0x595   : > { %v956_v2 = vpop.permute.xlu0 %955 }
 0x596   : > { %962 = vst.msk [vmem:[#allocation4] sm:$0xff] %vm961_vm6, %v959_v4  ;;  %v960_v13 = vadd.f32 %v956_v2, %v950_v51 }
 0x597   : > { %v1170_v48 = vpop.permute.xlu1 %1169 }
 0x598   : > { %963 = vst.msk [vmem:[#allocation4 + $0x8] sm:$0xff] %vm961_vm6, %v960_v13 }
 0x599   : > { %v1175_v15 = vpop.permute.xlu0 %1174 }
 0x59b   : > { %v1190_v18 = vpop.permute.xlu1 %1189 }
 0x59d   : > { %v1195_v52 = vpop.permute.xlu0 %1194  ;;  %v1129_v55 = vld [vmem:[#allocation4] sm:$0xff] }
 0x59e   : > { %v1141_v58 = vmul.f32 %v1134_v16, %v1129_v55 }
 0x59f   : > { %v1146_v19 = vpop.permute.xlu1 %1145  ;;  %v1130_v3 = vld [vmem:[#allocation4 + $0x8] sm:$0xff] }
 0x5a0   : > { %v1151_v20 = vadd.f32 %v1146_v19, %v1141_v58  ;;  %v1142_v5 = vmul.f32 %v1139_v44, %v1130_v3 }
 0x5a1   : > { %v1148_v21 = vpop.permute.xlu0 %1147 }
 0x5a2   : > { %1154 = vst.msk [vmem:[#allocation4] sm:$0xff] %vm1153_vm7, %v1151_v20  ;;  %v1152_v54 = vadd.f32 %v1148_v21, %v1142_v5 }
 0x5a3   : > { %v1210_v60 = vpop.permute.xlu1 %1209 }
 0x5a4   : > { %1155 = vst.msk [vmem:[#allocation4 + $0x8] sm:$0xff] %vm1153_vm7, %v1152_v54 }
 0x5a5   : > { %v1215_v61 = vpop.permute.xlu0 %1214 }
 0x5a7   : > { %v1230_v33 = vpop.permute.xlu1 %1229 }
 0x5a9   : > { %v1165_v14 = vld [vmem:[#allocation4] sm:$0xff]  ;;  %v1235_v39 = vpop.permute.xlu0 %1234 }
 0x5aa   : > { %v1177_v17 = vmul.f32 %v1170_v48, %v1165_v14  ;;  %v1197_v22 = vmul.f32 %v1190_v18, %v1165_v14  ;;  %v1217_v24 = vmul.f32 %v1210_v60, %v1165_v14  ;;  %v1237_v36 = vmul.f32 %v1230_v33, %v1165_v14 }
 0x5ab   : > { %v1166_v23 = vld [vmem:[#allocation4 + $0x8] sm:$0xff] }
 0x5ac   : > { %1179 = vst.msk [vmem:[%s376_s6] sm:$0xff] %vm417_vm1, %v1177_v17  ;;  %v1178_v26 = vmul.f32 %v1175_v15, %v1166_v23  ;;  %v1198_v29 = vmul.f32 %v1195_v52, %v1166_v23  ;;  %v1218_v37 = vmul.f32 %v1215_v61, %v1166_v23  ;;  %v1238_v25 = vmul.f32 %v1235_v39, %v1166_v23 }
 0x5ad   : > { %1199 = vst.msk [vmem:[%s376_s6] sm:$0xff] %vm769_vm5, %v1197_v22 }
 0x5ae   : > { %1219 = vst.msk [vmem:[%s376_s6] sm:$0xff] %vm961_vm6, %v1217_v24 }
 0x5af   : > { %1180 = vst.msk [vmem:[%s376_s6 + $0x8] sm:$0xff] %vm417_vm1, %v1178_v26 }
 0x5b0   : > { %1200 = vst.msk [vmem:[%s376_s6 + $0x8] sm:$0xff] %vm769_vm5, %v1198_v29 }
 0x5b1   : > { %1239 = vst.msk [vmem:[%s376_s6] sm:$0xff] %vm1153_vm7, %v1237_v36 }
 0x5b2   : > { %1220 = vst.msk [vmem:[%s376_s6 + $0x8] sm:$0xff] %vm961_vm6, %v1218_v37 }
 0x5b3   : > { %1240 = vst.msk [vmem:[%s376_s6 + $0x8] sm:$0xff] %vm1153_vm7, %v1238_v25 }
 0x5b4 PF: > { %s13_s16 = sadd.s32 1, %s1609_s16   ;;  %s2028_s12 = smov %s1597_s13 }
 0x5b5   : > { %p10_p10 = scmp.ge.s32.totalorder %s13_s16, 4   ;;  %s2029_s13 = smov %s1677_s21 }
 0x5b6   : > { %s2030_s14 = smov %s1605_s15  ;;  %s2031_s15 = smov %s2033_s17 }
 0x5b7   :  { %12 = sbr.rel (!%p10_p10) target bundleno = 3 (0x3), region = 211 }

// kernel: transformer_block_forward.7
= control target key start
LH: loop header
LB: loop body
LE: loop exit
PB: predicated region body
PF: predicated region fallthrough
CT: control target
= control target key end

     0   :  { %v1352_v1 = vmov 0   ;;  %s1843_s1 = inlined_call_operand.vmem [shape: bf16[128,512], index: 1, kind: input, shape index: {}]   ;;  %s1844_s0 = inlined_call_operand.vmem [shape: f32[24,128], index: 0, kind: input, shape index: {}, may-alias: {0,7}]   ;;  %s1845_s3 = inlined_call_operand.vmem [shape: bf16[512,128], index: 3, kind: input, shape index: {}]   ;;  %s1846_s2 = inlined_call_operand.vmem [shape: f32[1,512], index: 2, kind: input, shape index: {}]   ;;  %s1847_s4 = inlined_call_operand.vmem [shape: f32[1,128], index: 4, kind: input, shape index: {}]   ;;  %s1848_s5 = inlined_call_operand.vmem [shape: f32[1,128], index: 5, kind: input, shape index: {}]   ;;  %s1849_s6 = inlined_call_operand.vmem [shape: f32[1,128], index: 6, kind: input, shape index: {}]   ;;  %s1850_s7 = inlined_call_operand.vmem [shape: f32[24,128], index: 7, kind: output, shape index: {}, may-alias: {0,7}]  }
   0x1   :  { %v1215_v0 = vld [vmem:[%s1843_s1 + $0x4] ss:$16 sps:$4 sm:$0xff]   ;;  %278 = vmatprep.mubr.bf16.mxu0 %v1352_v1  ;;  %329 = vmatprep.mubr.bf16.mxu1 %v1352_v1  ;;  %v1217_v2 = vld [vmem:[%s1843_s1 + $0xc] ss:$16 sps:$4 sm:$0xff]   ;;  %v1219_v3 = vld [vmem:[%s1843_s1] ss:$16 sps:$4 sm:$0xff]  }
   0x2   :  { %246 = vmatprep.subr.bf16.mxu0 %v1215_v0  ;;  %v1220_v4 = vld [vmem:[%s1843_s1 + $0x8] ss:$16 sps:$4 sm:$0xff]   ;;  %297 = vmatprep.subr.bf16.mxu1 %v1217_v2  ;;  %v1221_v5 = vld [vmem:[%s1843_s1 + $0x24] ss:$16 sps:$4 sm:$0xff]   ;;  %v1223_v6 = vld [vmem:[%s1843_s1 + $0x2c] ss:$16 sps:$4 sm:$0xff]  }
   0x3   :  { %247 = vmatpush1.bf16.msra.mxu0 %v1219_v3  ;;  %298 = vmatpush1.bf16.msra.mxu1 %v1220_v4  ;;  %v1225_v7 = vld [vmem:[%s1843_s1 + $0x20] ss:$16 sps:$4 sm:$0xff]   ;;  %v1226_v8 = vld [vmem:[%s1843_s1 + $0x28] ss:$16 sps:$4 sm:$0xff]   ;;  %v1227_v9 = vld [vmem:[%s1843_s1 + $0x44] ss:$16 sps:$4 sm:$0xff]  }
   0x4   :  { %248 = vmatprep.subr.bf16.mxu0 %v1221_v5  ;;  %299 = vmatprep.subr.bf16.mxu1 %v1223_v6  ;;  %v1229_v10 = vld [vmem:[%s1843_s1 + $0x4c] ss:$16 sps:$4 sm:$0xff]   ;;  %v1231_v11 = vld [vmem:[%s1843_s1 + $0x40] ss:$16 sps:$4 sm:$0xff]   ;;  %v1232_v12 = vld [vmem:[%s1843_s1 + $0x48] ss:$16 sps:$4 sm:$0xff]   ;;  %v66_v6 = vlaneseq }
   0x5   :  { %v1233_v13 = vld [vmem:[%s1843_s1 + $0x64] ss:$16 sps:$4 sm:$0xff]   ;;  %v1235_v14 = vld [vmem:[%s1843_s1 + $0x6c] ss:$16 sps:$4 sm:$0xff]   ;;  %v1237_v15 = vld [vmem:[%s1843_s1 + $0x60] ss:$16 sps:$4 sm:$0xff]  }
   0x6   :  { %v1238_v16 = vld [vmem:[%s1843_s1 + $0x68] ss:$16 sps:$4 sm:$0xff]   ;;  %v1239_v17 = vld [vmem:[%s1843_s1 + $0x84] ss:$16 sps:$4 sm:$0xff]   ;;  %v1241_v18 = vld [vmem:[%s1843_s1 + $0x8c] ss:$16 sps:$4 sm:$0xff]  }
   0x7   :  { %249 = vmatpush1.bf16.msra.mxu0 %v1225_v7  ;;  %300 = vmatpush1.bf16.msra.mxu1 %v1226_v8  ;;  %v1243_v19 = vld [vmem:[%s1843_s1 + $0x80] ss:$16 sps:$4 sm:$0xff]   ;;  %v1244_v20 = vld [vmem:[%s1843_s1 + $0x88] ss:$16 sps:$4 sm:$0xff]   ;;  %v1245_v21 = vld [vmem:[%s1843_s1 + $0xa4] ss:$16 sps:$4 sm:$0xff]  }
   0x8   :  { %250 = vmatprep.subr.bf16.mxu0 %v1227_v9  ;;  %301 = vmatprep.subr.bf16.mxu1 %v1229_v10  ;;  %v1247_v22 = vld [vmem:[%s1843_s1 + $0xac] ss:$16 sps:$4 sm:$0xff]   ;;  %v1249_v23 = vld [vmem:[%s1843_s1 + $0xa0] ss:$16 sps:$4 sm:$0xff]   ;;  %v1250_v24 = vld [vmem:[%s1843_s1 + $0xa8] ss:$16 sps:$4 sm:$0xff]  }
   0x9   :  { %v1251_v25 = vld [vmem:[%s1843_s1 + $0xc4] ss:$16 sps:$4 sm:$0xff]   ;;  %v1253_v26 = vld [vmem:[%s1843_s1 + $0xcc] ss:$16 sps:$4 sm:$0xff]   ;;  %v1255_v27 = vld [vmem:[%s1843_s1 + $0xc0] ss:$16 sps:$4 sm:$0xff]  }
   0xa   :  { %v1256_v28 = vld [vmem:[%s1843_s1 + $0xc8] ss:$16 sps:$4 sm:$0xff]   ;;  %v1257_v29 = vld [vmem:[%s1843_s1 + $0xe4] ss:$16 sps:$4 sm:$0xff]   ;;  %v1259_v30 = vld [vmem:[%s1843_s1 + $0xec] ss:$16 sps:$4 sm:$0xff]  }
   0xb   :  { %251 = vmatpush1.bf16.msra.mxu0 %v1231_v11  ;;  %302 = vmatpush1.bf16.msra.mxu1 %v1232_v12  ;;  %v1261_v31 = vld [vmem:[%s1843_s1 + $0xe0] ss:$16 sps:$4 sm:$0xff]   ;;  %v1262_v32 = vld [vmem:[%s1843_s1 + $0xe8] ss:$16 sps:$4 sm:$0xff]   ;;  %v67_v7 = vshrl.u32 %v66_v6, 7 }
   0xc   :  { %252 = vmatprep.subr.bf16.mxu0 %v1233_v13  ;;  %303 = vmatprep.subr.bf16.mxu1 %v1235_v14  ;;  %v27_v33 = vld [vmem:[%s1844_s0] sm:$0xff]  ;;  %v28_v34 = vld [vmem:[%s1844_s0 + $0x8] sm:$0xff]  ;;  %v29_v36 = vld [vmem:[%s1844_s0 + $0x10] sm:$0xff] }
   0xd   :  { %v30_v35 = vpack.c.bf16 %v28_v34, %v27_v33  ;;  %v31_v37 = vpack.c.bf16 %v29_v36, %v29_v36  ;;  %v1263_v38 = vld [vmem:[%s1845_s3 + $0x40] sm:$0xff]   ;;  %v1267_v42 = vld [vmem:[%s1845_s3 + $0x48] sm:$0xff]   ;;  %v1271_v46 = vld [vmem:[%s1845_s3 + $0x50] sm:$0xff]   ;;  %v68_v8 = vsub.s32 0, %v67_v7  ;;  %v76_v9 = vsub.s32 2, %v67_v7 }
   0xe   :  { %v1264_v39 = vld [vmem:[%s1845_s3 + $0xc0] sm:$0xff]   ;;  %v1268_v43 = vld [vmem:[%s1845_s3 + $0xc8] sm:$0xff]   ;;  %v1272_v47 = vld [vmem:[%s1845_s3 + $0xd0] sm:$0xff]   ;;  %v72_v11 = vsub.s32 1, %v67_v7  ;;  %v80_v12 = vsub.s32 3, %v67_v7 }
   0xf   :  { %253 = vmatpush1.bf16.msra.mxu0 %v1237_v15  ;;  %304 = vmatpush1.bf16.msra.mxu1 %v1238_v16  ;;  %v1265_v40 = vld [vmem:[%s1845_s3] sm:$0xff]   ;;  %v1269_v44 = vld [vmem:[%s1845_s3 + $0x8] sm:$0xff]   ;;  %v1273_v48 = vld [vmem:[%s1845_s3 + $0x10] sm:$0xff]  }
  0x10   :  { %254 = vmatprep.subr.bf16.mxu0 %v1239_v17  ;;  %305 = vmatprep.subr.bf16.mxu1 %v1241_v18  ;;  %v1266_v41 = vld [vmem:[%s1845_s3 + $0x80] sm:$0xff]   ;;  %v1270_v45 = vld [vmem:[%s1845_s3 + $0x88] sm:$0xff]   ;;  %v1274_v49 = vld [vmem:[%s1845_s3 + $0x90] sm:$0xff]  }
  0x11   :  { %v1275_v50 = vld [vmem:[%s1845_s3 + $0x58] sm:$0xff]   ;;  %v1279_v54 = vld [vmem:[%s1845_s3 + $0x60] sm:$0xff]   ;;  %v1283_v58 = vld [vmem:[%s1845_s3 + $0x68] sm:$0xff]  }
  0x12   :  { %v1276_v51 = vld [vmem:[%s1845_s3 + $0xd8] sm:$0xff]   ;;  %v1280_v55 = vld [vmem:[%s1845_s3 + $0xe0] sm:$0xff]   ;;  %v1284_v59 = vld [vmem:[%s1845_s3 + $0xe8] sm:$0xff]  }
  0x13   :  { %255 = vmatpush1.bf16.msra.mxu0 %v1243_v19  ;;  %306 = vmatpush1.bf16.msra.mxu1 %v1244_v20  ;;  %v1277_v52 = vld [vmem:[%s1845_s3 + $0x18] sm:$0xff]   ;;  %v1281_v56 = vld [vmem:[%s1845_s3 + $0x20] sm:$0xff]   ;;  %v1285_v60 = vld [vmem:[%s1845_s3 + $0x28] sm:$0xff]  }
  0x14   :  { %256 = vmatprep.subr.bf16.mxu0 %v1245_v21  ;;  %307 = vmatprep.subr.bf16.mxu1 %v1247_v22  ;;  %v1278_v53 = vld [vmem:[%s1845_s3 + $0x98] sm:$0xff]   ;;  %v1282_v57 = vld [vmem:[%s1845_s3 + $0xa0] sm:$0xff]   ;;  %v1286_v61 = vld [vmem:[%s1845_s3 + $0xa8] sm:$0xff]  }
  0x15   :  { %v1287_v62 = vld [vmem:[%s1845_s3 + $0x70] sm:$0xff]   ;;  %v1291_v2 = vld [vmem:[%s1845_s3 + $0x78] sm:$0xff]   ;;  %v64_v10 = vld [vmem:[%s1846_s2] sm:$0xf] }
  0x16   :  { %v1288_v63 = vld [vmem:[%s1845_s3 + $0xf0] sm:$0xff]   ;;  %v1292_v3 = vld [vmem:[%s1845_s3 + $0xf8] sm:$0xff]   ;;  %v1601_v13 = vrot.slane %v64_v10, %v68_v8  ;;  %v1603_v14 = vrot.slane %v64_v10, %v76_v9  ;;  %v1605_v15 = vrot.slane %v64_v10, %v72_v11  ;;  %v1607_v16 = vrot.slane %v64_v10, %v80_v12 }
  0x17   :  { %257 = vmatpush1.bf16.msra.mxu0 %v1249_v23  ;;  %308 = vmatpush1.bf16.msra.mxu1 %v1250_v24  ;;  %v1289_v0 = vld [vmem:[%s1845_s3 + $0x30] sm:$0xff]   ;;  %v1293_v4 = vld [vmem:[%s1845_s3 + $0x38] sm:$0xff]  }
  0x18   :  { %258 = vmatprep.subr.bf16.mxu0 %v1251_v25  ;;  %309 = vmatprep.subr.bf16.mxu1 %v1253_v26  ;;  %v1294_v5 = vld [vmem:[%s1845_s3 + $0xb8] sm:$0xff]  }
  0x1b   :  { %259 = vmatpush1.bf16.msra.mxu0 %v1255_v27  ;;  %310 = vmatpush1.bf16.msra.mxu1 %v1256_v28 }
  0x1c   :  { %260 = vmatprep.subr.bf16.mxu0 %v1257_v29  ;;  %311 = vmatprep.subr.bf16.mxu1 %v1259_v30 }
  0x1f   :  { %261 = vmatpush1.bf16.msra.mxu0 %v1261_v31  ;;  %312 = vmatpush1.bf16.msra.mxu1 %v1262_v32 }
  0x20   :  { %1158 = vmatprep.subr.bf16.mxu0 %v1263_v38  ;;  %1186 = vmatprep.subr.bf16.mxu1 %v1264_v39 }
  0x22   :  { %279 = vmatmul.mubr.bf16.vlgmr.msra.gmra.mrb[0].mxu0 %v30_v35  ;;  %330 = vmatmul.mubr.bf16.vlgmr.msra.gmra.mrb[0].mxu1 %v30_v35 }
  0x23   :  { %288 = vmatprep.mubr.bf16.mxu0 %v1352_v1  ;;  %339 = vmatprep.mubr.bf16.mxu1 %v1352_v1  ;;  %v1290_v1 = vld [vmem:[%s1845_s3 + $0xb0] sm:$0xff]  }
  0x24   :  { %1159 = vmatpush3.bf16.msra.mxu0 %v1265_v40  ;;  %1187 = vmatpush3.bf16.msra.mxu1 %v1266_v41 }
  0x25   :  { %1160 = vmatprep.subr.bf16.mxu0 %v1267_v42  ;;  %1188 = vmatprep.subr.bf16.mxu1 %v1268_v43 }
  0x28   :  { %1161 = vmatpush3.bf16.msra.mxu0 %v1269_v44  ;;  %1189 = vmatpush3.bf16.msra.mxu1 %v1270_v45 }
  0x29   :  { %1162 = vmatprep.subr.bf16.mxu0 %v1271_v46  ;;  %1190 = vmatprep.subr.bf16.mxu1 %v1272_v47 }
  0x2a   :  { %289 = vmatmul.mubr.bf16.gmra.mrb[4].mxu0 %v31_v37  ;;  %340 = vmatmul.mubr.bf16.gmra.mrb[4].mxu1 %v31_v37 }
  0x2c   :  { %1163 = vmatpush3.bf16.msra.mxu0 %v1273_v48  ;;  %1191 = vmatpush3.bf16.msra.mxu1 %v1274_v49 }
  0x2d   :  { %1164 = vmatprep.subr.bf16.mxu0 %v1275_v50  ;;  %1192 = vmatprep.subr.bf16.mxu1 %v1276_v51 }
  0x30   :  { %1165 = vmatpush3.bf16.msra.mxu0 %v1277_v52  ;;  %1193 = vmatpush3.bf16.msra.mxu1 %v1278_v53 }
  0x31   :  { %1166 = vmatprep.subr.bf16.mxu0 %v1279_v54  ;;  %1194 = vmatprep.subr.bf16.mxu1 %v1280_v55 }
  0x34   :  { %1167 = vmatpush3.bf16.msra.mxu0 %v1281_v56  ;;  %1195 = vmatpush3.bf16.msra.mxu1 %v1282_v57 }
  0x35   :  { %1168 = vmatprep.subr.bf16.mxu0 %v1283_v58  ;;  %1196 = vmatprep.subr.bf16.mxu1 %v1284_v59 }
  0x38   :  { %1169 = vmatpush3.bf16.msra.mxu0 %v1285_v60  ;;  %1197 = vmatpush3.bf16.msra.mxu1 %v1286_v61 }
  0x39   :  { %1170 = vmatprep.subr.bf16.mxu0 %v1287_v62  ;;  %1198 = vmatprep.subr.bf16.mxu1 %v1288_v63 }
  0x3c   :  { %1171 = vmatpush3.bf16.msra.mxu0 %v1289_v0  ;;  %1199 = vmatpush3.bf16.msra.mxu1 %v1290_v1 }
  0x3d   :  { %1172 = vmatprep.subr.bf16.mxu0 %v1291_v2  ;;  %1200 = vmatprep.subr.bf16.mxu1 %v1292_v3 }
  0x40   :  { %1173 = vmatpush3.bf16.msra.mxu0 %v1293_v4  ;;  %1201 = vmatpush3.bf16.msra.mxu1 %v1294_v5 }
  0xf5   :  { %v280_v17 = vpop.f32.mrb[0].mxu0  ;;  %v331_v18 = vpop.f32.mrb[0].mxu1 }
  0xf6   :  { %v281_v19 = vadd.f32 %v280_v17, %v1601_v13  ;;  %v1611_v20 = vadd.f32 %v331_v18, %v1603_v14  ;;  %v282_v21 = vpop.f32.mrb[1].mxu0  ;;  %v333_v22 = vpop.f32.mrb[1].mxu1 }
  0xf7   :  { %v283_v23 = vadd.f32 %v282_v21, %v1605_v15  ;;  %v1615_v24 = vadd.f32 %v333_v22, %v1607_v16  ;;  %v284_v25 = vpop.f32.mrb[2].mxu0  ;;  %v335_v26 = vpop.f32.mrb[2].mxu1 }
  0xf8   :  { %v1617_v27 = vmul.f32 0.70710677, %v281_v19  ;;  %v1620_v28 = vmul.f32 0.70710677, %v1611_v20  ;;  %v286_v41 = vpop.f32.mrb[3].mxu0  ;;  %v337_v42 = vpop.f32.mrb[3].mxu1  ;;  %v285_v46 = vadd.f32 %v284_v25, %v1601_v13  ;;  %v1641_v49 = vadd.f32 %v335_v26, %v1603_v14 }
  0xf9   :  { %v1622_v29 = vmul.f32 0.70710677, %v283_v23  ;;  %v1625_v30 = vmul.f32 0.70710677, %v1615_v24  ;;  %v1646_v54 = vadd.f32 %v286_v41, %v1605_v15  ;;  %v1653_v62 = vadd.f32 %v337_v42, %v1607_v16 }
  0xfa   :  { %v372_v31 = vand.u32 2147483647, %v1617_v27  ;;  %v374_v32 = vand.u32 2147483647, %v1620_v28  ;;  %v1643_v53 = vmul.f32 0.70710677, %v285_v46 }
  0xfb   :  { %v373_v33 = vand.u32 2147483647, %v1622_v29  ;;  %v375_v34 = vand.u32 2147483647, %v1625_v30  ;;  %v1649_v59 = vmul.f32 0.70710677, %v1641_v49 }
  0xfc   :  { %v384_v35 = vmul.f32 0.3275911, %v372_v31  ;;  %v386_v36 = vmul.f32 0.3275911, %v374_v32  ;;  %v528_v57 = vsub.f32 0.0, %v372_v31  ;;  %v530_v58 = vsub.f32 0.0, %v374_v32 }
  0xfd   :  { %v385_v37 = vmul.f32 0.3275911, %v373_v33  ;;  %v387_v40 = vmul.f32 0.3275911, %v375_v34  ;;  %v1631_v43 = vpop.f32.mrb[4].mxu0  ;;  %v1633_v44 = vpop.f32.mrb[4].mxu1 }
  0xfe   :  { %v396_v38 = vadd.f32 1.0, %v384_v35  ;;  %v398_v39 = vadd.f32 1.0, %v386_v36  ;;  %v1636_v47 = vpop.f32.mrb[5].mxu0  ;;  %v1638_v48 = vpop.f32.mrb[5].mxu1  ;;  %v529_v60 = vsub.f32 0.0, %v373_v33  ;;  %v531_v63 = vsub.f32 0.0, %v375_v34 }
  0xff   :  { %v397_v45 = vadd.f32 1.0, %v385_v37  ;;  %v294_v50 = vpop.f32.mrb[6].mxu0  ;;  %v345_v51 = vpop.f32.mrb[6].mxu1  ;;  %v399_v52 = vadd.f32 1.0, %v387_v40  ;;  %v376_v61 = vand.u32 2147483647, %v1643_v53  ;;  %v540_v4 = vmul.f32 %v528_v57, %v372_v31 }
 0x100   :  { %1295 = vrcp.f32 %v396_v38  ;;  %v295_v55 = vpop.f32.mrb[7].mxu0  ;;  %v346_v56 = vpop.f32.mrb[7].mxu1  ;;  %v378_v0 = vand.u32 2147483647, %v1649_v59  ;;  %v1657_v1 = vmul.f32 0.70710677, %v1646_v54  ;;  %v542_v5 = vmul.f32 %v530_v58, %v374_v32 }
 0x101   :  { %1297 = vrcp.f32 %v398_v39  ;;  %v1659_v2 = vmul.f32 0.5, %v281_v19  ;;  %v388_v3 = vmul.f32 0.3275911, %v376_v61  ;;  %v541_v8 = vmul.f32 %v529_v60, %v373_v33 }
 0x102   :  { %1299 = vrcp.f32 %v397_v45  ;;  %v390_v6 = vmul.f32 0.3275911, %v378_v0  ;;  %v377_v7 = vand.u32 2147483647, %v1657_v1  ;;  %v532_v10 = vsub.f32 0.0, %v376_v61 }
 0x103   :  { %1301 = vrcp.f32 %v399_v52  ;;  %v400_v9 = vadd.f32 1.0, %v388_v3  ;;  %v1663_v11 = vmul.f32 0.70710677, %v1653_v62  ;;  %v543_v12 = vmul.f32 %v531_v63, %v375_v34 }
 0x104   :  { %v402_v17 = vadd.f32 1.0, %v390_v6  ;;  %v534_v18 = vsub.f32 0.0, %v378_v0  ;;  %v389_v21 = vmul.f32 0.3275911, %v377_v7  ;;  %v1668_v19 = vmul.f32 0.5, %v1611_v20 }
 0x105   :  { %v1670_v25 = vmul.f32 0.5, %v283_v23  ;;  %1303 = vrcp.f32 %v400_v9  ;;  %v379_v26 = vand.u32 2147483647, %v1663_v11  ;;  %v552_v33 = vmul.f32 1.442695, %v540_v4 }
 0x106   :  { %1305 = vrcp.f32 %v402_v17  ;;  %v401_v34 = vadd.f32 1.0, %v389_v21  ;;  %v556_v36 = vmul.f32 1.442695, %v542_v5  ;;  %v544_v37 = vmul.f32 %v532_v10, %v376_v61 }
 0x107   :  { %v391_v38 = vmul.f32 0.3275911, %v379_v26  ;;  %v554_v20 = vmul.f32 1.442695, %v541_v8  ;;  %v558_v40 = vmul.f32 1.442695, %v543_v12  ;;  %v546_v23 = vmul.f32 %v534_v18, %v378_v0 }
 0x108   :  { %1307 = vrcp.f32 %v401_v34  ;;  %v1681_v50 = vadd.f32 %v1631_v43, %v1601_v13  ;;  %v1685_v55 = vmul.f32 0.5, %v285_v46  ;;  %v560_v58 = vmul.f32 1.442695, %v544_v37 }
 0x109   :  { %v403_v45 = vadd.f32 1.0, %v391_v38  ;;  %1309 = vpow2.f32 %v552_v33  ;;  %v533_v60 = vsub.f32 0.0, %v377_v7  ;;  %v564_v43 = vmul.f32 1.442695, %v546_v23 }
 0x10a   :  { %v1665_v22 = vpop.eup %1295  ;;  %1311 = vpow2.f32 %v556_v36  ;;  %v1692_v3 = vmul.f32 0.70710677, %v1681_v50  ;;  %v535_v10 = vsub.f32 0.0, %v379_v26  ;;  %vm600_vm0 = vcmp.ge.f32.partialorder %v1617_v27, 0.0 }
 0x10b   :  { %v1673_v31 = vpop.eup %1297  ;;  %v420_v32 = vmul.f32 1.0614054, %v1665_v22  ;;  %1313 = vrcp.f32 %v403_v45  ;;  %v545_v9 = vmul.f32 %v533_v60, %v377_v7  ;;  %vm602_vm1 = vcmp.ge.f32.partialorder %v1620_v28, 0.0 }
 0x10c   :  { %v422_v35 = vmul.f32 1.0614054, %v1673_v31  ;;  %v1677_v41 = vpop.eup %1299  ;;  %1315 = vpow2.f32 %v554_v20  ;;  %vm601_vm2 = vcmp.ge.f32.partialorder %v1622_v29, 0.0  ;;  %vm604_vm3 = vcmp.ge.f32.partialorder %v1643_v53, 0.0 }
 0x10d   :  { %v432_v39 = vadd.f32 -1.4531521, %v420_v32  ;;  %v421_v52 = vmul.f32 1.0614054, %v1677_v41  ;;  %v1687_v56 = vpop.eup %1301  ;;  %1317 = vpow2.f32 %v558_v40  ;;  %v562_v23 = vmul.f32 1.442695, %v545_v9 }
 0x10e   :  { %v434_v42 = vadd.f32 -1.4531521, %v422_v35  ;;  %v423_v0 = vmul.f32 1.0614054, %v1687_v56  ;;  %1319 = vpow2.f32 %v560_v58  ;;  %v1705_v35 = vand.u32 2147483647, %v1692_v3 }
 0x10f   :  { %v444_v51 = vmul.f32 %v1665_v22, %v432_v39  ;;  %v433_v63 = vadd.f32 -1.4531521, %v421_v52  ;;  %v1696_v6 = vpop.eup %1303  ;;  %1321 = vpow2.f32 %v564_v43  ;;  %vm606_vm4 = vcmp.ge.f32.partialorder %v1649_v59, 0.0 }
 0x110   :  { %v446_v57 = vmul.f32 %v1673_v31, %v434_v42  ;;  %v435_v5 = vadd.f32 -1.4531521, %v423_v0  ;;  %v1699_v12 = vpop.eup %1305  ;;  %v424_v32 = vmul.f32 1.0614054, %v1696_v6  ;;  %v547_v42 = vmul.f32 %v535_v10, %v379_v26 }
 0x111   :  { %v456_v61 = vadd.f32 1.4214138, %v444_v51  ;;  %v445_v4 = vmul.f32 %v1677_v41, %v433_v63  ;;  %v426_v34 = vmul.f32 1.0614054, %v1699_v12  ;;  %1323 = vpow2.f32 %v562_v23 }
 0x112   :  { %v458_v13 = vadd.f32 1.4214138, %v446_v57  ;;  %v447_v21 = vmul.f32 %v1687_v56, %v435_v5  ;;  %v436_v38 = vadd.f32 -1.4531521, %v424_v32  ;;  %v1709_v39 = vpop.eup %1307  ;;  %vm605_vm5 = vcmp.ge.f32.partialorder %v1657_v1, 0.0 }
 0x113   :  { %v468_v46 = vmul.f32 %v1665_v22, %v456_v61  ;;  %v457_v18 = vadd.f32 1.4214138, %v445_v4  ;;  %v438_v40 = vadd.f32 -1.4531521, %v426_v34  ;;  %v1310_v45 = vpop.eup %1309  ;;  %v425_v0 = vmul.f32 1.0614054, %v1709_v39 }
 0x114   :  { %v470_v8 = vmul.f32 %v1673_v31, %v458_v13  ;;  %v459_v37 = vadd.f32 1.4214138, %v447_v21  ;;  %v448_v58 = vmul.f32 %v1696_v6, %v436_v38  ;;  %v1312_v60 = vpop.eup %1311  ;;  %v392_v13 = vmul.f32 0.3275911, %v1705_v35 }
 0x115   :  { %v480_v17 = vadd.f32 -0.28449672, %v468_v46  ;;  %v469_v7 = vmul.f32 %v1677_v41, %v457_v18  ;;  %v450_v63 = vmul.f32 %v1699_v12, %v438_v40  ;;  %v1717_v43 = vpop.eup %1313  ;;  %vm603_vm6 = vcmp.ge.f32.partialorder %v1625_v30, 0.0 }
 0x116   :  { %v482_v33 = vadd.f32 -0.28449672, %v470_v8  ;;  %v471_v57 = vmul.f32 %v1687_v56, %v459_v37  ;;  %v460_v5 = vadd.f32 1.4214138, %v448_v58  ;;  %v1316_v8 = vpop.eup %1315  ;;  %v427_v18 = vmul.f32 1.0614054, %v1717_v43 }
 0x117   :  { %v492_v36 = vmul.f32 %v1665_v22, %v480_v17  ;;  %v481_v52 = vadd.f32 -0.28449672, %v469_v7  ;;  %v462_v10 = vadd.f32 1.4214138, %v450_v63  ;;  %v437_v17 = vadd.f32 -1.4531521, %v425_v0  ;;  %v1318_v21 = vpop.eup %1317 }
 0x118   :  { %v494_v20 = vmul.f32 %v1673_v31, %v482_v33  ;;  %v483_v4 = vadd.f32 -0.28449672, %v471_v57  ;;  %vm607_vm7 = vcmp.ge.f32.partialorder %v1663_v11, 0.0  ;;  %vm608_vm8 = vcmp.ge.f32.partialorder %v1692_v3, 0.0 }
 0x119   :  { %v504_v51 = vadd.f32 0.2548296, %v492_v36  ;;  %v493_v26 = vmul.f32 %v1677_v41, %v481_v52  ;;  %v1320_v36 = vpop.eup %1319  ;;  %v474_v37 = vmul.f32 %v1699_v12, %v462_v10  ;;  %v449_v38 = vmul.f32 %v1709_v39, %v437_v17 }
 0x11a   :  { %v506_v61 = vadd.f32 0.2548296, %v494_v20  ;;  %v495_v34 = vmul.f32 %v1687_v56, %v483_v4  ;;  %v439_v20 = vadd.f32 -1.4531521, %v427_v18  ;;  %v1322_v57 = vpop.eup %1321  ;;  %v354_v17 = vmul.f32 0.5, %v1641_v49 }
 0x11b   :  { %v516_v46 = vmul.f32 %v1665_v22, %v504_v51  ;;  %v505_v33 = vadd.f32 0.2548296, %v493_v26  ;;  %v472_v22 = vmul.f32 %v1696_v6, %v460_v5  ;;  %v461_v58 = vadd.f32 1.4214138, %v449_v38 }
 0x11c   :  { %v518_v9 = vmul.f32 %v1673_v31, %v506_v61  ;;  %v507_v51 = vadd.f32 0.2548296, %v495_v34  ;;  %v451_v61 = vmul.f32 %v1717_v43, %v439_v20  ;;  %v566_v5 = vmul.f32 1.442695, %v547_v42 }
 0x11d   :  { %v576_v32 = vmul.f32 %v1310_v45, %v516_v46  ;;  %v517_v31 = vmul.f32 %v1677_v41, %v505_v33  ;;  %v484_v52 = vadd.f32 -0.28449672, %v472_v22  ;;  %v486_v45 = vadd.f32 -0.28449672, %v474_v37 }
 0x11e   :  { %v578_v7 = vmul.f32 %v1312_v60, %v518_v9  ;;  %v473_v4 = vmul.f32 %v1709_v39, %v461_v58  ;;  %v463_v41 = vadd.f32 1.4214138, %v451_v61  ;;  %v519_v9 = vmul.f32 %v1687_v56, %v507_v51 }
 0x11f   :  { %v588_v40 = vsub.f32 1.0, %v576_v32  ;;  %v577_v0 = vmul.f32 %v1316_v8, %v517_v31  ;;  %v496_v46 = vmul.f32 %v1696_v6, %v484_v52  ;;  %v498_v26 = vmul.f32 %v1699_v12, %v486_v45  ;;  %v1324_v31 = vpop.eup %1323 }
 0x120   :  { %v590_v60 = vsub.f32 1.0, %v578_v7  ;;  %v404_v18 = vadd.f32 1.0, %v392_v13  ;;  %v485_v8 = vadd.f32 -0.28449672, %v473_v4  ;;  %v1740_v32 = vadd.f32 %v1633_v44, %v1603_v14 }
 0x121   :  { %v612_v63 = vsub.f32 0.0, %v588_v40  ;;  %v508_v10 = vadd.f32 0.2548296, %v496_v46  ;;  %v510_v23 = vadd.f32 0.2548296, %v498_v26  ;;  %v589_v34 = vsub.f32 1.0, %v577_v0 }
 0x122   :  { %v614_v42 = vsub.f32 0.0, %v590_v60  ;;  %v497_v13 = vmul.f32 %v1709_v39, %v485_v8  ;;  %v475_v22 = vmul.f32 %v1717_v43, %v463_v41  ;;  %1325 = vpow2.f32 %v566_v5 }
 0x123   :  { %v624_v33 = vsel %vm600_vm0, %v588_v40, %v612_v63  ;;  %v520_v56 = vmul.f32 %v1696_v6, %v508_v10  ;;  %v522_v49 = vmul.f32 %v1699_v12, %v510_v23  ;;  %v579_v7 = vmul.f32 %v1318_v21, %v519_v9 }
 0x124   :  { %1327 = vrcp.f32 %v404_v18  ;;  %v636_v14 = vadd.f32 1.0, %v624_v33  ;;  %v509_v27 = vadd.f32 0.2548296, %v497_v13  ;;  %v487_v38 = vadd.f32 -0.28449672, %v475_v22 }
 0x125   :  { %v580_v37 = vmul.f32 %v1320_v36, %v520_v56  ;;  %v582_v44 = vmul.f32 %v1322_v57, %v522_v49  ;;  %v626_v20 = vsel %vm602_vm1, %v590_v60, %v614_v42  ;;  %v613_v6 = vsub.f32 0.0, %v589_v34 }
 0x126   :  { %v1753_v12 = vmul.f32 0.70710677, %v1740_v32  ;;  %v521_v36 = vmul.f32 %v1709_v39, %v509_v27  ;;  %v536_v51 = vsub.f32 0.0, %v1705_v35  ;;  %v1760_v52 = vadd.f32 %v1636_v47, %v1605_v15 }
 0x127   :  { %v592_v40 = vsub.f32 1.0, %v580_v37  ;;  %v594_v21 = vsub.f32 1.0, %v582_v44  ;;  %v591_v28 = vsub.f32 1.0, %v579_v7  ;;  %v499_v45 = vmul.f32 %v1717_v43, %v487_v38 }
 0x128   :  { %v1764_v58 = vand.u32 2147483647, %v1753_v12  ;;  %v648_v61 = vmul.f32 %v636_v14, %v1659_v2  ;;  %v638_v63 = vadd.f32 1.0, %v626_v20  ;;  %v581_v0 = vmul.f32 %v1324_v31, %v521_v36 }
 0x129   :  { %v616_v57 = vsub.f32 0.0, %v592_v40  ;;  %v618_v60 = vsub.f32 0.0, %v594_v21  ;;  %v625_v39 = vsel %vm601_vm2, %v589_v34, %v613_v6  ;;  %v511_v15 = vadd.f32 0.2548296, %v499_v45 }
 0x12a   :  { %v394_v47 = vmul.f32 0.3275911, %v1764_v58  ;;  %v593_v41 = vsub.f32 1.0, %v581_v0  ;;  %v1775_v5 = vmul.f32 0.70710677, %v1760_v52  ;;  %v615_v2 = vsub.f32 0.0, %v591_v28 }
 0x12b   :  { %v628_v46 = vsel %vm604_vm3, %v592_v40, %v616_v57  ;;  %v630_v4 = vsel %vm606_vm4, %v594_v21, %v618_v60  ;;  %v523_v10 = vmul.f32 %v1717_v43, %v511_v15  ;;  %v650_v53 = vmul.f32 %v638_v63, %v1668_v19 }
 0x12c   :  { %v640_v26 = vadd.f32 1.0, %v628_v46  ;;  %v642_v9 = vadd.f32 1.0, %v630_v4  ;;  %v406_v29 = vadd.f32 1.0, %v394_v47  ;;  %v1326_v18 = vpop.eup %1325  ;;  %v617_v8 = vsub.f32 0.0, %v593_v41 }
 0x12d   :  { %v381_v33 = vand.u32 2147483647, %v1775_v5  ;;  %v637_v59 = vadd.f32 1.0, %v625_v39  ;;  %v583_v56 = vmul.f32 %v1326_v18, %v523_v10  ;;  %v353_v13 = vmul.f32 0.5, %v1646_v54 }
 0x12e   :  { %v652_v23 = vmul.f32 %v640_v26, %v1685_v55  ;;  %v1781_v42 = vpop.eup %1327  ;;  %v654_v34 = vmul.f32 %v642_v9, %v354_v17  ;;  %1329 = vrcp.f32 %v406_v29  ;;  %v629_v43 = vsel %vm605_vm5, %v593_v41, %v617_v8 }
 0x12f   :  { %v393_v22 = vmul.f32 0.3275911, %v381_v33  ;;  %v627_v19 = vsel %vm603_vm6, %v591_v28, %v615_v2  ;;  %v641_v7 = vadd.f32 1.0, %v629_v43  ;;  %v595_v37 = vsub.f32 1.0, %v583_v56 }
 0x130   :  { %v660_v49 = vpack.c.bf16 %v652_v23, %v648_v61  ;;  %v662_v55 = vpack.c.bf16 %v654_v34, %v650_v53  ;;  %v1790_v44 = vadd.f32 %v1638_v48, %v1607_v16  ;;  %v428_v17 = vmul.f32 1.0614054, %v1781_v42 }
 0x131   :  { %v405_v14 = vadd.f32 1.0, %v393_v22  ;;  %v649_v27 = vmul.f32 %v637_v59, %v1670_v25  ;;  %v653_v54 = vmul.f32 %v641_v7, %v353_v13  ;;  %v619_v38 = vsub.f32 0.0, %v595_v37 }
 0x132   :  { %v548_v1 = vmul.f32 %v536_v51, %v1705_v35  ;;  %v639_v20 = vadd.f32 1.0, %v627_v19  ;;  %v1797_v30 = vmul.f32 0.70710677, %v1790_v44  ;;  %v440_v31 = vadd.f32 -1.4531521, %v428_v17 }
 0x133   :  { %1331 = vrcp.f32 %v405_v14  ;;  %v631_v6 = vsel %vm607_vm7, %v595_v37, %v619_v38  ;;  %v661_v40 = vpack.c.bf16 %v653_v54, %v649_v27  ;;  %v351_v16 = vmul.f32 0.5, %v1615_v24 }
 0x134   :  { %v355_v48 = vmul.f32 0.5, %v1653_v62  ;;  %v643_v21 = vadd.f32 1.0, %v631_v6  ;;  %v383_v25 = vand.u32 2147483647, %v1797_v30  ;;  %v568_v36 = vmul.f32 1.442695, %v548_v1 }
 0x135   :  { %v538_v35 = vsub.f32 0.0, %v1764_v58  ;;  %963 = vmatprep.mubr.bf16.mxu0 %v661_v40  ;;  %v452_v11 = vmul.f32 %v1781_v42, %v440_v31  ;;  %v651_v51 = vmul.f32 %v639_v20, %v351_v16  ;;  %v537_v63 = vsub.f32 0.0, %v381_v33 }
 0x136   :  { %v655_v28 = vmul.f32 %v643_v21, %v355_v48  ;;  %v395_v57 = vmul.f32 0.3275911, %v383_v25  ;;  %964 = vmatmul.mubr.bf16.vlgmr.msra.gmra.mrb[8].mxu0 %v660_v49  ;;  %1333 = vpow2.f32 %v568_v36  ;;  %v539_v23 = vsub.f32 0.0, %v383_v25 }
 0x137   :  { %v464_v61 = vadd.f32 1.4214138, %v452_v11  ;;  %v550_v62 = vmul.f32 %v538_v35, %v1764_v58  ;;  %v549_v26 = vmul.f32 %v537_v63, %v381_v33  ;;  %vm609_vm9 = vcmp.ge.f32.partialorder %v1775_v5, 0.0 }
 0x138   :  { %v1330_v45 = vpop.eup %1329  ;;  %v407_v60 = vadd.f32 1.0, %v395_v57  ;;  %v663_v24 = vpack.c.bf16 %v655_v28, %v651_v51  ;;  %v551_v33 = vmul.f32 %v539_v23, %v383_v25  ;;  %vm610_vm10 = vcmp.ge.f32.partialorder %v1753_v12, 0.0 }
 0x139   :  { %v430_v0 = vmul.f32 1.0614054, %v1330_v45  ;;  %v476_v39 = vmul.f32 %v1781_v42, %v464_v61  ;;  %v572_v41 = vmul.f32 1.442695, %v550_v62  ;;  %v570_v53 = vmul.f32 1.442695, %v549_v26 }
 0x13a   :  { %1335 = vrcp.f32 %v407_v60  ;;  %1011 = vmatprep.mubr.bf16.mxu1 %v663_v24  ;;  %v574_v17 = vmul.f32 1.442695, %v551_v33  ;;  %v356_v60 = vmul.f32 0.5, %v1681_v50  ;;  %vm611_vm11 = vcmp.ge.f32.partialorder %v1797_v30, 0.0  ;;  %v1123_v30 = vld [vmem:[%s1847_s4] ss:$0 sm:$0xff] }
 0x13b   :  { %v442_v46 = vadd.f32 -1.4531521, %v430_v0  ;;  %1012 = vmatmul.mubr.bf16.vlgmr.msra.gmra.mrb[8].mxu1 %v662_v55  ;;  %v488_v15 = vadd.f32 -0.28449672, %v476_v39  ;;  %1337 = vpow2.f32 %v572_v41  ;;  %v357_v39 = vmul.f32 0.5, %v1760_v52 }
 0x13c   :  { %1339 = vpow2.f32 %v570_v53  ;;  %v358_v50 = vmul.f32 0.5, %v1740_v32  ;;  %v359_v52 = vmul.f32 0.5, %v1790_v44 }
 0x13d   :  { %v1332_v47 = vpop.eup %1331  ;;  %v454_v4 = vmul.f32 %v1330_v45, %v442_v46  ;;  %v500_v9 = vmul.f32 %v1781_v42, %v488_v15  ;;  %1341 = vpow2.f32 %v574_v17 }
 0x13e   :  { %v429_v2 = vmul.f32 1.0614054, %v1332_v47 }
 0x13f   :  { %v466_v10 = vadd.f32 1.4214138, %v454_v4  ;;  %v512_v18 = vadd.f32 0.2548296, %v500_v9 }
 0x140   :  { %v441_v29 = vadd.f32 -1.4531521, %v429_v2  ;;  %v1334_v56 = vpop.eup %1333 }
 0x141   :  { %v478_v58 = vmul.f32 %v1330_v45, %v466_v10  ;;  %v524_v59 = vmul.f32 %v1781_v42, %v512_v18 }
 0x142   :  { %v453_v8 = vmul.f32 %v1332_v47, %v441_v29 }
 0x143   :  { %v490_v34 = vadd.f32 -0.28449672, %v478_v58  ;;  %v584_v43 = vmul.f32 %v1334_v56, %v524_v59 }
 0x144   :  { %v465_v49 = vadd.f32 1.4214138, %v453_v8  ;;  %v1336_v13 = vpop.eup %1335 }
 0x145   :  { %v502_v22 = vmul.f32 %v1330_v45, %v490_v34  ;;  %v431_v55 = vmul.f32 1.0614054, %v1336_v13  ;;  %v596_v27 = vsub.f32 1.0, %v584_v43  ;;  %v1338_v20 = vpop.eup %1337 }
 0x146   :  { %v477_v19 = vmul.f32 %v1332_v47, %v465_v49  ;;  %v1340_v21 = vpop.eup %1339 }
 0x147   :  { %v514_v7 = vadd.f32 0.2548296, %v502_v22  ;;  %v443_v14 = vadd.f32 -1.4531521, %v431_v55  ;;  %v620_v40 = vsub.f32 0.0, %v596_v27  ;;  %v1342_v62 = vpop.eup %1341 }
 0x148   :  { %v489_v37 = vadd.f32 -0.28449672, %v477_v19 }
 0x149   :  { %v526_v54 = vmul.f32 %v1330_v45, %v514_v7  ;;  %v455_v1 = vmul.f32 %v1336_v13, %v443_v14  ;;  %v632_v35 = vsel %vm608_vm8, %v596_v27, %v620_v40  ;;  %v1349_v14 = vld [vmem:[%s1844_s0] sm:$0xff]  ;;  %v1350_v27 = vld [vmem:[%s1844_s0 + $0x8] sm:$0xff] }
 0x14a   :  { %v501_v38 = vmul.f32 %v1332_v47, %v489_v37  ;;  %v644_v61 = vadd.f32 1.0, %v632_v35  ;;  %v1351_v35 = vld [vmem:[%s1844_s0 + $0x10] sm:$0xff] }
 0x14b   :  { %v467_v6 = vadd.f32 1.4214138, %v455_v1  ;;  %v586_v31 = vmul.f32 %v1338_v20, %v526_v54 }
 0x14c   :  { %v513_v42 = vadd.f32 0.2548296, %v501_v38  ;;  %v656_v15 = vmul.f32 %v644_v61, %v356_v60 }
 0x14d   :  { %v479_v48 = vmul.f32 %v1336_v13, %v467_v6  ;;  %v598_v11 = vsub.f32 1.0, %v586_v31 }
 0x14e   :  { %v525_v16 = vmul.f32 %v1332_v47, %v513_v42  ;;  %v664_v9 = vpack.c.bf16 %v656_v15, %v656_v15 }
 0x14f   :  { %v491_v36 = vadd.f32 -0.28449672, %v479_v48  ;;  %v622_v63 = vsub.f32 0.0, %v598_v11 }
 0x150   :  { %v585_v25 = vmul.f32 %v1340_v21, %v525_v16 }
 0x151   :  { %v503_v28 = vmul.f32 %v1336_v13, %v491_v36  ;;  %v634_v26 = vsel %vm610_vm10, %v598_v11, %v622_v63 }
 0x152   :  { %v597_v51 = vsub.f32 1.0, %v585_v25  ;;  %v646_v5 = vadd.f32 1.0, %v634_v26 }
 0x153   :  { %v515_v45 = vadd.f32 0.2548296, %v503_v28 }
 0x154   :  { %v621_v57 = vsub.f32 0.0, %v597_v51  ;;  %v658_v12 = vmul.f32 %v646_v5, %v358_v50  ;;  %v1157_v50 = vld [vmem:[%s1849_s6] ss:$0 sm:$0xff] }
 0x155   :  { %v527_v0 = vmul.f32 %v1336_v13, %v515_v45 }
 0x156   :  { %v633_v24 = vsel %vm609_vm9, %v597_v51, %v621_v57  ;;  %v666_v23 = vpack.c.bf16 %v658_v12, %v658_v12 }
 0x157   :  { %v645_v3 = vadd.f32 1.0, %v633_v24  ;;  %v587_v46 = vmul.f32 %v1342_v62, %v527_v0 }
 0x159   :  { %v657_v47 = vmul.f32 %v645_v3, %v357_v39  ;;  %v599_v4 = vsub.f32 1.0, %v587_v46 }
 0x15b   :  { %v665_v41 = vpack.c.bf16 %v657_v47, %v657_v47  ;;  %v623_v2 = vsub.f32 0.0, %v599_v4 }
 0x15d   :  { %971 = vmatprep.mubr.bf16.mxu0 %v665_v41  ;;  %v635_v10 = vsel %vm611_vm11, %v599_v4, %v623_v2 }
 0x15e   :  { %972 = vmatmul.mubr.bf16.gmra.mrb[12].mxu0 %v664_v9  ;;  %v647_v29 = vadd.f32 1.0, %v635_v10  ;;  %v1156_v9 = vld [vmem:[%s1848_s5] ss:$0 sm:$0xff] }
 0x160   :  { %v659_v18 = vmul.f32 %v647_v29, %v359_v52 }
 0x162   :  { %v667_v53 = vpack.c.bf16 %v659_v18, %v659_v18 }
 0x164   :  { %1019 = vmatprep.mubr.bf16.mxu1 %v667_v53 }
 0x165   :  { %1020 = vmatmul.mubr.bf16.gmra.mrb[12].mxu1 %v666_v23 }
 0x209   :  { %v1174_v58 = vpop.f32.mrb[8].mxu0 }
 0x20a   :  { %v1175_v8 = vpop.f32.mrb[9].mxu0 }
 0x20b   :  { %v1176_v59 = vadd.f32 %v1175_v8, %v1174_v58  ;;  %v1177_v34 = vpop.f32.mrb[10].mxu0 }
 0x20c   :  { %v1178_v32 = vpop.f32.mrb[11].mxu0 }
 0x20d   :  { %v1179_v56 = vadd.f32 %v1178_v32, %v1177_v34  ;;  %v966_v13 = vadd.f32 %v1176_v59, %v1123_v30 }
 0x20e   :  { %v1202_v49 = vpop.f32.mrb[8].mxu1 }
 0x20f   :  { %v1203_v44 = vpop.f32.mrb[9].mxu1  ;;  %v969_v22 = vadd.f32 %v1179_v56, %v1123_v30 }
 0x210   :  { %v1204_v33 = vadd.f32 %v1203_v44, %v1202_v49  ;;  %v1205_v43 = vpop.f32.mrb[10].mxu1 }
 0x211   :  { %v1206_v19 = vpop.f32.mrb[11].mxu1 }
 0x212   :  { %v1014_v55 = vadd.f32 %v1204_v33, %v966_v13  ;;  %v1207_v7 = vadd.f32 %v1206_v19, %v1205_v43 }
 0x214   :  { %v1017_v37 = vadd.f32 %v1207_v7, %v969_v22  ;;  %v1027_v17 = vadd.f32 %v1349_v14, %v1014_v55 }
 0x216   :  { %1030 = vadd.xlane.f32.xlu0 %v1027_v17  ;;  %v1028_v54 = vadd.f32 %v1350_v27, %v1017_v37 }
 0x21a   :  { %1032 = vadd.xlane.f32.xlu0 %v1028_v54 }
 0x231   :  { %v1180_v38 = vpop.f32.mrb[12].mxu0 }
 0x232   :  { %v1181_v1 = vpop.f32.mrb[13].mxu0 }
 0x233   :  { %v1182_v20 = vadd.f32 %v1181_v1, %v1180_v38  ;;  %v1183_v42 = vpop.f32.mrb[14].mxu0 }
 0x234   :  { %v1184_v6 = vpop.f32.mrb[15].mxu0 }
 0x235   :  { %v974_v31 = vadd.f32 %v1182_v20, %v1123_v30 }
 0x238   :  { %v1208_v40 = vpop.f32.mrb[12].mxu1 }
 0x239   :  { %v1209_v16 = vpop.f32.mrb[13].mxu1 }
 0x23a   :  { %v1210_v48 = vadd.f32 %v1209_v16, %v1208_v40  ;;  %v1211_v21 = vpop.f32.mrb[14].mxu1 }
 0x23b   :  { %v1212_v25 = vpop.f32.mrb[15].mxu1 }
 0x23c   :  { %v1022_v36 = vadd.f32 %v1210_v48, %v974_v31 }
 0x23e   :  { %v1029_v11 = vadd.f32 %v1351_v35, %v1022_v36 }
 0x240   :  { %1034 = vadd.xlane.f32.xlu1 %v1029_v11 }
 0x2a3   :  { %v1031_v51 = vpop.xlane.xlu0 %1030 }
 0x2a4   :  { %v1037_v28 = vmul.f32 0.0078125, %v1031_v51 }
 0x2a6   :  { %v1040_v57 = vsub.f32 %v1027_v17, %v1037_v28 }
 0x2a7   :  { %v1033_v45 = vpop.xlane.xlu0 %1032 }
 0x2a8   :  { %v1038_v61 = vmul.f32 0.0078125, %v1033_v45  ;;  %v1043_v63 = vmul.f32 %v1040_v57, %v1040_v57 }
 0x2aa   :  { %v1041_v60 = vsub.f32 %v1028_v54, %v1038_v61  ;;  %1046 = vadd.xlane.f32.xlu1 %v1043_v63 }
 0x2ac   :  { %v1044_v24 = vmul.f32 %v1041_v60, %v1041_v60 }
 0x2ae   :  { %1048 = vadd.xlane.f32.xlu0 %v1044_v24 }
 0x2cd   :  { %v1035_v0 = vpop.xlane.xlu1 %1034 }
 0x2ce   :  { %v1039_v62 = vmul.f32 0.0078125, %v1035_v0 }
 0x2d0   :  { %v1042_v39 = vsub.f32 %v1029_v11, %v1039_v62 }
 0x2d2   :  { %v1045_v3 = vmul.f32 %v1042_v39, %v1042_v39 }
 0x2d4   :  { %1050 = vadd.xlane.f32.xlu1 %v1045_v3 }
 0x337   :  { %v1047_v46 = vpop.xlane.xlu1 %1046 }
 0x338   :  { %v1052_v15 = vmul.f32 0.0078125, %v1047_v46 }
 0x33a   :  { %v1055_v47 = vadd.f32 1e-05, %v1052_v15 }
 0x33b   :  { %v1049_v26 = vpop.xlane.xlu0 %1048 }
 0x33c   :  { %1343 = vrsqrt.f32 %v1055_v47  ;;  %v1053_v4 = vmul.f32 0.0078125, %v1049_v26 }
 0x33e   :  { %v1056_v41 = vadd.f32 1e-05, %v1053_v4 }
 0x340   :  { %1345 = vrsqrt.f32 %v1056_v41 }
 0x346   :  { %v1344_v2 = vpop.eup %1343 }
 0x347   :  { %v1061_v5 = vmul.f32 %v1344_v2, %v1040_v57 }
 0x349   :  { %v1071_v10 = vmul.f32 %v1156_v9, %v1061_v5 }
 0x34a   :  { %v1346_v52 = vpop.eup %1345 }
 0x34b   :  { %v1081_v29 = vadd.f32 %v1157_v50, %v1071_v10  ;;  %v1062_v12 = vmul.f32 %v1346_v52, %v1041_v60 }
 0x34d   :  { %1084 = vst [vmem:[%s1850_s7] sm:$0xff] %v1081_v29  ;;  %v1072_v18 = vmul.f32 %v1156_v9, %v1062_v12 }
 0x34f   :  { %v1082_v53 = vadd.f32 %v1157_v50, %v1072_v18 }
 0x351   :  { %1085 = vst [vmem:[%s1850_s7 + $0x8] sm:$0xff] %v1082_v53 }
 0x361   :  { %v1051_v23 = vpop.xlane.xlu1 %1050 }
 0x362   :  { %v1054_v58 = vmul.f32 0.0078125, %v1051_v23 }
 0x364   :  { %v1057_v8 = vadd.f32 1e-05, %v1054_v58 }
 0x366   :  { %1347 = vrsqrt.f32 %v1057_v8 }
 0x370   :  { %v1348_v30 = vpop.eup %1347 }
 0x371   :  { %v1063_v59 = vmul.f32 %v1348_v30, %v1042_v39 }
 0x373   :  { %v1073_v34 = vmul.f32 %v1156_v9, %v1063_v59 }
 0x375   :  { %v1083_v32 = vadd.f32 %v1157_v50, %v1073_v34 }
 0x377   :  { %1086 = vst [vmem:[%s1850_s7 + $0x10] sm:$0xff] %v1083_v32 }

</bundles_post_ra>
